<compile_context>
chip_gen: v7x
topology: tpu7x:2x2x1
jax: 0.10.0
libtpu: 0.0.40
codegen_flags: <defaults>
</compile_context>

<pallas_src>
import jax
import jax.numpy as jnp
from jax.experimental import pallas as pl
from jax.experimental.pallas import tpu as pltpu

D_IN, D_H1, D_H2, D_OUT = 2, 8, 16, 4
LANES = 128          # lane width of a vreg
CHUNK_ROWS = 16      # sublane rows per inner chunk -> 2 f32 vregs per feature
MAX_ROWS_PER_STEP = 64   # 64 rows * 128 lanes = 8192 samples per grid step


def _round_up(n, m):
    return (n + m - 1) // m * m


def mlp_kernel(w1_ref, b1_ref, w2_ref, b2_ref, w3_ref, b3_ref, x_ref, o_ref):
    """One (D_IN, rows, 128) block: fused 3-layer MLP on the VPU.

    The batch lives on (sublane, lane); each inner-loop chunk processes a
    (CHUNK_ROWS, 128) tile per feature (2 full vregs), so every scalar weight
    splat feeds 2 vregs of FMA work.  Weights/biases are SMEM scalars; their
    loads hide under the VALU work.
    """
    rows = x_ref.shape[1]
    n_chunks = rows // CHUNK_ROWS  # static; rows is a multiple of CHUNK_ROWS

    @pl.loop(0, n_chunks)
    def _(c):
        r0 = pl.multiple_of(c * CHUNK_ROWS, CHUNK_ROWS)
        x0 = x_ref[0, pl.ds(r0, CHUNK_ROWS), :]   # (CHUNK_ROWS, 128)
        x1 = x_ref[1, pl.ds(r0, CHUNK_ROWS), :]

        # Layer 1: 2 -> 8 (+ReLU)      -- 16 live vregs
        h1 = []
        for n in range(D_H1):
            a = x0 * w1_ref[0, n] + x1 * w1_ref[1, n] + b1_ref[n]
            h1.append(jnp.maximum(a, 0.0))

        # Layer 2: 8 -> 16 (+ReLU)     -- peak ~48 live vregs (h1 + h2 + acc)
        h2 = []
        for n in range(D_H2):
            a = h1[0] * w2_ref[0, n] + b2_ref[n]
            for k in range(1, D_H1):
                a = a + h1[k] * w2_ref[k, n]
            h2.append(jnp.maximum(a, 0.0))

        # Layer 3: 16 -> 4, full (CHUNK_ROWS, 128) tile stores (unmasked vst).
        for n in range(D_OUT):
            a = h2[0] * w3_ref[0, n] + b3_ref[n]
            for k in range(1, D_H2):
                a = a + h2[k] * w3_ref[k, n]
            o_ref[n, pl.ds(r0, CHUNK_ROWS), :] = a


def _mlp_pallas_feature_major(xt, params):
    """xt: (D_IN, B) float32 feature-major  ->  (D_OUT, B) feature-major."""
    w1, b1, w2, b2, w3, b3 = params
    B = xt.shape[1]

    rows_total = _round_up(B, LANES) // LANES
    rows_per_step = min(MAX_ROWS_PER_STEP, _round_up(rows_total, CHUNK_ROWS))
    rows_pad = _round_up(rows_total, rows_per_step)
    b_pad = rows_pad * LANES

    # Batch tiled onto (sublane, lane): (D_IN, rows_pad, 128).  Padded columns
    # carry relu(bias) garbage through the layers but are sliced off below.
    xt = jnp.pad(xt.astype(jnp.float32), ((0, 0), (0, b_pad - B)))
    xt = xt.reshape(D_IN, rows_pad, LANES)

    smem = lambda: pl.BlockSpec(memory_space=pltpu.MemorySpace.SMEM)
    out_t = pl.pallas_call(
        mlp_kernel,
        out_shape=jax.ShapeDtypeStruct((D_OUT, rows_pad, LANES), jnp.float32),
        grid=(rows_pad // rows_per_step,),
        in_specs=[smem(), smem(), smem(), smem(), smem(), smem(),
                  pl.BlockSpec((D_IN, rows_per_step, LANES),
                               lambda i: (0, i, 0))],
        out_specs=pl.BlockSpec((D_OUT, rows_per_step, LANES),
                               lambda i: (0, i, 0)),
        compiler_params=pltpu.CompilerParams(
            dimension_semantics=("parallel",)),
    )(w1, b1, w2, b2, w3, b3, xt)

    return out_t.reshape(D_OUT, b_pad)[:, :B]


def reference_forward(x, params):
    """Plain-XLA reference (and the small-batch fast path)."""
    w1, b1, w2, b2, w3, b3 = params
    h = jnp.maximum(x @ w1 + b1, 0.0)
    h = jnp.maximum(h @ w2 + b2, 0.0)
    return h @ w3 + b3


def mlp_forward(x, params, *, min_kernel_batch=4096, force_kernel=False):
    """x: (B, 2) float32 -> (B, 4) float32 (same contract as the PyTorch Net)."""
    B = x.shape[0]
    if B < min_kernel_batch and not force_kernel:
        # At small batch the kernel is pure launch/DMA/padding overhead; let
        # XLA fuse the three tiny matmuls instead.
        return reference_forward(x.astype(jnp.float32), params)
    out_fm = _mlp_pallas_feature_major(x.T, params)
    # The two transposes exist only to preserve the (B, 2) -> (B, 4) PyTorch
    # contract; feature-major callers should use _mlp_pallas_feature_major.
    return out_fm.T


def init_params(key):
    """nn.Linear-equivalent params stored as W:(in,out), b:(out,)."""
    k1, k2, k3, k4, k5, k6 = jax.random.split(key, 6)
    w1 = jax.random.normal(k1, (D_IN, D_H1), jnp.float32) * 0.5
    b1 = jax.random.normal(k2, (D_H1,), jnp.float32) * 0.1
    w2 = jax.random.normal(k3, (D_H1, D_H2), jnp.float32) * 0.3
    b2 = jax.random.normal(k4, (D_H2,), jnp.float32) * 0.1
    w3 = jax.random.normal(k5, (D_H2, D_OUT), jnp.float32) * 0.3
    b3 = jax.random.normal(k6, (D_OUT,), jnp.float32) * 0.1
    return (w1, b1, w2, b2, w3, b3)


if __name__ == "__main__":
    key = jax.random.PRNGKey(0)
    k_x, k_p, k_x2 = jax.random.split(key, 3)
    params = init_params(k_p)

    # Small, module-consistent shape: batch of 8 samples, 2 features each.
    # force_kernel=True so the Pallas path itself is exercised at small shape.
    x_small = jax.random.normal(k_x, (8, D_IN), jnp.float32)
    out_small = jax.block_until_ready(mlp_forward(x_small, params, force_kernel=True))
    ref_small = reference_forward(x_small, params)
    assert out_small.shape == (8, D_OUT), out_small.shape
    assert jnp.allclose(out_small, ref_small, atol=1e-5, rtol=1e-5), "small-batch mismatch"

    # Ragged large batch: exercises padding, the in-kernel chunk loop and a
    # multi-step parallel grid (the regime this kernel is written for).
    x_big = jax.random.normal(k_x2, (20000, D_IN), jnp.float32)
    out_big = jax.block_until_ready(mlp_forward(x_big, params))
    ref_big = reference_forward(x_big, params)
    assert out_big.shape == (20000, D_OUT), out_big.shape
    assert jnp.allclose(out_big, ref_big, atol=1e-4, rtol=1e-4), "big-batch mismatch"

    # Small-batch fallback path (plain XLA fusion) still matches.
    out_fb = jax.block_until_ready(mlp_forward(x_small, params))
    assert jnp.allclose(out_fb, ref_small, atol=1e-5, rtol=1e-5), "fallback mismatch"

    print("KERNEL_OK")
</pallas_src>

<mosaic_0001>
module attributes {stable_mosaic.version = 11 : i64} {
  func.func @mlp_kernel(%arg0: i32, %arg1: memref<2x8xf32, #tpu.memory_space<smem>>, %arg2: memref<8xf32, #tpu.memory_space<smem>>, %arg3: memref<8x16xf32, #tpu.memory_space<smem>>, %arg4: memref<16xf32, #tpu.memory_space<smem>>, %arg5: memref<16x4xf32, #tpu.memory_space<smem>>, %arg6: memref<4xf32, #tpu.memory_space<smem>>, %arg7: memref<2x16x128xf32, #tpu.memory_space<vmem>>, %arg8: memref<4x16x128xf32, #tpu.memory_space<vmem>>) attributes {dimension_semantics = [#tpu.dimension_semantics<parallel>], iteration_bounds = array<i64: 1>, scalar_prefetch = 0 : i64, scratch_operands = 0 : i64, tpu.core_type = #tpu.core_type<tc>, window_params = [{transform_indices = @transform_0, window_bounds = array<i64: 2, 8>}, {transform_indices = @transform_1, window_bounds = array<i64: 8>}, {transform_indices = @transform_2, window_bounds = array<i64: 8, 16>}, {transform_indices = @transform_3, window_bounds = array<i64: 16>}, {transform_indices = @transform_4, window_bounds = array<i64: 16, 4>}, {transform_indices = @transform_5, window_bounds = array<i64: 4>}, {transform_indices = @transform_6, window_bounds = array<i64: 2, 16, 128>}, {transform_indices = @transform_7, window_bounds = array<i64: 4, 16, 128>}]} {
    %c0_i32 = arith.constant 0 : i32
    %c1_i32 = arith.constant 1 : i32
    %0 = arith.muli %c0_i32, %c1_i32 : i32
    %c0_i32_0 = arith.constant 0 : i32
    %1 = arith.addi %c0_i32_0, %0 : i32
    %c16_i32 = arith.constant 16 : i32
    %2 = arith.muli %1, %c16_i32 : i32
    %3 = tpu.assume_multiple %2, 16 : i32
    %c0 = arith.constant 0 : index
    %4 = arith.index_cast %3 : i32 to index
    %c0_1 = arith.constant 0 : index
    %5 = vector.load %arg7[%c0, %4, %c0_1] : memref<2x16x128xf32, #tpu.memory_space<vmem>>, vector<1x16x128xf32>
    %6 = vector.shape_cast %5 : vector<1x16x128xf32> to vector<16x128xf32>
    %c1 = arith.constant 1 : index
    %7 = arith.index_cast %3 : i32 to index
    %c0_2 = arith.constant 0 : index
    %8 = vector.load %arg7[%c1, %7, %c0_2] : memref<2x16x128xf32, #tpu.memory_space<vmem>>, vector<1x16x128xf32>
    %9 = vector.shape_cast %8 : vector<1x16x128xf32> to vector<16x128xf32>
    %c0_3 = arith.constant 0 : index
    %c0_4 = arith.constant 0 : index
    %10 = memref.load %arg1[%c0_3, %c0_4] : memref<2x8xf32, #tpu.memory_space<smem>>
    %11 = vector.broadcast %10 : f32 to vector<16x128xf32>
    %12 = arith.mulf %6, %11 : vector<16x128xf32>
    %c1_5 = arith.constant 1 : index
    %c0_6 = arith.constant 0 : index
    %13 = memref.load %arg1[%c1_5, %c0_6] : memref<2x8xf32, #tpu.memory_space<smem>>
    %14 = vector.broadcast %13 : f32 to vector<16x128xf32>
    %15 = arith.mulf %9, %14 : vector<16x128xf32>
    %16 = arith.addf %12, %15 : vector<16x128xf32>
    %c0_7 = arith.constant 0 : index
    %17 = memref.load %arg2[%c0_7] : memref<8xf32, #tpu.memory_space<smem>>
    %18 = vector.broadcast %17 : f32 to vector<16x128xf32>
    %19 = arith.addf %16, %18 : vector<16x128xf32>
    %cst = arith.constant 0.000000e+00 : f32
    %20 = vector.broadcast %cst : f32 to vector<16x128xf32>
    %21 = arith.maximumf %19, %20 : vector<16x128xf32>
    %c0_8 = arith.constant 0 : index
    %c1_9 = arith.constant 1 : index
    %22 = memref.load %arg1[%c0_8, %c1_9] : memref<2x8xf32, #tpu.memory_space<smem>>
    %23 = vector.broadcast %22 : f32 to vector<16x128xf32>
    %24 = arith.mulf %6, %23 : vector<16x128xf32>
    %c1_10 = arith.constant 1 : index
    %c1_11 = arith.constant 1 : index
    %25 = memref.load %arg1[%c1_10, %c1_11] : memref<2x8xf32, #tpu.memory_space<smem>>
    %26 = vector.broadcast %25 : f32 to vector<16x128xf32>
    %27 = arith.mulf %9, %26 : vector<16x128xf32>
    %28 = arith.addf %24, %27 : vector<16x128xf32>
    %c1_12 = arith.constant 1 : index
    %29 = memref.load %arg2[%c1_12] : memref<8xf32, #tpu.memory_space<smem>>
    %30 = vector.broadcast %29 : f32 to vector<16x128xf32>
    %31 = arith.addf %28, %30 : vector<16x128xf32>
    %cst_13 = arith.constant 0.000000e+00 : f32
    %32 = vector.broadcast %cst_13 : f32 to vector<16x128xf32>
    %33 = arith.maximumf %31, %32 : vector<16x128xf32>
    %c0_14 = arith.constant 0 : index
    %c2 = arith.constant 2 : index
    %34 = memref.load %arg1[%c0_14, %c2] : memref<2x8xf32, #tpu.memory_space<smem>>
    %35 = vector.broadcast %34 : f32 to vector<16x128xf32>
    %36 = arith.mulf %6, %35 : vector<16x128xf32>
    %c1_15 = arith.constant 1 : index
    %c2_16 = arith.constant 2 : index
    %37 = memref.load %arg1[%c1_15, %c2_16] : memref<2x8xf32, #tpu.memory_space<smem>>
    %38 = vector.broadcast %37 : f32 to vector<16x128xf32>
    %39 = arith.mulf %9, %38 : vector<16x128xf32>
    %40 = arith.addf %36, %39 : vector<16x128xf32>
    %c2_17 = arith.constant 2 : index
    %41 = memref.load %arg2[%c2_17] : memref<8xf32, #tpu.memory_space<smem>>
    %42 = vector.broadcast %41 : f32 to vector<16x128xf32>
    %43 = arith.addf %40, %42 : vector<16x128xf32>
    %cst_18 = arith.constant 0.000000e+00 : f32
    %44 = vector.broadcast %cst_18 : f32 to vector<16x128xf32>
    %45 = arith.maximumf %43, %44 : vector<16x128xf32>
    %c0_19 = arith.constant 0 : index
    %c3 = arith.constant 3 : index
    %46 = memref.load %arg1[%c0_19, %c3] : memref<2x8xf32, #tpu.memory_space<smem>>
    %47 = vector.broadcast %46 : f32 to vector<16x128xf32>
    %48 = arith.mulf %6, %47 : vector<16x128xf32>
    %c1_20 = arith.constant 1 : index
    %c3_21 = arith.constant 3 : index
    %49 = memref.load %arg1[%c1_20, %c3_21] : memref<2x8xf32, #tpu.memory_space<smem>>
    %50 = vector.broadcast %49 : f32 to vector<16x128xf32>
    %51 = arith.mulf %9, %50 : vector<16x128xf32>
    %52 = arith.addf %48, %51 : vector<16x128xf32>
    %c3_22 = arith.constant 3 : index
    %53 = memref.load %arg2[%c3_22] : memref<8xf32, #tpu.memory_space<smem>>
    %54 = vector.broadcast %53 : f32 to vector<16x128xf32>
    %55 = arith.addf %52, %54 : vector<16x128xf32>
    %cst_23 = arith.constant 0.000000e+00 : f32
    %56 = vector.broadcast %cst_23 : f32 to vector<16x128xf32>
    %57 = arith.maximumf %55, %56 : vector<16x128xf32>
    %c0_24 = arith.constant 0 : index
    %c4 = arith.constant 4 : index
    %58 = memref.load %arg1[%c0_24, %c4] : memref<2x8xf32, #tpu.memory_space<smem>>
    %59 = vector.broadcast %58 : f32 to vector<16x128xf32>
    %60 = arith.mulf %6, %59 : vector<16x128xf32>
    %c1_25 = arith.constant 1 : index
    %c4_26 = arith.constant 4 : index
    %61 = memref.load %arg1[%c1_25, %c4_26] : memref<2x8xf32, #tpu.memory_space<smem>>
    %62 = vector.broadcast %61 : f32 to vector<16x128xf32>
    %63 = arith.mulf %9, %62 : vector<16x128xf32>
    %64 = arith.addf %60, %63 : vector<16x128xf32>
    %c4_27 = arith.constant 4 : index
    %65 = memref.load %arg2[%c4_27] : memref<8xf32, #tpu.memory_space<smem>>
    %66 = vector.broadcast %65 : f32 to vector<16x128xf32>
    %67 = arith.addf %64, %66 : vector<16x128xf32>
    %cst_28 = arith.constant 0.000000e+00 : f32
    %68 = vector.broadcast %cst_28 : f32 to vector<16x128xf32>
    %69 = arith.maximumf %67, %68 : vector<16x128xf32>
    %c0_29 = arith.constant 0 : index
    %c5 = arith.constant 5 : index
    %70 = memref.load %arg1[%c0_29, %c5] : memref<2x8xf32, #tpu.memory_space<smem>>
    %71 = vector.broadcast %70 : f32 to vector<16x128xf32>
    %72 = arith.mulf %6, %71 : vector<16x128xf32>
    %c1_30 = arith.constant 1 : index
    %c5_31 = arith.constant 5 : index
    %73 = memref.load %arg1[%c1_30, %c5_31] : memref<2x8xf32, #tpu.memory_space<smem>>
    %74 = vector.broadcast %73 : f32 to vector<16x128xf32>
    %75 = arith.mulf %9, %74 : vector<16x128xf32>
    %76 = arith.addf %72, %75 : vector<16x128xf32>
    %c5_32 = arith.constant 5 : index
    %77 = memref.load %arg2[%c5_32] : memref<8xf32, #tpu.memory_space<smem>>
    %78 = vector.broadcast %77 : f32 to vector<16x128xf32>
    %79 = arith.addf %76, %78 : vector<16x128xf32>
    %cst_33 = arith.constant 0.000000e+00 : f32
    %80 = vector.broadcast %cst_33 : f32 to vector<16x128xf32>
    %81 = arith.maximumf %79, %80 : vector<16x128xf32>
    %c0_34 = arith.constant 0 : index
    %c6 = arith.constant 6 : index
    %82 = memref.load %arg1[%c0_34, %c6] : memref<2x8xf32, #tpu.memory_space<smem>>
    %83 = vector.broadcast %82 : f32 to vector<16x128xf32>
    %84 = arith.mulf %6, %83 : vector<16x128xf32>
    %c1_35 = arith.constant 1 : index
    %c6_36 = arith.constant 6 : index
    %85 = memref.load %arg1[%c1_35, %c6_36] : memref<2x8xf32, #tpu.memory_space<smem>>
    %86 = vector.broadcast %85 : f32 to vector<16x128xf32>
    %87 = arith.mulf %9, %86 : vector<16x128xf32>
    %88 = arith.addf %84, %87 : vector<16x128xf32>
    %c6_37 = arith.constant 6 : index
    %89 = memref.load %arg2[%c6_37] : memref<8xf32, #tpu.memory_space<smem>>
    %90 = vector.broadcast %89 : f32 to vector<16x128xf32>
    %91 = arith.addf %88, %90 : vector<16x128xf32>
    %cst_38 = arith.constant 0.000000e+00 : f32
    %92 = vector.broadcast %cst_38 : f32 to vector<16x128xf32>
    %93 = arith.maximumf %91, %92 : vector<16x128xf32>
    %c0_39 = arith.constant 0 : index
    %c7 = arith.constant 7 : index
    %94 = memref.load %arg1[%c0_39, %c7] : memref<2x8xf32, #tpu.memory_space<smem>>
    %95 = vector.broadcast %94 : f32 to vector<16x128xf32>
    %96 = arith.mulf %6, %95 : vector<16x128xf32>
    %c1_40 = arith.constant 1 : index
    %c7_41 = arith.constant 7 : index
    %97 = memref.load %arg1[%c1_40, %c7_41] : memref<2x8xf32, #tpu.memory_space<smem>>
    %98 = vector.broadcast %97 : f32 to vector<16x128xf32>
    %99 = arith.mulf %9, %98 : vector<16x128xf32>
    %100 = arith.addf %96, %99 : vector<16x128xf32>
    %c7_42 = arith.constant 7 : index
    %101 = memref.load %arg2[%c7_42] : memref<8xf32, #tpu.memory_space<smem>>
    %102 = vector.broadcast %101 : f32 to vector<16x128xf32>
    %103 = arith.addf %100, %102 : vector<16x128xf32>
    %cst_43 = arith.constant 0.000000e+00 : f32
    %104 = vector.broadcast %cst_43 : f32 to vector<16x128xf32>
    %105 = arith.maximumf %103, %104 : vector<16x128xf32>
    %c0_44 = arith.constant 0 : index
    %c0_45 = arith.constant 0 : index
    %106 = memref.load %arg3[%c0_44, %c0_45] : memref<8x16xf32, #tpu.memory_space<smem>>
    %107 = vector.broadcast %106 : f32 to vector<16x128xf32>
    %108 = arith.mulf %21, %107 : vector<16x128xf32>
    %c0_46 = arith.constant 0 : index
    %109 = memref.load %arg4[%c0_46] : memref<16xf32, #tpu.memory_space<smem>>
    %110 = vector.broadcast %109 : f32 to vector<16x128xf32>
    %111 = arith.addf %108, %110 : vector<16x128xf32>
    %c1_47 = arith.constant 1 : index
    %c0_48 = arith.constant 0 : index
    %112 = memref.load %arg3[%c1_47, %c0_48] : memref<8x16xf32, #tpu.memory_space<smem>>
    %113 = vector.broadcast %112 : f32 to vector<16x128xf32>
    %114 = arith.mulf %33, %113 : vector<16x128xf32>
    %115 = arith.addf %111, %114 : vector<16x128xf32>
    %c2_49 = arith.constant 2 : index
    %c0_50 = arith.constant 0 : index
    %116 = memref.load %arg3[%c2_49, %c0_50] : memref<8x16xf32, #tpu.memory_space<smem>>
    %117 = vector.broadcast %116 : f32 to vector<16x128xf32>
    %118 = arith.mulf %45, %117 : vector<16x128xf32>
    %119 = arith.addf %115, %118 : vector<16x128xf32>
    %c3_51 = arith.constant 3 : index
    %c0_52 = arith.constant 0 : index
    %120 = memref.load %arg3[%c3_51, %c0_52] : memref<8x16xf32, #tpu.memory_space<smem>>
    %121 = vector.broadcast %120 : f32 to vector<16x128xf32>
    %122 = arith.mulf %57, %121 : vector<16x128xf32>
    %123 = arith.addf %119, %122 : vector<16x128xf32>
    %c4_53 = arith.constant 4 : index
    %c0_54 = arith.constant 0 : index
    %124 = memref.load %arg3[%c4_53, %c0_54] : memref<8x16xf32, #tpu.memory_space<smem>>
    %125 = vector.broadcast %124 : f32 to vector<16x128xf32>
    %126 = arith.mulf %69, %125 : vector<16x128xf32>
    %127 = arith.addf %123, %126 : vector<16x128xf32>
    %c5_55 = arith.constant 5 : index
    %c0_56 = arith.constant 0 : index
    %128 = memref.load %arg3[%c5_55, %c0_56] : memref<8x16xf32, #tpu.memory_space<smem>>
    %129 = vector.broadcast %128 : f32 to vector<16x128xf32>
    %130 = arith.mulf %81, %129 : vector<16x128xf32>
    %131 = arith.addf %127, %130 : vector<16x128xf32>
    %c6_57 = arith.constant 6 : index
    %c0_58 = arith.constant 0 : index
    %132 = memref.load %arg3[%c6_57, %c0_58] : memref<8x16xf32, #tpu.memory_space<smem>>
    %133 = vector.broadcast %132 : f32 to vector<16x128xf32>
    %134 = arith.mulf %93, %133 : vector<16x128xf32>
    %135 = arith.addf %131, %134 : vector<16x128xf32>
    %c7_59 = arith.constant 7 : index
    %c0_60 = arith.constant 0 : index
    %136 = memref.load %arg3[%c7_59, %c0_60] : memref<8x16xf32, #tpu.memory_space<smem>>
    %137 = vector.broadcast %136 : f32 to vector<16x128xf32>
    %138 = arith.mulf %105, %137 : vector<16x128xf32>
    %139 = arith.addf %135, %138 : vector<16x128xf32>
    %cst_61 = arith.constant 0.000000e+00 : f32
    %140 = vector.broadcast %cst_61 : f32 to vector<16x128xf32>
    %141 = arith.maximumf %139, %140 : vector<16x128xf32>
    %c0_62 = arith.constant 0 : index
    %c1_63 = arith.constant 1 : index
    %142 = memref.load %arg3[%c0_62, %c1_63] : memref<8x16xf32, #tpu.memory_space<smem>>
    %143 = vector.broadcast %142 : f32 to vector<16x128xf32>
    %144 = arith.mulf %21, %143 : vector<16x128xf32>
    %c1_64 = arith.constant 1 : index
    %145 = memref.load %arg4[%c1_64] : memref<16xf32, #tpu.memory_space<smem>>
    %146 = vector.broadcast %145 : f32 to vector<16x128xf32>
    %147 = arith.addf %144, %146 : vector<16x128xf32>
    %c1_65 = arith.constant 1 : index
    %c1_66 = arith.constant 1 : index
    %148 = memref.load %arg3[%c1_65, %c1_66] : memref<8x16xf32, #tpu.memory_space<smem>>
    %149 = vector.broadcast %148 : f32 to vector<16x128xf32>
    %150 = arith.mulf %33, %149 : vector<16x128xf32>
    %151 = arith.addf %147, %150 : vector<16x128xf32>
    %c2_67 = arith.constant 2 : index
    %c1_68 = arith.constant 1 : index
    %152 = memref.load %arg3[%c2_67, %c1_68] : memref<8x16xf32, #tpu.memory_space<smem>>
    %153 = vector.broadcast %152 : f32 to vector<16x128xf32>
    %154 = arith.mulf %45, %153 : vector<16x128xf32>
    %155 = arith.addf %151, %154 : vector<16x128xf32>
    %c3_69 = arith.constant 3 : index
    %c1_70 = arith.constant 1 : index
    %156 = memref.load %arg3[%c3_69, %c1_70] : memref<8x16xf32, #tpu.memory_space<smem>>
    %157 = vector.broadcast %156 : f32 to vector<16x128xf32>
    %158 = arith.mulf %57, %157 : vector<16x128xf32>
    %159 = arith.addf %155, %158 : vector<16x128xf32>
    %c4_71 = arith.constant 4 : index
    %c1_72 = arith.constant 1 : index
    %160 = memref.load %arg3[%c4_71, %c1_72] : memref<8x16xf32, #tpu.memory_space<smem>>
    %161 = vector.broadcast %160 : f32 to vector<16x128xf32>
    %162 = arith.mulf %69, %161 : vector<16x128xf32>
    %163 = arith.addf %159, %162 : vector<16x128xf32>
    %c5_73 = arith.constant 5 : index
    %c1_74 = arith.constant 1 : index
    %164 = memref.load %arg3[%c5_73, %c1_74] : memref<8x16xf32, #tpu.memory_space<smem>>
    %165 = vector.broadcast %164 : f32 to vector<16x128xf32>
    %166 = arith.mulf %81, %165 : vector<16x128xf32>
    %167 = arith.addf %163, %166 : vector<16x128xf32>
    %c6_75 = arith.constant 6 : index
    %c1_76 = arith.constant 1 : index
    %168 = memref.load %arg3[%c6_75, %c1_76] : memref<8x16xf32, #tpu.memory_space<smem>>
    %169 = vector.broadcast %168 : f32 to vector<16x128xf32>
    %170 = arith.mulf %93, %169 : vector<16x128xf32>
    %171 = arith.addf %167, %170 : vector<16x128xf32>
    %c7_77 = arith.constant 7 : index
    %c1_78 = arith.constant 1 : index
    %172 = memref.load %arg3[%c7_77, %c1_78] : memref<8x16xf32, #tpu.memory_space<smem>>
    %173 = vector.broadcast %172 : f32 to vector<16x128xf32>
    %174 = arith.mulf %105, %173 : vector<16x128xf32>
    %175 = arith.addf %171, %174 : vector<16x128xf32>
    %cst_79 = arith.constant 0.000000e+00 : f32
    %176 = vector.broadcast %cst_79 : f32 to vector<16x128xf32>
    %177 = arith.maximumf %175, %176 : vector<16x128xf32>
    %c0_80 = arith.constant 0 : index
    %c2_81 = arith.constant 2 : index
    %178 = memref.load %arg3[%c0_80, %c2_81] : memref<8x16xf32, #tpu.memory_space<smem>>
    %179 = vector.broadcast %178 : f32 to vector<16x128xf32>
    %180 = arith.mulf %21, %179 : vector<16x128xf32>
    %c2_82 = arith.constant 2 : index
    %181 = memref.load %arg4[%c2_82] : memref<16xf32, #tpu.memory_space<smem>>
    %182 = vector.broadcast %181 : f32 to vector<16x128xf32>
    %183 = arith.addf %180, %182 : vector<16x128xf32>
    %c1_83 = arith.constant 1 : index
    %c2_84 = arith.constant 2 : index
    %184 = memref.load %arg3[%c1_83, %c2_84] : memref<8x16xf32, #tpu.memory_space<smem>>
    %185 = vector.broadcast %184 : f32 to vector<16x128xf32>
    %186 = arith.mulf %33, %185 : vector<16x128xf32>
    %187 = arith.addf %183, %186 : vector<16x128xf32>
    %c2_85 = arith.constant 2 : index
    %c2_86 = arith.constant 2 : index
    %188 = memref.load %arg3[%c2_85, %c2_86] : memref<8x16xf32, #tpu.memory_space<smem>>
    %189 = vector.broadcast %188 : f32 to vector<16x128xf32>
    %190 = arith.mulf %45, %189 : vector<16x128xf32>
    %191 = arith.addf %187, %190 : vector<16x128xf32>
    %c3_87 = arith.constant 3 : index
    %c2_88 = arith.constant 2 : index
    %192 = memref.load %arg3[%c3_87, %c2_88] : memref<8x16xf32, #tpu.memory_space<smem>>
    %193 = vector.broadcast %192 : f32 to vector<16x128xf32>
    %194 = arith.mulf %57, %193 : vector<16x128xf32>
    %195 = arith.addf %191, %194 : vector<16x128xf32>
    %c4_89 = arith.constant 4 : index
    %c2_90 = arith.constant 2 : index
    %196 = memref.load %arg3[%c4_89, %c2_90] : memref<8x16xf32, #tpu.memory_space<smem>>
    %197 = vector.broadcast %196 : f32 to vector<16x128xf32>
    %198 = arith.mulf %69, %197 : vector<16x128xf32>
    %199 = arith.addf %195, %198 : vector<16x128xf32>
    %c5_91 = arith.constant 5 : index
    %c2_92 = arith.constant 2 : index
    %200 = memref.load %arg3[%c5_91, %c2_92] : memref<8x16xf32, #tpu.memory_space<smem>>
    %201 = vector.broadcast %200 : f32 to vector<16x128xf32>
    %202 = arith.mulf %81, %201 : vector<16x128xf32>
    %203 = arith.addf %199, %202 : vector<16x128xf32>
    %c6_93 = arith.constant 6 : index
    %c2_94 = arith.constant 2 : index
    %204 = memref.load %arg3[%c6_93, %c2_94] : memref<8x16xf32, #tpu.memory_space<smem>>
    %205 = vector.broadcast %204 : f32 to vector<16x128xf32>
    %206 = arith.mulf %93, %205 : vector<16x128xf32>
    %207 = arith.addf %203, %206 : vector<16x128xf32>
    %c7_95 = arith.constant 7 : index
    %c2_96 = arith.constant 2 : index
    %208 = memref.load %arg3[%c7_95, %c2_96] : memref<8x16xf32, #tpu.memory_space<smem>>
    %209 = vector.broadcast %208 : f32 to vector<16x128xf32>
    %210 = arith.mulf %105, %209 : vector<16x128xf32>
    %211 = arith.addf %207, %210 : vector<16x128xf32>
    %cst_97 = arith.constant 0.000000e+00 : f32
    %212 = vector.broadcast %cst_97 : f32 to vector<16x128xf32>
    %213 = arith.maximumf %211, %212 : vector<16x128xf32>
    %c0_98 = arith.constant 0 : index
    %c3_99 = arith.constant 3 : index
    %214 = memref.load %arg3[%c0_98, %c3_99] : memref<8x16xf32, #tpu.memory_space<smem>>
    %215 = vector.broadcast %214 : f32 to vector<16x128xf32>
    %216 = arith.mulf %21, %215 : vector<16x128xf32>
    %c3_100 = arith.constant 3 : index
    %217 = memref.load %arg4[%c3_100] : memref<16xf32, #tpu.memory_space<smem>>
    %218 = vector.broadcast %217 : f32 to vector<16x128xf32>
    %219 = arith.addf %216, %218 : vector<16x128xf32>
    %c1_101 = arith.constant 1 : index
    %c3_102 = arith.constant 3 : index
    %220 = memref.load %arg3[%c1_101, %c3_102] : memref<8x16xf32, #tpu.memory_space<smem>>
    %221 = vector.broadcast %220 : f32 to vector<16x128xf32>
    %222 = arith.mulf %33, %221 : vector<16x128xf32>
    %223 = arith.addf %219, %222 : vector<16x128xf32>
    %c2_103 = arith.constant 2 : index
    %c3_104 = arith.constant 3 : index
    %224 = memref.load %arg3[%c2_103, %c3_104] : memref<8x16xf32, #tpu.memory_space<smem>>
    %225 = vector.broadcast %224 : f32 to vector<16x128xf32>
    %226 = arith.mulf %45, %225 : vector<16x128xf32>
    %227 = arith.addf %223, %226 : vector<16x128xf32>
    %c3_105 = arith.constant 3 : index
    %c3_106 = arith.constant 3 : index
    %228 = memref.load %arg3[%c3_105, %c3_106] : memref<8x16xf32, #tpu.memory_space<smem>>
    %229 = vector.broadcast %228 : f32 to vector<16x128xf32>
    %230 = arith.mulf %57, %229 : vector<16x128xf32>
    %231 = arith.addf %227, %230 : vector<16x128xf32>
    %c4_107 = arith.constant 4 : index
    %c3_108 = arith.constant 3 : index
    %232 = memref.load %arg3[%c4_107, %c3_108] : memref<8x16xf32, #tpu.memory_space<smem>>
    %233 = vector.broadcast %232 : f32 to vector<16x128xf32>
    %234 = arith.mulf %69, %233 : vector<16x128xf32>
    %235 = arith.addf %231, %234 : vector<16x128xf32>
    %c5_109 = arith.constant 5 : index
    %c3_110 = arith.constant 3 : index
    %236 = memref.load %arg3[%c5_109, %c3_110] : memref<8x16xf32, #tpu.memory_space<smem>>
    %237 = vector.broadcast %236 : f32 to vector<16x128xf32>
    %238 = arith.mulf %81, %237 : vector<16x128xf32>
    %239 = arith.addf %235, %238 : vector<16x128xf32>
    %c6_111 = arith.constant 6 : index
    %c3_112 = arith.constant 3 : index
    %240 = memref.load %arg3[%c6_111, %c3_112] : memref<8x16xf32, #tpu.memory_space<smem>>
    %241 = vector.broadcast %240 : f32 to vector<16x128xf32>
    %242 = arith.mulf %93, %241 : vector<16x128xf32>
    %243 = arith.addf %239, %242 : vector<16x128xf32>
    %c7_113 = arith.constant 7 : index
    %c3_114 = arith.constant 3 : index
    %244 = memref.load %arg3[%c7_113, %c3_114] : memref<8x16xf32, #tpu.memory_space<smem>>
    %245 = vector.broadcast %244 : f32 to vector<16x128xf32>
    %246 = arith.mulf %105, %245 : vector<16x128xf32>
    %247 = arith.addf %243, %246 : vector<16x128xf32>
    %cst_115 = arith.constant 0.000000e+00 : f32
    %248 = vector.broadcast %cst_115 : f32 to vector<16x128xf32>
    %249 = arith.maximumf %247, %248 : vector<16x128xf32>
    %c0_116 = arith.constant 0 : index
    %c4_117 = arith.constant 4 : index
    %250 = memref.load %arg3[%c0_116, %c4_117] : memref<8x16xf32, #tpu.memory_space<smem>>
    %251 = vector.broadcast %250 : f32 to vector<16x128xf32>
    %252 = arith.mulf %21, %251 : vector<16x128xf32>
    %c4_118 = arith.constant 4 : index
    %253 = memref.load %arg4[%c4_118] : memref<16xf32, #tpu.memory_space<smem>>
    %254 = vector.broadcast %253 : f32 to vector<16x128xf32>
    %255 = arith.addf %252, %254 : vector<16x128xf32>
    %c1_119 = arith.constant 1 : index
    %c4_120 = arith.constant 4 : index
    %256 = memref.load %arg3[%c1_119, %c4_120] : memref<8x16xf32, #tpu.memory_space<smem>>
    %257 = vector.broadcast %256 : f32 to vector<16x128xf32>
    %258 = arith.mulf %33, %257 : vector<16x128xf32>
    %259 = arith.addf %255, %258 : vector<16x128xf32>
    %c2_121 = arith.constant 2 : index
    %c4_122 = arith.constant 4 : index
    %260 = memref.load %arg3[%c2_121, %c4_122] : memref<8x16xf32, #tpu.memory_space<smem>>
    %261 = vector.broadcast %260 : f32 to vector<16x128xf32>
    %262 = arith.mulf %45, %261 : vector<16x128xf32>
    %263 = arith.addf %259, %262 : vector<16x128xf32>
    %c3_123 = arith.constant 3 : index
    %c4_124 = arith.constant 4 : index
    %264 = memref.load %arg3[%c3_123, %c4_124] : memref<8x16xf32, #tpu.memory_space<smem>>
    %265 = vector.broadcast %264 : f32 to vector<16x128xf32>
    %266 = arith.mulf %57, %265 : vector<16x128xf32>
    %267 = arith.addf %263, %266 : vector<16x128xf32>
    %c4_125 = arith.constant 4 : index
    %c4_126 = arith.constant 4 : index
    %268 = memref.load %arg3[%c4_125, %c4_126] : memref<8x16xf32, #tpu.memory_space<smem>>
    %269 = vector.broadcast %268 : f32 to vector<16x128xf32>
    %270 = arith.mulf %69, %269 : vector<16x128xf32>
    %271 = arith.addf %267, %270 : vector<16x128xf32>
    %c5_127 = arith.constant 5 : index
    %c4_128 = arith.constant 4 : index
    %272 = memref.load %arg3[%c5_127, %c4_128] : memref<8x16xf32, #tpu.memory_space<smem>>
    %273 = vector.broadcast %272 : f32 to vector<16x128xf32>
    %274 = arith.mulf %81, %273 : vector<16x128xf32>
    %275 = arith.addf %271, %274 : vector<16x128xf32>
    %c6_129 = arith.constant 6 : index
    %c4_130 = arith.constant 4 : index
    %276 = memref.load %arg3[%c6_129, %c4_130] : memref<8x16xf32, #tpu.memory_space<smem>>
    %277 = vector.broadcast %276 : f32 to vector<16x128xf32>
    %278 = arith.mulf %93, %277 : vector<16x128xf32>
    %279 = arith.addf %275, %278 : vector<16x128xf32>
    %c7_131 = arith.constant 7 : index
    %c4_132 = arith.constant 4 : index
    %280 = memref.load %arg3[%c7_131, %c4_132] : memref<8x16xf32, #tpu.memory_space<smem>>
    %281 = vector.broadcast %280 : f32 to vector<16x128xf32>
    %282 = arith.mulf %105, %281 : vector<16x128xf32>
    %283 = arith.addf %279, %282 : vector<16x128xf32>
    %cst_133 = arith.constant 0.000000e+00 : f32
    %284 = vector.broadcast %cst_133 : f32 to vector<16x128xf32>
    %285 = arith.maximumf %283, %284 : vector<16x128xf32>
    %c0_134 = arith.constant 0 : index
    %c5_135 = arith.constant 5 : index
    %286 = memref.load %arg3[%c0_134, %c5_135] : memref<8x16xf32, #tpu.memory_space<smem>>
    %287 = vector.broadcast %286 : f32 to vector<16x128xf32>
    %288 = arith.mulf %21, %287 : vector<16x128xf32>
    %c5_136 = arith.constant 5 : index
    %289 = memref.load %arg4[%c5_136] : memref<16xf32, #tpu.memory_space<smem>>
    %290 = vector.broadcast %289 : f32 to vector<16x128xf32>
    %291 = arith.addf %288, %290 : vector<16x128xf32>
    %c1_137 = arith.constant 1 : index
    %c5_138 = arith.constant 5 : index
    %292 = memref.load %arg3[%c1_137, %c5_138] : memref<8x16xf32, #tpu.memory_space<smem>>
    %293 = vector.broadcast %292 : f32 to vector<16x128xf32>
    %294 = arith.mulf %33, %293 : vector<16x128xf32>
    %295 = arith.addf %291, %294 : vector<16x128xf32>
    %c2_139 = arith.constant 2 : index
    %c5_140 = arith.constant 5 : index
    %296 = memref.load %arg3[%c2_139, %c5_140] : memref<8x16xf32, #tpu.memory_space<smem>>
    %297 = vector.broadcast %296 : f32 to vector<16x128xf32>
    %298 = arith.mulf %45, %297 : vector<16x128xf32>
    %299 = arith.addf %295, %298 : vector<16x128xf32>
    %c3_141 = arith.constant 3 : index
    %c5_142 = arith.constant 5 : index
    %300 = memref.load %arg3[%c3_141, %c5_142] : memref<8x16xf32, #tpu.memory_space<smem>>
    %301 = vector.broadcast %300 : f32 to vector<16x128xf32>
    %302 = arith.mulf %57, %301 : vector<16x128xf32>
    %303 = arith.addf %299, %302 : vector<16x128xf32>
    %c4_143 = arith.constant 4 : index
    %c5_144 = arith.constant 5 : index
    %304 = memref.load %arg3[%c4_143, %c5_144] : memref<8x16xf32, #tpu.memory_space<smem>>
    %305 = vector.broadcast %304 : f32 to vector<16x128xf32>
    %306 = arith.mulf %69, %305 : vector<16x128xf32>
    %307 = arith.addf %303, %306 : vector<16x128xf32>
    %c5_145 = arith.constant 5 : index
    %c5_146 = arith.constant 5 : index
    %308 = memref.load %arg3[%c5_145, %c5_146] : memref<8x16xf32, #tpu.memory_space<smem>>
    %309 = vector.broadcast %308 : f32 to vector<16x128xf32>
    %310 = arith.mulf %81, %309 : vector<16x128xf32>
    %311 = arith.addf %307, %310 : vector<16x128xf32>
    %c6_147 = arith.constant 6 : index
    %c5_148 = arith.constant 5 : index
    %312 = memref.load %arg3[%c6_147, %c5_148] : memref<8x16xf32, #tpu.memory_space<smem>>
    %313 = vector.broadcast %312 : f32 to vector<16x128xf32>
    %314 = arith.mulf %93, %313 : vector<16x128xf32>
    %315 = arith.addf %311, %314 : vector<16x128xf32>
    %c7_149 = arith.constant 7 : index
    %c5_150 = arith.constant 5 : index
    %316 = memref.load %arg3[%c7_149, %c5_150] : memref<8x16xf32, #tpu.memory_space<smem>>
    %317 = vector.broadcast %316 : f32 to vector<16x128xf32>
    %318 = arith.mulf %105, %317 : vector<16x128xf32>
    %319 = arith.addf %315, %318 : vector<16x128xf32>
    %cst_151 = arith.constant 0.000000e+00 : f32
    %320 = vector.broadcast %cst_151 : f32 to vector<16x128xf32>
    %321 = arith.maximumf %319, %320 : vector<16x128xf32>
    %c0_152 = arith.constant 0 : index
    %c6_153 = arith.constant 6 : index
    %322 = memref.load %arg3[%c0_152, %c6_153] : memref<8x16xf32, #tpu.memory_space<smem>>
    %323 = vector.broadcast %322 : f32 to vector<16x128xf32>
    %324 = arith.mulf %21, %323 : vector<16x128xf32>
    %c6_154 = arith.constant 6 : index
    %325 = memref.load %arg4[%c6_154] : memref<16xf32, #tpu.memory_space<smem>>
    %326 = vector.broadcast %325 : f32 to vector<16x128xf32>
    %327 = arith.addf %324, %326 : vector<16x128xf32>
    %c1_155 = arith.constant 1 : index
    %c6_156 = arith.constant 6 : index
    %328 = memref.load %arg3[%c1_155, %c6_156] : memref<8x16xf32, #tpu.memory_space<smem>>
    %329 = vector.broadcast %328 : f32 to vector<16x128xf32>
    %330 = arith.mulf %33, %329 : vector<16x128xf32>
    %331 = arith.addf %327, %330 : vector<16x128xf32>
    %c2_157 = arith.constant 2 : index
    %c6_158 = arith.constant 6 : index
    %332 = memref.load %arg3[%c2_157, %c6_158] : memref<8x16xf32, #tpu.memory_space<smem>>
    %333 = vector.broadcast %332 : f32 to vector<16x128xf32>
    %334 = arith.mulf %45, %333 : vector<16x128xf32>
    %335 = arith.addf %331, %334 : vector<16x128xf32>
    %c3_159 = arith.constant 3 : index
    %c6_160 = arith.constant 6 : index
    %336 = memref.load %arg3[%c3_159, %c6_160] : memref<8x16xf32, #tpu.memory_space<smem>>
    %337 = vector.broadcast %336 : f32 to vector<16x128xf32>
    %338 = arith.mulf %57, %337 : vector<16x128xf32>
    %339 = arith.addf %335, %338 : vector<16x128xf32>
    %c4_161 = arith.constant 4 : index
    %c6_162 = arith.constant 6 : index
    %340 = memref.load %arg3[%c4_161, %c6_162] : memref<8x16xf32, #tpu.memory_space<smem>>
    %341 = vector.broadcast %340 : f32 to vector<16x128xf32>
    %342 = arith.mulf %69, %341 : vector<16x128xf32>
    %343 = arith.addf %339, %342 : vector<16x128xf32>
    %c5_163 = arith.constant 5 : index
    %c6_164 = arith.constant 6 : index
    %344 = memref.load %arg3[%c5_163, %c6_164] : memref<8x16xf32, #tpu.memory_space<smem>>
    %345 = vector.broadcast %344 : f32 to vector<16x128xf32>
    %346 = arith.mulf %81, %345 : vector<16x128xf32>
    %347 = arith.addf %343, %346 : vector<16x128xf32>
    %c6_165 = arith.constant 6 : index
    %c6_166 = arith.constant 6 : index
    %348 = memref.load %arg3[%c6_165, %c6_166] : memref<8x16xf32, #tpu.memory_space<smem>>
    %349 = vector.broadcast %348 : f32 to vector<16x128xf32>
    %350 = arith.mulf %93, %349 : vector<16x128xf32>
    %351 = arith.addf %347, %350 : vector<16x128xf32>
    %c7_167 = arith.constant 7 : index
    %c6_168 = arith.constant 6 : index
    %352 = memref.load %arg3[%c7_167, %c6_168] : memref<8x16xf32, #tpu.memory_space<smem>>
    %353 = vector.broadcast %352 : f32 to vector<16x128xf32>
    %354 = arith.mulf %105, %353 : vector<16x128xf32>
    %355 = arith.addf %351, %354 : vector<16x128xf32>
    %cst_169 = arith.constant 0.000000e+00 : f32
    %356 = vector.broadcast %cst_169 : f32 to vector<16x128xf32>
    %357 = arith.maximumf %355, %356 : vector<16x128xf32>
    %c0_170 = arith.constant 0 : index
    %c7_171 = arith.constant 7 : index
    %358 = memref.load %arg3[%c0_170, %c7_171] : memref<8x16xf32, #tpu.memory_space<smem>>
    %359 = vector.broadcast %358 : f32 to vector<16x128xf32>
    %360 = arith.mulf %21, %359 : vector<16x128xf32>
    %c7_172 = arith.constant 7 : index
    %361 = memref.load %arg4[%c7_172] : memref<16xf32, #tpu.memory_space<smem>>
    %362 = vector.broadcast %361 : f32 to vector<16x128xf32>
    %363 = arith.addf %360, %362 : vector<16x128xf32>
    %c1_173 = arith.constant 1 : index
    %c7_174 = arith.constant 7 : index
    %364 = memref.load %arg3[%c1_173, %c7_174] : memref<8x16xf32, #tpu.memory_space<smem>>
    %365 = vector.broadcast %364 : f32 to vector<16x128xf32>
    %366 = arith.mulf %33, %365 : vector<16x128xf32>
    %367 = arith.addf %363, %366 : vector<16x128xf32>
    %c2_175 = arith.constant 2 : index
    %c7_176 = arith.constant 7 : index
    %368 = memref.load %arg3[%c2_175, %c7_176] : memref<8x16xf32, #tpu.memory_space<smem>>
    %369 = vector.broadcast %368 : f32 to vector<16x128xf32>
    %370 = arith.mulf %45, %369 : vector<16x128xf32>
    %371 = arith.addf %367, %370 : vector<16x128xf32>
    %c3_177 = arith.constant 3 : index
    %c7_178 = arith.constant 7 : index
    %372 = memref.load %arg3[%c3_177, %c7_178] : memref<8x16xf32, #tpu.memory_space<smem>>
    %373 = vector.broadcast %372 : f32 to vector<16x128xf32>
    %374 = arith.mulf %57, %373 : vector<16x128xf32>
    %375 = arith.addf %371, %374 : vector<16x128xf32>
    %c4_179 = arith.constant 4 : index
    %c7_180 = arith.constant 7 : index
    %376 = memref.load %arg3[%c4_179, %c7_180] : memref<8x16xf32, #tpu.memory_space<smem>>
    %377 = vector.broadcast %376 : f32 to vector<16x128xf32>
    %378 = arith.mulf %69, %377 : vector<16x128xf32>
    %379 = arith.addf %375, %378 : vector<16x128xf32>
    %c5_181 = arith.constant 5 : index
    %c7_182 = arith.constant 7 : index
    %380 = memref.load %arg3[%c5_181, %c7_182] : memref<8x16xf32, #tpu.memory_space<smem>>
    %381 = vector.broadcast %380 : f32 to vector<16x128xf32>
    %382 = arith.mulf %81, %381 : vector<16x128xf32>
    %383 = arith.addf %379, %382 : vector<16x128xf32>
    %c6_183 = arith.constant 6 : index
    %c7_184 = arith.constant 7 : index
    %384 = memref.load %arg3[%c6_183, %c7_184] : memref<8x16xf32, #tpu.memory_space<smem>>
    %385 = vector.broadcast %384 : f32 to vector<16x128xf32>
    %386 = arith.mulf %93, %385 : vector<16x128xf32>
    %387 = arith.addf %383, %386 : vector<16x128xf32>
    %c7_185 = arith.constant 7 : index
    %c7_186 = arith.constant 7 : index
    %388 = memref.load %arg3[%c7_185, %c7_186] : memref<8x16xf32, #tpu.memory_space<smem>>
    %389 = vector.broadcast %388 : f32 to vector<16x128xf32>
    %390 = arith.mulf %105, %389 : vector<16x128xf32>
    %391 = arith.addf %387, %390 : vector<16x128xf32>
    %cst_187 = arith.constant 0.000000e+00 : f32
    %392 = vector.broadcast %cst_187 : f32 to vector<16x128xf32>
    %393 = arith.maximumf %391, %392 : vector<16x128xf32>
    %c0_188 = arith.constant 0 : index
    %c8 = arith.constant 8 : index
    %394 = memref.load %arg3[%c0_188, %c8] : memref<8x16xf32, #tpu.memory_space<smem>>
    %395 = vector.broadcast %394 : f32 to vector<16x128xf32>
    %396 = arith.mulf %21, %395 : vector<16x128xf32>
    %c8_189 = arith.constant 8 : index
    %397 = memref.load %arg4[%c8_189] : memref<16xf32, #tpu.memory_space<smem>>
    %398 = vector.broadcast %397 : f32 to vector<16x128xf32>
    %399 = arith.addf %396, %398 : vector<16x128xf32>
    %c1_190 = arith.constant 1 : index
    %c8_191 = arith.constant 8 : index
    %400 = memref.load %arg3[%c1_190, %c8_191] : memref<8x16xf32, #tpu.memory_space<smem>>
    %401 = vector.broadcast %400 : f32 to vector<16x128xf32>
    %402 = arith.mulf %33, %401 : vector<16x128xf32>
    %403 = arith.addf %399, %402 : vector<16x128xf32>
    %c2_192 = arith.constant 2 : index
    %c8_193 = arith.constant 8 : index
    %404 = memref.load %arg3[%c2_192, %c8_193] : memref<8x16xf32, #tpu.memory_space<smem>>
    %405 = vector.broadcast %404 : f32 to vector<16x128xf32>
    %406 = arith.mulf %45, %405 : vector<16x128xf32>
    %407 = arith.addf %403, %406 : vector<16x128xf32>
    %c3_194 = arith.constant 3 : index
    %c8_195 = arith.constant 8 : index
    %408 = memref.load %arg3[%c3_194, %c8_195] : memref<8x16xf32, #tpu.memory_space<smem>>
    %409 = vector.broadcast %408 : f32 to vector<16x128xf32>
    %410 = arith.mulf %57, %409 : vector<16x128xf32>
    %411 = arith.addf %407, %410 : vector<16x128xf32>
    %c4_196 = arith.constant 4 : index
    %c8_197 = arith.constant 8 : index
    %412 = memref.load %arg3[%c4_196, %c8_197] : memref<8x16xf32, #tpu.memory_space<smem>>
    %413 = vector.broadcast %412 : f32 to vector<16x128xf32>
    %414 = arith.mulf %69, %413 : vector<16x128xf32>
    %415 = arith.addf %411, %414 : vector<16x128xf32>
    %c5_198 = arith.constant 5 : index
    %c8_199 = arith.constant 8 : index
    %416 = memref.load %arg3[%c5_198, %c8_199] : memref<8x16xf32, #tpu.memory_space<smem>>
    %417 = vector.broadcast %416 : f32 to vector<16x128xf32>
    %418 = arith.mulf %81, %417 : vector<16x128xf32>
    %419 = arith.addf %415, %418 : vector<16x128xf32>
    %c6_200 = arith.constant 6 : index
    %c8_201 = arith.constant 8 : index
    %420 = memref.load %arg3[%c6_200, %c8_201] : memref<8x16xf32, #tpu.memory_space<smem>>
    %421 = vector.broadcast %420 : f32 to vector<16x128xf32>
    %422 = arith.mulf %93, %421 : vector<16x128xf32>
    %423 = arith.addf %419, %422 : vector<16x128xf32>
    %c7_202 = arith.constant 7 : index
    %c8_203 = arith.constant 8 : index
    %424 = memref.load %arg3[%c7_202, %c8_203] : memref<8x16xf32, #tpu.memory_space<smem>>
    %425 = vector.broadcast %424 : f32 to vector<16x128xf32>
    %426 = arith.mulf %105, %425 : vector<16x128xf32>
    %427 = arith.addf %423, %426 : vector<16x128xf32>
    %cst_204 = arith.constant 0.000000e+00 : f32
    %428 = vector.broadcast %cst_204 : f32 to vector<16x128xf32>
    %429 = arith.maximumf %427, %428 : vector<16x128xf32>
    %c0_205 = arith.constant 0 : index
    %c9 = arith.constant 9 : index
    %430 = memref.load %arg3[%c0_205, %c9] : memref<8x16xf32, #tpu.memory_space<smem>>
    %431 = vector.broadcast %430 : f32 to vector<16x128xf32>
    %432 = arith.mulf %21, %431 : vector<16x128xf32>
    %c9_206 = arith.constant 9 : index
    %433 = memref.load %arg4[%c9_206] : memref<16xf32, #tpu.memory_space<smem>>
    %434 = vector.broadcast %433 : f32 to vector<16x128xf32>
    %435 = arith.addf %432, %434 : vector<16x128xf32>
    %c1_207 = arith.constant 1 : index
    %c9_208 = arith.constant 9 : index
    %436 = memref.load %arg3[%c1_207, %c9_208] : memref<8x16xf32, #tpu.memory_space<smem>>
    %437 = vector.broadcast %436 : f32 to vector<16x128xf32>
    %438 = arith.mulf %33, %437 : vector<16x128xf32>
    %439 = arith.addf %435, %438 : vector<16x128xf32>
    %c2_209 = arith.constant 2 : index
    %c9_210 = arith.constant 9 : index
    %440 = memref.load %arg3[%c2_209, %c9_210] : memref<8x16xf32, #tpu.memory_space<smem>>
    %441 = vector.broadcast %440 : f32 to vector<16x128xf32>
    %442 = arith.mulf %45, %441 : vector<16x128xf32>
    %443 = arith.addf %439, %442 : vector<16x128xf32>
    %c3_211 = arith.constant 3 : index
    %c9_212 = arith.constant 9 : index
    %444 = memref.load %arg3[%c3_211, %c9_212] : memref<8x16xf32, #tpu.memory_space<smem>>
    %445 = vector.broadcast %444 : f32 to vector<16x128xf32>
    %446 = arith.mulf %57, %445 : vector<16x128xf32>
    %447 = arith.addf %443, %446 : vector<16x128xf32>
    %c4_213 = arith.constant 4 : index
    %c9_214 = arith.constant 9 : index
    %448 = memref.load %arg3[%c4_213, %c9_214] : memref<8x16xf32, #tpu.memory_space<smem>>
    %449 = vector.broadcast %448 : f32 to vector<16x128xf32>
    %450 = arith.mulf %69, %449 : vector<16x128xf32>
    %451 = arith.addf %447, %450 : vector<16x128xf32>
    %c5_215 = arith.constant 5 : index
    %c9_216 = arith.constant 9 : index
    %452 = memref.load %arg3[%c5_215, %c9_216] : memref<8x16xf32, #tpu.memory_space<smem>>
    %453 = vector.broadcast %452 : f32 to vector<16x128xf32>
    %454 = arith.mulf %81, %453 : vector<16x128xf32>
    %455 = arith.addf %451, %454 : vector<16x128xf32>
    %c6_217 = arith.constant 6 : index
    %c9_218 = arith.constant 9 : index
    %456 = memref.load %arg3[%c6_217, %c9_218] : memref<8x16xf32, #tpu.memory_space<smem>>
    %457 = vector.broadcast %456 : f32 to vector<16x128xf32>
    %458 = arith.mulf %93, %457 : vector<16x128xf32>
    %459 = arith.addf %455, %458 : vector<16x128xf32>
    %c7_219 = arith.constant 7 : index
    %c9_220 = arith.constant 9 : index
    %460 = memref.load %arg3[%c7_219, %c9_220] : memref<8x16xf32, #tpu.memory_space<smem>>
    %461 = vector.broadcast %460 : f32 to vector<16x128xf32>
    %462 = arith.mulf %105, %461 : vector<16x128xf32>
    %463 = arith.addf %459, %462 : vector<16x128xf32>
    %cst_221 = arith.constant 0.000000e+00 : f32
    %464 = vector.broadcast %cst_221 : f32 to vector<16x128xf32>
    %465 = arith.maximumf %463, %464 : vector<16x128xf32>
    %c0_222 = arith.constant 0 : index
    %c10 = arith.constant 10 : index
    %466 = memref.load %arg3[%c0_222, %c10] : memref<8x16xf32, #tpu.memory_space<smem>>
    %467 = vector.broadcast %466 : f32 to vector<16x128xf32>
    %468 = arith.mulf %21, %467 : vector<16x128xf32>
    %c10_223 = arith.constant 10 : index
    %469 = memref.load %arg4[%c10_223] : memref<16xf32, #tpu.memory_space<smem>>
    %470 = vector.broadcast %469 : f32 to vector<16x128xf32>
    %471 = arith.addf %468, %470 : vector<16x128xf32>
    %c1_224 = arith.constant 1 : index
    %c10_225 = arith.constant 10 : index
    %472 = memref.load %arg3[%c1_224, %c10_225] : memref<8x16xf32, #tpu.memory_space<smem>>
    %473 = vector.broadcast %472 : f32 to vector<16x128xf32>
    %474 = arith.mulf %33, %473 : vector<16x128xf32>
    %475 = arith.addf %471, %474 : vector<16x128xf32>
    %c2_226 = arith.constant 2 : index
    %c10_227 = arith.constant 10 : index
    %476 = memref.load %arg3[%c2_226, %c10_227] : memref<8x16xf32, #tpu.memory_space<smem>>
    %477 = vector.broadcast %476 : f32 to vector<16x128xf32>
    %478 = arith.mulf %45, %477 : vector<16x128xf32>
    %479 = arith.addf %475, %478 : vector<16x128xf32>
    %c3_228 = arith.constant 3 : index
    %c10_229 = arith.constant 10 : index
    %480 = memref.load %arg3[%c3_228, %c10_229] : memref<8x16xf32, #tpu.memory_space<smem>>
    %481 = vector.broadcast %480 : f32 to vector<16x128xf32>
    %482 = arith.mulf %57, %481 : vector<16x128xf32>
    %483 = arith.addf %479, %482 : vector<16x128xf32>
    %c4_230 = arith.constant 4 : index
    %c10_231 = arith.constant 10 : index
    %484 = memref.load %arg3[%c4_230, %c10_231] : memref<8x16xf32, #tpu.memory_space<smem>>
    %485 = vector.broadcast %484 : f32 to vector<16x128xf32>
    %486 = arith.mulf %69, %485 : vector<16x128xf32>
    %487 = arith.addf %483, %486 : vector<16x128xf32>
    %c5_232 = arith.constant 5 : index
    %c10_233 = arith.constant 10 : index
    %488 = memref.load %arg3[%c5_232, %c10_233] : memref<8x16xf32, #tpu.memory_space<smem>>
    %489 = vector.broadcast %488 : f32 to vector<16x128xf32>
    %490 = arith.mulf %81, %489 : vector<16x128xf32>
    %491 = arith.addf %487, %490 : vector<16x128xf32>
    %c6_234 = arith.constant 6 : index
    %c10_235 = arith.constant 10 : index
    %492 = memref.load %arg3[%c6_234, %c10_235] : memref<8x16xf32, #tpu.memory_space<smem>>
    %493 = vector.broadcast %492 : f32 to vector<16x128xf32>
    %494 = arith.mulf %93, %493 : vector<16x128xf32>
    %495 = arith.addf %491, %494 : vector<16x128xf32>
    %c7_236 = arith.constant 7 : index
    %c10_237 = arith.constant 10 : index
    %496 = memref.load %arg3[%c7_236, %c10_237] : memref<8x16xf32, #tpu.memory_space<smem>>
    %497 = vector.broadcast %496 : f32 to vector<16x128xf32>
    %498 = arith.mulf %105, %497 : vector<16x128xf32>
    %499 = arith.addf %495, %498 : vector<16x128xf32>
    %cst_238 = arith.constant 0.000000e+00 : f32
    %500 = vector.broadcast %cst_238 : f32 to vector<16x128xf32>
    %501 = arith.maximumf %499, %500 : vector<16x128xf32>
    %c0_239 = arith.constant 0 : index
    %c11 = arith.constant 11 : index
    %502 = memref.load %arg3[%c0_239, %c11] : memref<8x16xf32, #tpu.memory_space<smem>>
    %503 = vector.broadcast %502 : f32 to vector<16x128xf32>
    %504 = arith.mulf %21, %503 : vector<16x128xf32>
    %c11_240 = arith.constant 11 : index
    %505 = memref.load %arg4[%c11_240] : memref<16xf32, #tpu.memory_space<smem>>
    %506 = vector.broadcast %505 : f32 to vector<16x128xf32>
    %507 = arith.addf %504, %506 : vector<16x128xf32>
    %c1_241 = arith.constant 1 : index
    %c11_242 = arith.constant 11 : index
    %508 = memref.load %arg3[%c1_241, %c11_242] : memref<8x16xf32, #tpu.memory_space<smem>>
    %509 = vector.broadcast %508 : f32 to vector<16x128xf32>
    %510 = arith.mulf %33, %509 : vector<16x128xf32>
    %511 = arith.addf %507, %510 : vector<16x128xf32>
    %c2_243 = arith.constant 2 : index
    %c11_244 = arith.constant 11 : index
    %512 = memref.load %arg3[%c2_243, %c11_244] : memref<8x16xf32, #tpu.memory_space<smem>>
    %513 = vector.broadcast %512 : f32 to vector<16x128xf32>
    %514 = arith.mulf %45, %513 : vector<16x128xf32>
    %515 = arith.addf %511, %514 : vector<16x128xf32>
    %c3_245 = arith.constant 3 : index
    %c11_246 = arith.constant 11 : index
    %516 = memref.load %arg3[%c3_245, %c11_246] : memref<8x16xf32, #tpu.memory_space<smem>>
    %517 = vector.broadcast %516 : f32 to vector<16x128xf32>
    %518 = arith.mulf %57, %517 : vector<16x128xf32>
    %519 = arith.addf %515, %518 : vector<16x128xf32>
    %c4_247 = arith.constant 4 : index
    %c11_248 = arith.constant 11 : index
    %520 = memref.load %arg3[%c4_247, %c11_248] : memref<8x16xf32, #tpu.memory_space<smem>>
    %521 = vector.broadcast %520 : f32 to vector<16x128xf32>
    %522 = arith.mulf %69, %521 : vector<16x128xf32>
    %523 = arith.addf %519, %522 : vector<16x128xf32>
    %c5_249 = arith.constant 5 : index
    %c11_250 = arith.constant 11 : index
    %524 = memref.load %arg3[%c5_249, %c11_250] : memref<8x16xf32, #tpu.memory_space<smem>>
    %525 = vector.broadcast %524 : f32 to vector<16x128xf32>
    %526 = arith.mulf %81, %525 : vector<16x128xf32>
    %527 = arith.addf %523, %526 : vector<16x128xf32>
    %c6_251 = arith.constant 6 : index
    %c11_252 = arith.constant 11 : index
    %528 = memref.load %arg3[%c6_251, %c11_252] : memref<8x16xf32, #tpu.memory_space<smem>>
    %529 = vector.broadcast %528 : f32 to vector<16x128xf32>
    %530 = arith.mulf %93, %529 : vector<16x128xf32>
    %531 = arith.addf %527, %530 : vector<16x128xf32>
    %c7_253 = arith.constant 7 : index
    %c11_254 = arith.constant 11 : index
    %532 = memref.load %arg3[%c7_253, %c11_254] : memref<8x16xf32, #tpu.memory_space<smem>>
    %533 = vector.broadcast %532 : f32 to vector<16x128xf32>
    %534 = arith.mulf %105, %533 : vector<16x128xf32>
    %535 = arith.addf %531, %534 : vector<16x128xf32>
    %cst_255 = arith.constant 0.000000e+00 : f32
    %536 = vector.broadcast %cst_255 : f32 to vector<16x128xf32>
    %537 = arith.maximumf %535, %536 : vector<16x128xf32>
    %c0_256 = arith.constant 0 : index
    %c12 = arith.constant 12 : index
    %538 = memref.load %arg3[%c0_256, %c12] : memref<8x16xf32, #tpu.memory_space<smem>>
    %539 = vector.broadcast %538 : f32 to vector<16x128xf32>
    %540 = arith.mulf %21, %539 : vector<16x128xf32>
    %c12_257 = arith.constant 12 : index
    %541 = memref.load %arg4[%c12_257] : memref<16xf32, #tpu.memory_space<smem>>
    %542 = vector.broadcast %541 : f32 to vector<16x128xf32>
    %543 = arith.addf %540, %542 : vector<16x128xf32>
    %c1_258 = arith.constant 1 : index
    %c12_259 = arith.constant 12 : index
    %544 = memref.load %arg3[%c1_258, %c12_259] : memref<8x16xf32, #tpu.memory_space<smem>>
    %545 = vector.broadcast %544 : f32 to vector<16x128xf32>
    %546 = arith.mulf %33, %545 : vector<16x128xf32>
    %547 = arith.addf %543, %546 : vector<16x128xf32>
    %c2_260 = arith.constant 2 : index
    %c12_261 = arith.constant 12 : index
    %548 = memref.load %arg3[%c2_260, %c12_261] : memref<8x16xf32, #tpu.memory_space<smem>>
    %549 = vector.broadcast %548 : f32 to vector<16x128xf32>
    %550 = arith.mulf %45, %549 : vector<16x128xf32>
    %551 = arith.addf %547, %550 : vector<16x128xf32>
    %c3_262 = arith.constant 3 : index
    %c12_263 = arith.constant 12 : index
    %552 = memref.load %arg3[%c3_262, %c12_263] : memref<8x16xf32, #tpu.memory_space<smem>>
    %553 = vector.broadcast %552 : f32 to vector<16x128xf32>
    %554 = arith.mulf %57, %553 : vector<16x128xf32>
    %555 = arith.addf %551, %554 : vector<16x128xf32>
    %c4_264 = arith.constant 4 : index
    %c12_265 = arith.constant 12 : index
    %556 = memref.load %arg3[%c4_264, %c12_265] : memref<8x16xf32, #tpu.memory_space<smem>>
    %557 = vector.broadcast %556 : f32 to vector<16x128xf32>
    %558 = arith.mulf %69, %557 : vector<16x128xf32>
    %559 = arith.addf %555, %558 : vector<16x128xf32>
    %c5_266 = arith.constant 5 : index
    %c12_267 = arith.constant 12 : index
    %560 = memref.load %arg3[%c5_266, %c12_267] : memref<8x16xf32, #tpu.memory_space<smem>>
    %561 = vector.broadcast %560 : f32 to vector<16x128xf32>
    %562 = arith.mulf %81, %561 : vector<16x128xf32>
    %563 = arith.addf %559, %562 : vector<16x128xf32>
    %c6_268 = arith.constant 6 : index
    %c12_269 = arith.constant 12 : index
    %564 = memref.load %arg3[%c6_268, %c12_269] : memref<8x16xf32, #tpu.memory_space<smem>>
    %565 = vector.broadcast %564 : f32 to vector<16x128xf32>
    %566 = arith.mulf %93, %565 : vector<16x128xf32>
    %567 = arith.addf %563, %566 : vector<16x128xf32>
    %c7_270 = arith.constant 7 : index
    %c12_271 = arith.constant 12 : index
    %568 = memref.load %arg3[%c7_270, %c12_271] : memref<8x16xf32, #tpu.memory_space<smem>>
    %569 = vector.broadcast %568 : f32 to vector<16x128xf32>
    %570 = arith.mulf %105, %569 : vector<16x128xf32>
    %571 = arith.addf %567, %570 : vector<16x128xf32>
    %cst_272 = arith.constant 0.000000e+00 : f32
    %572 = vector.broadcast %cst_272 : f32 to vector<16x128xf32>
    %573 = arith.maximumf %571, %572 : vector<16x128xf32>
    %c0_273 = arith.constant 0 : index
    %c13 = arith.constant 13 : index
    %574 = memref.load %arg3[%c0_273, %c13] : memref<8x16xf32, #tpu.memory_space<smem>>
    %575 = vector.broadcast %574 : f32 to vector<16x128xf32>
    %576 = arith.mulf %21, %575 : vector<16x128xf32>
    %c13_274 = arith.constant 13 : index
    %577 = memref.load %arg4[%c13_274] : memref<16xf32, #tpu.memory_space<smem>>
    %578 = vector.broadcast %577 : f32 to vector<16x128xf32>
    %579 = arith.addf %576, %578 : vector<16x128xf32>
    %c1_275 = arith.constant 1 : index
    %c13_276 = arith.constant 13 : index
    %580 = memref.load %arg3[%c1_275, %c13_276] : memref<8x16xf32, #tpu.memory_space<smem>>
    %581 = vector.broadcast %580 : f32 to vector<16x128xf32>
    %582 = arith.mulf %33, %581 : vector<16x128xf32>
    %583 = arith.addf %579, %582 : vector<16x128xf32>
    %c2_277 = arith.constant 2 : index
    %c13_278 = arith.constant 13 : index
    %584 = memref.load %arg3[%c2_277, %c13_278] : memref<8x16xf32, #tpu.memory_space<smem>>
    %585 = vector.broadcast %584 : f32 to vector<16x128xf32>
    %586 = arith.mulf %45, %585 : vector<16x128xf32>
    %587 = arith.addf %583, %586 : vector<16x128xf32>
    %c3_279 = arith.constant 3 : index
    %c13_280 = arith.constant 13 : index
    %588 = memref.load %arg3[%c3_279, %c13_280] : memref<8x16xf32, #tpu.memory_space<smem>>
    %589 = vector.broadcast %588 : f32 to vector<16x128xf32>
    %590 = arith.mulf %57, %589 : vector<16x128xf32>
    %591 = arith.addf %587, %590 : vector<16x128xf32>
    %c4_281 = arith.constant 4 : index
    %c13_282 = arith.constant 13 : index
    %592 = memref.load %arg3[%c4_281, %c13_282] : memref<8x16xf32, #tpu.memory_space<smem>>
    %593 = vector.broadcast %592 : f32 to vector<16x128xf32>
    %594 = arith.mulf %69, %593 : vector<16x128xf32>
    %595 = arith.addf %591, %594 : vector<16x128xf32>
    %c5_283 = arith.constant 5 : index
    %c13_284 = arith.constant 13 : index
    %596 = memref.load %arg3[%c5_283, %c13_284] : memref<8x16xf32, #tpu.memory_space<smem>>
    %597 = vector.broadcast %596 : f32 to vector<16x128xf32>
    %598 = arith.mulf %81, %597 : vector<16x128xf32>
    %599 = arith.addf %595, %598 : vector<16x128xf32>
    %c6_285 = arith.constant 6 : index
    %c13_286 = arith.constant 13 : index
    %600 = memref.load %arg3[%c6_285, %c13_286] : memref<8x16xf32, #tpu.memory_space<smem>>
    %601 = vector.broadcast %600 : f32 to vector<16x128xf32>
    %602 = arith.mulf %93, %601 : vector<16x128xf32>
    %603 = arith.addf %599, %602 : vector<16x128xf32>
    %c7_287 = arith.constant 7 : index
    %c13_288 = arith.constant 13 : index
    %604 = memref.load %arg3[%c7_287, %c13_288] : memref<8x16xf32, #tpu.memory_space<smem>>
    %605 = vector.broadcast %604 : f32 to vector<16x128xf32>
    %606 = arith.mulf %105, %605 : vector<16x128xf32>
    %607 = arith.addf %603, %606 : vector<16x128xf32>
    %cst_289 = arith.constant 0.000000e+00 : f32
    %608 = vector.broadcast %cst_289 : f32 to vector<16x128xf32>
    %609 = arith.maximumf %607, %608 : vector<16x128xf32>
    %c0_290 = arith.constant 0 : index
    %c14 = arith.constant 14 : index
    %610 = memref.load %arg3[%c0_290, %c14] : memref<8x16xf32, #tpu.memory_space<smem>>
    %611 = vector.broadcast %610 : f32 to vector<16x128xf32>
    %612 = arith.mulf %21, %611 : vector<16x128xf32>
    %c14_291 = arith.constant 14 : index
    %613 = memref.load %arg4[%c14_291] : memref<16xf32, #tpu.memory_space<smem>>
    %614 = vector.broadcast %613 : f32 to vector<16x128xf32>
    %615 = arith.addf %612, %614 : vector<16x128xf32>
    %c1_292 = arith.constant 1 : index
    %c14_293 = arith.constant 14 : index
    %616 = memref.load %arg3[%c1_292, %c14_293] : memref<8x16xf32, #tpu.memory_space<smem>>
    %617 = vector.broadcast %616 : f32 to vector<16x128xf32>
    %618 = arith.mulf %33, %617 : vector<16x128xf32>
    %619 = arith.addf %615, %618 : vector<16x128xf32>
    %c2_294 = arith.constant 2 : index
    %c14_295 = arith.constant 14 : index
    %620 = memref.load %arg3[%c2_294, %c14_295] : memref<8x16xf32, #tpu.memory_space<smem>>
    %621 = vector.broadcast %620 : f32 to vector<16x128xf32>
    %622 = arith.mulf %45, %621 : vector<16x128xf32>
    %623 = arith.addf %619, %622 : vector<16x128xf32>
    %c3_296 = arith.constant 3 : index
    %c14_297 = arith.constant 14 : index
    %624 = memref.load %arg3[%c3_296, %c14_297] : memref<8x16xf32, #tpu.memory_space<smem>>
    %625 = vector.broadcast %624 : f32 to vector<16x128xf32>
    %626 = arith.mulf %57, %625 : vector<16x128xf32>
    %627 = arith.addf %623, %626 : vector<16x128xf32>
    %c4_298 = arith.constant 4 : index
    %c14_299 = arith.constant 14 : index
    %628 = memref.load %arg3[%c4_298, %c14_299] : memref<8x16xf32, #tpu.memory_space<smem>>
    %629 = vector.broadcast %628 : f32 to vector<16x128xf32>
    %630 = arith.mulf %69, %629 : vector<16x128xf32>
    %631 = arith.addf %627, %630 : vector<16x128xf32>
    %c5_300 = arith.constant 5 : index
    %c14_301 = arith.constant 14 : index
    %632 = memref.load %arg3[%c5_300, %c14_301] : memref<8x16xf32, #tpu.memory_space<smem>>
    %633 = vector.broadcast %632 : f32 to vector<16x128xf32>
    %634 = arith.mulf %81, %633 : vector<16x128xf32>
    %635 = arith.addf %631, %634 : vector<16x128xf32>
    %c6_302 = arith.constant 6 : index
    %c14_303 = arith.constant 14 : index
    %636 = memref.load %arg3[%c6_302, %c14_303] : memref<8x16xf32, #tpu.memory_space<smem>>
    %637 = vector.broadcast %636 : f32 to vector<16x128xf32>
    %638 = arith.mulf %93, %637 : vector<16x128xf32>
    %639 = arith.addf %635, %638 : vector<16x128xf32>
    %c7_304 = arith.constant 7 : index
    %c14_305 = arith.constant 14 : index
    %640 = memref.load %arg3[%c7_304, %c14_305] : memref<8x16xf32, #tpu.memory_space<smem>>
    %641 = vector.broadcast %640 : f32 to vector<16x128xf32>
    %642 = arith.mulf %105, %641 : vector<16x128xf32>
    %643 = arith.addf %639, %642 : vector<16x128xf32>
    %cst_306 = arith.constant 0.000000e+00 : f32
    %644 = vector.broadcast %cst_306 : f32 to vector<16x128xf32>
    %645 = arith.maximumf %643, %644 : vector<16x128xf32>
    %c0_307 = arith.constant 0 : index
    %c15 = arith.constant 15 : index
    %646 = memref.load %arg3[%c0_307, %c15] : memref<8x16xf32, #tpu.memory_space<smem>>
    %647 = vector.broadcast %646 : f32 to vector<16x128xf32>
    %648 = arith.mulf %21, %647 : vector<16x128xf32>
    %c15_308 = arith.constant 15 : index
    %649 = memref.load %arg4[%c15_308] : memref<16xf32, #tpu.memory_space<smem>>
    %650 = vector.broadcast %649 : f32 to vector<16x128xf32>
    %651 = arith.addf %648, %650 : vector<16x128xf32>
    %c1_309 = arith.constant 1 : index
    %c15_310 = arith.constant 15 : index
    %652 = memref.load %arg3[%c1_309, %c15_310] : memref<8x16xf32, #tpu.memory_space<smem>>
    %653 = vector.broadcast %652 : f32 to vector<16x128xf32>
    %654 = arith.mulf %33, %653 : vector<16x128xf32>
    %655 = arith.addf %651, %654 : vector<16x128xf32>
    %c2_311 = arith.constant 2 : index
    %c15_312 = arith.constant 15 : index
    %656 = memref.load %arg3[%c2_311, %c15_312] : memref<8x16xf32, #tpu.memory_space<smem>>
    %657 = vector.broadcast %656 : f32 to vector<16x128xf32>
    %658 = arith.mulf %45, %657 : vector<16x128xf32>
    %659 = arith.addf %655, %658 : vector<16x128xf32>
    %c3_313 = arith.constant 3 : index
    %c15_314 = arith.constant 15 : index
    %660 = memref.load %arg3[%c3_313, %c15_314] : memref<8x16xf32, #tpu.memory_space<smem>>
    %661 = vector.broadcast %660 : f32 to vector<16x128xf32>
    %662 = arith.mulf %57, %661 : vector<16x128xf32>
    %663 = arith.addf %659, %662 : vector<16x128xf32>
    %c4_315 = arith.constant 4 : index
    %c15_316 = arith.constant 15 : index
    %664 = memref.load %arg3[%c4_315, %c15_316] : memref<8x16xf32, #tpu.memory_space<smem>>
    %665 = vector.broadcast %664 : f32 to vector<16x128xf32>
    %666 = arith.mulf %69, %665 : vector<16x128xf32>
    %667 = arith.addf %663, %666 : vector<16x128xf32>
    %c5_317 = arith.constant 5 : index
    %c15_318 = arith.constant 15 : index
    %668 = memref.load %arg3[%c5_317, %c15_318] : memref<8x16xf32, #tpu.memory_space<smem>>
    %669 = vector.broadcast %668 : f32 to vector<16x128xf32>
    %670 = arith.mulf %81, %669 : vector<16x128xf32>
    %671 = arith.addf %667, %670 : vector<16x128xf32>
    %c6_319 = arith.constant 6 : index
    %c15_320 = arith.constant 15 : index
    %672 = memref.load %arg3[%c6_319, %c15_320] : memref<8x16xf32, #tpu.memory_space<smem>>
    %673 = vector.broadcast %672 : f32 to vector<16x128xf32>
    %674 = arith.mulf %93, %673 : vector<16x128xf32>
    %675 = arith.addf %671, %674 : vector<16x128xf32>
    %c7_321 = arith.constant 7 : index
    %c15_322 = arith.constant 15 : index
    %676 = memref.load %arg3[%c7_321, %c15_322] : memref<8x16xf32, #tpu.memory_space<smem>>
    %677 = vector.broadcast %676 : f32 to vector<16x128xf32>
    %678 = arith.mulf %105, %677 : vector<16x128xf32>
    %679 = arith.addf %675, %678 : vector<16x128xf32>
    %cst_323 = arith.constant 0.000000e+00 : f32
    %680 = vector.broadcast %cst_323 : f32 to vector<16x128xf32>
    %681 = arith.maximumf %679, %680 : vector<16x128xf32>
    %c0_324 = arith.constant 0 : index
    %c0_325 = arith.constant 0 : index
    %682 = memref.load %arg5[%c0_324, %c0_325] : memref<16x4xf32, #tpu.memory_space<smem>>
    %683 = vector.broadcast %682 : f32 to vector<16x128xf32>
    %684 = arith.mulf %141, %683 : vector<16x128xf32>
    %c0_326 = arith.constant 0 : index
    %685 = memref.load %arg6[%c0_326] : memref<4xf32, #tpu.memory_space<smem>>
    %686 = vector.broadcast %685 : f32 to vector<16x128xf32>
    %687 = arith.addf %684, %686 : vector<16x128xf32>
    %c1_327 = arith.constant 1 : index
    %c0_328 = arith.constant 0 : index
    %688 = memref.load %arg5[%c1_327, %c0_328] : memref<16x4xf32, #tpu.memory_space<smem>>
    %689 = vector.broadcast %688 : f32 to vector<16x128xf32>
    %690 = arith.mulf %177, %689 : vector<16x128xf32>
    %691 = arith.addf %687, %690 : vector<16x128xf32>
    %c2_329 = arith.constant 2 : index
    %c0_330 = arith.constant 0 : index
    %692 = memref.load %arg5[%c2_329, %c0_330] : memref<16x4xf32, #tpu.memory_space<smem>>
    %693 = vector.broadcast %692 : f32 to vector<16x128xf32>
    %694 = arith.mulf %213, %693 : vector<16x128xf32>
    %695 = arith.addf %691, %694 : vector<16x128xf32>
    %c3_331 = arith.constant 3 : index
    %c0_332 = arith.constant 0 : index
    %696 = memref.load %arg5[%c3_331, %c0_332] : memref<16x4xf32, #tpu.memory_space<smem>>
    %697 = vector.broadcast %696 : f32 to vector<16x128xf32>
    %698 = arith.mulf %249, %697 : vector<16x128xf32>
    %699 = arith.addf %695, %698 : vector<16x128xf32>
    %c4_333 = arith.constant 4 : index
    %c0_334 = arith.constant 0 : index
    %700 = memref.load %arg5[%c4_333, %c0_334] : memref<16x4xf32, #tpu.memory_space<smem>>
    %701 = vector.broadcast %700 : f32 to vector<16x128xf32>
    %702 = arith.mulf %285, %701 : vector<16x128xf32>
    %703 = arith.addf %699, %702 : vector<16x128xf32>
    %c5_335 = arith.constant 5 : index
    %c0_336 = arith.constant 0 : index
    %704 = memref.load %arg5[%c5_335, %c0_336] : memref<16x4xf32, #tpu.memory_space<smem>>
    %705 = vector.broadcast %704 : f32 to vector<16x128xf32>
    %706 = arith.mulf %321, %705 : vector<16x128xf32>
    %707 = arith.addf %703, %706 : vector<16x128xf32>
    %c6_337 = arith.constant 6 : index
    %c0_338 = arith.constant 0 : index
    %708 = memref.load %arg5[%c6_337, %c0_338] : memref<16x4xf32, #tpu.memory_space<smem>>
    %709 = vector.broadcast %708 : f32 to vector<16x128xf32>
    %710 = arith.mulf %357, %709 : vector<16x128xf32>
    %711 = arith.addf %707, %710 : vector<16x128xf32>
    %c7_339 = arith.constant 7 : index
    %c0_340 = arith.constant 0 : index
    %712 = memref.load %arg5[%c7_339, %c0_340] : memref<16x4xf32, #tpu.memory_space<smem>>
    %713 = vector.broadcast %712 : f32 to vector<16x128xf32>
    %714 = arith.mulf %393, %713 : vector<16x128xf32>
    %715 = arith.addf %711, %714 : vector<16x128xf32>
    %c8_341 = arith.constant 8 : index
    %c0_342 = arith.constant 0 : index
    %716 = memref.load %arg5[%c8_341, %c0_342] : memref<16x4xf32, #tpu.memory_space<smem>>
    %717 = vector.broadcast %716 : f32 to vector<16x128xf32>
    %718 = arith.mulf %429, %717 : vector<16x128xf32>
    %719 = arith.addf %715, %718 : vector<16x128xf32>
    %c9_343 = arith.constant 9 : index
    %c0_344 = arith.constant 0 : index
    %720 = memref.load %arg5[%c9_343, %c0_344] : memref<16x4xf32, #tpu.memory_space<smem>>
    %721 = vector.broadcast %720 : f32 to vector<16x128xf32>
    %722 = arith.mulf %465, %721 : vector<16x128xf32>
    %723 = arith.addf %719, %722 : vector<16x128xf32>
    %c10_345 = arith.constant 10 : index
    %c0_346 = arith.constant 0 : index
    %724 = memref.load %arg5[%c10_345, %c0_346] : memref<16x4xf32, #tpu.memory_space<smem>>
    %725 = vector.broadcast %724 : f32 to vector<16x128xf32>
    %726 = arith.mulf %501, %725 : vector<16x128xf32>
    %727 = arith.addf %723, %726 : vector<16x128xf32>
    %c11_347 = arith.constant 11 : index
    %c0_348 = arith.constant 0 : index
    %728 = memref.load %arg5[%c11_347, %c0_348] : memref<16x4xf32, #tpu.memory_space<smem>>
    %729 = vector.broadcast %728 : f32 to vector<16x128xf32>
    %730 = arith.mulf %537, %729 : vector<16x128xf32>
    %731 = arith.addf %727, %730 : vector<16x128xf32>
    %c12_349 = arith.constant 12 : index
    %c0_350 = arith.constant 0 : index
    %732 = memref.load %arg5[%c12_349, %c0_350] : memref<16x4xf32, #tpu.memory_space<smem>>
    %733 = vector.broadcast %732 : f32 to vector<16x128xf32>
    %734 = arith.mulf %573, %733 : vector<16x128xf32>
    %735 = arith.addf %731, %734 : vector<16x128xf32>
    %c13_351 = arith.constant 13 : index
    %c0_352 = arith.constant 0 : index
    %736 = memref.load %arg5[%c13_351, %c0_352] : memref<16x4xf32, #tpu.memory_space<smem>>
    %737 = vector.broadcast %736 : f32 to vector<16x128xf32>
    %738 = arith.mulf %609, %737 : vector<16x128xf32>
    %739 = arith.addf %735, %738 : vector<16x128xf32>
    %c14_353 = arith.constant 14 : index
    %c0_354 = arith.constant 0 : index
    %740 = memref.load %arg5[%c14_353, %c0_354] : memref<16x4xf32, #tpu.memory_space<smem>>
    %741 = vector.broadcast %740 : f32 to vector<16x128xf32>
    %742 = arith.mulf %645, %741 : vector<16x128xf32>
    %743 = arith.addf %739, %742 : vector<16x128xf32>
    %c15_355 = arith.constant 15 : index
    %c0_356 = arith.constant 0 : index
    %744 = memref.load %arg5[%c15_355, %c0_356] : memref<16x4xf32, #tpu.memory_space<smem>>
    %745 = vector.broadcast %744 : f32 to vector<16x128xf32>
    %746 = arith.mulf %681, %745 : vector<16x128xf32>
    %747 = arith.addf %743, %746 : vector<16x128xf32>
    %c0_357 = arith.constant 0 : index
    %748 = arith.index_cast %3 : i32 to index
    %c0_358 = arith.constant 0 : index
    %749 = vector.load %arg8[%c0_357, %748, %c0_358] : memref<4x16x128xf32, #tpu.memory_space<vmem>>, vector<1x16x128xf32>
    %750 = vector.shape_cast %749 : vector<1x16x128xf32> to vector<16x128xf32>
    %751 = vector.shape_cast %747 : vector<16x128xf32> to vector<1x16x128xf32>
    tpu.vector_store %arg8[%c0_357, %748, %c0_358], %751 {strides = array<i32>} : memref<4x16x128xf32, #tpu.memory_space<vmem>>, vector<1x16x128xf32>,
    %c0_359 = arith.constant 0 : index
    %c1_360 = arith.constant 1 : index
    %752 = memref.load %arg5[%c0_359, %c1_360] : memref<16x4xf32, #tpu.memory_space<smem>>
    %753 = vector.broadcast %752 : f32 to vector<16x128xf32>
    %754 = arith.mulf %141, %753 : vector<16x128xf32>
    %c1_361 = arith.constant 1 : index
    %755 = memref.load %arg6[%c1_361] : memref<4xf32, #tpu.memory_space<smem>>
    %756 = vector.broadcast %755 : f32 to vector<16x128xf32>
    %757 = arith.addf %754, %756 : vector<16x128xf32>
    %c1_362 = arith.constant 1 : index
    %c1_363 = arith.constant 1 : index
    %758 = memref.load %arg5[%c1_362, %c1_363] : memref<16x4xf32, #tpu.memory_space<smem>>
    %759 = vector.broadcast %758 : f32 to vector<16x128xf32>
    %760 = arith.mulf %177, %759 : vector<16x128xf32>
    %761 = arith.addf %757, %760 : vector<16x128xf32>
    %c2_364 = arith.constant 2 : index
    %c1_365 = arith.constant 1 : index
    %762 = memref.load %arg5[%c2_364, %c1_365] : memref<16x4xf32, #tpu.memory_space<smem>>
    %763 = vector.broadcast %762 : f32 to vector<16x128xf32>
    %764 = arith.mulf %213, %763 : vector<16x128xf32>
    %765 = arith.addf %761, %764 : vector<16x128xf32>
    %c3_366 = arith.constant 3 : index
    %c1_367 = arith.constant 1 : index
    %766 = memref.load %arg5[%c3_366, %c1_367] : memref<16x4xf32, #tpu.memory_space<smem>>
    %767 = vector.broadcast %766 : f32 to vector<16x128xf32>
    %768 = arith.mulf %249, %767 : vector<16x128xf32>
    %769 = arith.addf %765, %768 : vector<16x128xf32>
    %c4_368 = arith.constant 4 : index
    %c1_369 = arith.constant 1 : index
    %770 = memref.load %arg5[%c4_368, %c1_369] : memref<16x4xf32, #tpu.memory_space<smem>>
    %771 = vector.broadcast %770 : f32 to vector<16x128xf32>
    %772 = arith.mulf %285, %771 : vector<16x128xf32>
    %773 = arith.addf %769, %772 : vector<16x128xf32>
    %c5_370 = arith.constant 5 : index
    %c1_371 = arith.constant 1 : index
    %774 = memref.load %arg5[%c5_370, %c1_371] : memref<16x4xf32, #tpu.memory_space<smem>>
    %775 = vector.broadcast %774 : f32 to vector<16x128xf32>
    %776 = arith.mulf %321, %775 : vector<16x128xf32>
    %777 = arith.addf %773, %776 : vector<16x128xf32>
    %c6_372 = arith.constant 6 : index
    %c1_373 = arith.constant 1 : index
    %778 = memref.load %arg5[%c6_372, %c1_373] : memref<16x4xf32, #tpu.memory_space<smem>>
    %779 = vector.broadcast %778 : f32 to vector<16x128xf32>
    %780 = arith.mulf %357, %779 : vector<16x128xf32>
    %781 = arith.addf %777, %780 : vector<16x128xf32>
    %c7_374 = arith.constant 7 : index
    %c1_375 = arith.constant 1 : index
    %782 = memref.load %arg5[%c7_374, %c1_375] : memref<16x4xf32, #tpu.memory_space<smem>>
    %783 = vector.broadcast %782 : f32 to vector<16x128xf32>
    %784 = arith.mulf %393, %783 : vector<16x128xf32>
    %785 = arith.addf %781, %784 : vector<16x128xf32>
    %c8_376 = arith.constant 8 : index
    %c1_377 = arith.constant 1 : index
    %786 = memref.load %arg5[%c8_376, %c1_377] : memref<16x4xf32, #tpu.memory_space<smem>>
    %787 = vector.broadcast %786 : f32 to vector<16x128xf32>
    %788 = arith.mulf %429, %787 : vector<16x128xf32>
    %789 = arith.addf %785, %788 : vector<16x128xf32>
    %c9_378 = arith.constant 9 : index
    %c1_379 = arith.constant 1 : index
    %790 = memref.load %arg5[%c9_378, %c1_379] : memref<16x4xf32, #tpu.memory_space<smem>>
    %791 = vector.broadcast %790 : f32 to vector<16x128xf32>
    %792 = arith.mulf %465, %791 : vector<16x128xf32>
    %793 = arith.addf %789, %792 : vector<16x128xf32>
    %c10_380 = arith.constant 10 : index
    %c1_381 = arith.constant 1 : index
    %794 = memref.load %arg5[%c10_380, %c1_381] : memref<16x4xf32, #tpu.memory_space<smem>>
    %795 = vector.broadcast %794 : f32 to vector<16x128xf32>
    %796 = arith.mulf %501, %795 : vector<16x128xf32>
    %797 = arith.addf %793, %796 : vector<16x128xf32>
    %c11_382 = arith.constant 11 : index
    %c1_383 = arith.constant 1 : index
    %798 = memref.load %arg5[%c11_382, %c1_383] : memref<16x4xf32, #tpu.memory_space<smem>>
    %799 = vector.broadcast %798 : f32 to vector<16x128xf32>
    %800 = arith.mulf %537, %799 : vector<16x128xf32>
    %801 = arith.addf %797, %800 : vector<16x128xf32>
    %c12_384 = arith.constant 12 : index
    %c1_385 = arith.constant 1 : index
    %802 = memref.load %arg5[%c12_384, %c1_385] : memref<16x4xf32, #tpu.memory_space<smem>>
    %803 = vector.broadcast %802 : f32 to vector<16x128xf32>
    %804 = arith.mulf %573, %803 : vector<16x128xf32>
    %805 = arith.addf %801, %804 : vector<16x128xf32>
    %c13_386 = arith.constant 13 : index
    %c1_387 = arith.constant 1 : index
    %806 = memref.load %arg5[%c13_386, %c1_387] : memref<16x4xf32, #tpu.memory_space<smem>>
    %807 = vector.broadcast %806 : f32 to vector<16x128xf32>
    %808 = arith.mulf %609, %807 : vector<16x128xf32>
    %809 = arith.addf %805, %808 : vector<16x128xf32>
    %c14_388 = arith.constant 14 : index
    %c1_389 = arith.constant 1 : index
    %810 = memref.load %arg5[%c14_388, %c1_389] : memref<16x4xf32, #tpu.memory_space<smem>>
    %811 = vector.broadcast %810 : f32 to vector<16x128xf32>
    %812 = arith.mulf %645, %811 : vector<16x128xf32>
    %813 = arith.addf %809, %812 : vector<16x128xf32>
    %c15_390 = arith.constant 15 : index
    %c1_391 = arith.constant 1 : index
    %814 = memref.load %arg5[%c15_390, %c1_391] : memref<16x4xf32, #tpu.memory_space<smem>>
    %815 = vector.broadcast %814 : f32 to vector<16x128xf32>
    %816 = arith.mulf %681, %815 : vector<16x128xf32>
    %817 = arith.addf %813, %816 : vector<16x128xf32>
    %c1_392 = arith.constant 1 : index
    %818 = arith.index_cast %3 : i32 to index
    %c0_393 = arith.constant 0 : index
    %819 = vector.load %arg8[%c1_392, %818, %c0_393] : memref<4x16x128xf32, #tpu.memory_space<vmem>>, vector<1x16x128xf32>
    %820 = vector.shape_cast %819 : vector<1x16x128xf32> to vector<16x128xf32>
    %821 = vector.shape_cast %817 : vector<16x128xf32> to vector<1x16x128xf32>
    tpu.vector_store %arg8[%c1_392, %818, %c0_393], %821 {strides = array<i32>} : memref<4x16x128xf32, #tpu.memory_space<vmem>>, vector<1x16x128xf32>,
    %c0_394 = arith.constant 0 : index
    %c2_395 = arith.constant 2 : index
    %822 = memref.load %arg5[%c0_394, %c2_395] : memref<16x4xf32, #tpu.memory_space<smem>>
    %823 = vector.broadcast %822 : f32 to vector<16x128xf32>
    %824 = arith.mulf %141, %823 : vector<16x128xf32>
    %c2_396 = arith.constant 2 : index
    %825 = memref.load %arg6[%c2_396] : memref<4xf32, #tpu.memory_space<smem>>
    %826 = vector.broadcast %825 : f32 to vector<16x128xf32>
    %827 = arith.addf %824, %826 : vector<16x128xf32>
    %c1_397 = arith.constant 1 : index
    %c2_398 = arith.constant 2 : index
    %828 = memref.load %arg5[%c1_397, %c2_398] : memref<16x4xf32, #tpu.memory_space<smem>>
    %829 = vector.broadcast %828 : f32 to vector<16x128xf32>
    %830 = arith.mulf %177, %829 : vector<16x128xf32>
    %831 = arith.addf %827, %830 : vector<16x128xf32>
    %c2_399 = arith.constant 2 : index
    %c2_400 = arith.constant 2 : index
    %832 = memref.load %arg5[%c2_399, %c2_400] : memref<16x4xf32, #tpu.memory_space<smem>>
    %833 = vector.broadcast %832 : f32 to vector<16x128xf32>
    %834 = arith.mulf %213, %833 : vector<16x128xf32>
    %835 = arith.addf %831, %834 : vector<16x128xf32>
    %c3_401 = arith.constant 3 : index
    %c2_402 = arith.constant 2 : index
    %836 = memref.load %arg5[%c3_401, %c2_402] : memref<16x4xf32, #tpu.memory_space<smem>>
    %837 = vector.broadcast %836 : f32 to vector<16x128xf32>
    %838 = arith.mulf %249, %837 : vector<16x128xf32>
    %839 = arith.addf %835, %838 : vector<16x128xf32>
    %c4_403 = arith.constant 4 : index
    %c2_404 = arith.constant 2 : index
    %840 = memref.load %arg5[%c4_403, %c2_404] : memref<16x4xf32, #tpu.memory_space<smem>>
    %841 = vector.broadcast %840 : f32 to vector<16x128xf32>
    %842 = arith.mulf %285, %841 : vector<16x128xf32>
    %843 = arith.addf %839, %842 : vector<16x128xf32>
    %c5_405 = arith.constant 5 : index
    %c2_406 = arith.constant 2 : index
    %844 = memref.load %arg5[%c5_405, %c2_406] : memref<16x4xf32, #tpu.memory_space<smem>>
    %845 = vector.broadcast %844 : f32 to vector<16x128xf32>
    %846 = arith.mulf %321, %845 : vector<16x128xf32>
    %847 = arith.addf %843, %846 : vector<16x128xf32>
    %c6_407 = arith.constant 6 : index
    %c2_408 = arith.constant 2 : index
    %848 = memref.load %arg5[%c6_407, %c2_408] : memref<16x4xf32, #tpu.memory_space<smem>>
    %849 = vector.broadcast %848 : f32 to vector<16x128xf32>
    %850 = arith.mulf %357, %849 : vector<16x128xf32>
    %851 = arith.addf %847, %850 : vector<16x128xf32>
    %c7_409 = arith.constant 7 : index
    %c2_410 = arith.constant 2 : index
    %852 = memref.load %arg5[%c7_409, %c2_410] : memref<16x4xf32, #tpu.memory_space<smem>>
    %853 = vector.broadcast %852 : f32 to vector<16x128xf32>
    %854 = arith.mulf %393, %853 : vector<16x128xf32>
    %855 = arith.addf %851, %854 : vector<16x128xf32>
    %c8_411 = arith.constant 8 : index
    %c2_412 = arith.constant 2 : index
    %856 = memref.load %arg5[%c8_411, %c2_412] : memref<16x4xf32, #tpu.memory_space<smem>>
    %857 = vector.broadcast %856 : f32 to vector<16x128xf32>
    %858 = arith.mulf %429, %857 : vector<16x128xf32>
    %859 = arith.addf %855, %858 : vector<16x128xf32>
    %c9_413 = arith.constant 9 : index
    %c2_414 = arith.constant 2 : index
    %860 = memref.load %arg5[%c9_413, %c2_414] : memref<16x4xf32, #tpu.memory_space<smem>>
    %861 = vector.broadcast %860 : f32 to vector<16x128xf32>
    %862 = arith.mulf %465, %861 : vector<16x128xf32>
    %863 = arith.addf %859, %862 : vector<16x128xf32>
    %c10_415 = arith.constant 10 : index
    %c2_416 = arith.constant 2 : index
    %864 = memref.load %arg5[%c10_415, %c2_416] : memref<16x4xf32, #tpu.memory_space<smem>>
    %865 = vector.broadcast %864 : f32 to vector<16x128xf32>
    %866 = arith.mulf %501, %865 : vector<16x128xf32>
    %867 = arith.addf %863, %866 : vector<16x128xf32>
    %c11_417 = arith.constant 11 : index
    %c2_418 = arith.constant 2 : index
    %868 = memref.load %arg5[%c11_417, %c2_418] : memref<16x4xf32, #tpu.memory_space<smem>>
    %869 = vector.broadcast %868 : f32 to vector<16x128xf32>
    %870 = arith.mulf %537, %869 : vector<16x128xf32>
    %871 = arith.addf %867, %870 : vector<16x128xf32>
    %c12_419 = arith.constant 12 : index
    %c2_420 = arith.constant 2 : index
    %872 = memref.load %arg5[%c12_419, %c2_420] : memref<16x4xf32, #tpu.memory_space<smem>>
    %873 = vector.broadcast %872 : f32 to vector<16x128xf32>
    %874 = arith.mulf %573, %873 : vector<16x128xf32>
    %875 = arith.addf %871, %874 : vector<16x128xf32>
    %c13_421 = arith.constant 13 : index
    %c2_422 = arith.constant 2 : index
    %876 = memref.load %arg5[%c13_421, %c2_422] : memref<16x4xf32, #tpu.memory_space<smem>>
    %877 = vector.broadcast %876 : f32 to vector<16x128xf32>
    %878 = arith.mulf %609, %877 : vector<16x128xf32>
    %879 = arith.addf %875, %878 : vector<16x128xf32>
    %c14_423 = arith.constant 14 : index
    %c2_424 = arith.constant 2 : index
    %880 = memref.load %arg5[%c14_423, %c2_424] : memref<16x4xf32, #tpu.memory_space<smem>>
    %881 = vector.broadcast %880 : f32 to vector<16x128xf32>
    %882 = arith.mulf %645, %881 : vector<16x128xf32>
    %883 = arith.addf %879, %882 : vector<16x128xf32>
    %c15_425 = arith.constant 15 : index
    %c2_426 = arith.constant 2 : index
    %884 = memref.load %arg5[%c15_425, %c2_426] : memref<16x4xf32, #tpu.memory_space<smem>>
    %885 = vector.broadcast %884 : f32 to vector<16x128xf32>
    %886 = arith.mulf %681, %885 : vector<16x128xf32>
    %887 = arith.addf %883, %886 : vector<16x128xf32>
    %c2_427 = arith.constant 2 : index
    %888 = arith.index_cast %3 : i32 to index
    %c0_428 = arith.constant 0 : index
    %889 = vector.load %arg8[%c2_427, %888, %c0_428] : memref<4x16x128xf32, #tpu.memory_space<vmem>>, vector<1x16x128xf32>
    %890 = vector.shape_cast %889 : vector<1x16x128xf32> to vector<16x128xf32>
    %891 = vector.shape_cast %887 : vector<16x128xf32> to vector<1x16x128xf32>
    tpu.vector_store %arg8[%c2_427, %888, %c0_428], %891 {strides = array<i32>} : memref<4x16x128xf32, #tpu.memory_space<vmem>>, vector<1x16x128xf32>,
    %c0_429 = arith.constant 0 : index
    %c3_430 = arith.constant 3 : index
    %892 = memref.load %arg5[%c0_429, %c3_430] : memref<16x4xf32, #tpu.memory_space<smem>>
    %893 = vector.broadcast %892 : f32 to vector<16x128xf32>
    %894 = arith.mulf %141, %893 : vector<16x128xf32>
    %c3_431 = arith.constant 3 : index
    %895 = memref.load %arg6[%c3_431] : memref<4xf32, #tpu.memory_space<smem>>
    %896 = vector.broadcast %895 : f32 to vector<16x128xf32>
    %897 = arith.addf %894, %896 : vector<16x128xf32>
    %c1_432 = arith.constant 1 : index
    %c3_433 = arith.constant 3 : index
    %898 = memref.load %arg5[%c1_432, %c3_433] : memref<16x4xf32, #tpu.memory_space<smem>>
    %899 = vector.broadcast %898 : f32 to vector<16x128xf32>
    %900 = arith.mulf %177, %899 : vector<16x128xf32>
    %901 = arith.addf %897, %900 : vector<16x128xf32>
    %c2_434 = arith.constant 2 : index
    %c3_435 = arith.constant 3 : index
    %902 = memref.load %arg5[%c2_434, %c3_435] : memref<16x4xf32, #tpu.memory_space<smem>>
    %903 = vector.broadcast %902 : f32 to vector<16x128xf32>
    %904 = arith.mulf %213, %903 : vector<16x128xf32>
    %905 = arith.addf %901, %904 : vector<16x128xf32>
    %c3_436 = arith.constant 3 : index
    %c3_437 = arith.constant 3 : index
    %906 = memref.load %arg5[%c3_436, %c3_437] : memref<16x4xf32, #tpu.memory_space<smem>>
    %907 = vector.broadcast %906 : f32 to vector<16x128xf32>
    %908 = arith.mulf %249, %907 : vector<16x128xf32>
    %909 = arith.addf %905, %908 : vector<16x128xf32>
    %c4_438 = arith.constant 4 : index
    %c3_439 = arith.constant 3 : index
    %910 = memref.load %arg5[%c4_438, %c3_439] : memref<16x4xf32, #tpu.memory_space<smem>>
    %911 = vector.broadcast %910 : f32 to vector<16x128xf32>
    %912 = arith.mulf %285, %911 : vector<16x128xf32>
    %913 = arith.addf %909, %912 : vector<16x128xf32>
    %c5_440 = arith.constant 5 : index
    %c3_441 = arith.constant 3 : index
    %914 = memref.load %arg5[%c5_440, %c3_441] : memref<16x4xf32, #tpu.memory_space<smem>>
    %915 = vector.broadcast %914 : f32 to vector<16x128xf32>
    %916 = arith.mulf %321, %915 : vector<16x128xf32>
    %917 = arith.addf %913, %916 : vector<16x128xf32>
    %c6_442 = arith.constant 6 : index
    %c3_443 = arith.constant 3 : index
    %918 = memref.load %arg5[%c6_442, %c3_443] : memref<16x4xf32, #tpu.memory_space<smem>>
    %919 = vector.broadcast %918 : f32 to vector<16x128xf32>
    %920 = arith.mulf %357, %919 : vector<16x128xf32>
    %921 = arith.addf %917, %920 : vector<16x128xf32>
    %c7_444 = arith.constant 7 : index
    %c3_445 = arith.constant 3 : index
    %922 = memref.load %arg5[%c7_444, %c3_445] : memref<16x4xf32, #tpu.memory_space<smem>>
    %923 = vector.broadcast %922 : f32 to vector<16x128xf32>
    %924 = arith.mulf %393, %923 : vector<16x128xf32>
    %925 = arith.addf %921, %924 : vector<16x128xf32>
    %c8_446 = arith.constant 8 : index
    %c3_447 = arith.constant 3 : index
    %926 = memref.load %arg5[%c8_446, %c3_447] : memref<16x4xf32, #tpu.memory_space<smem>>
    %927 = vector.broadcast %926 : f32 to vector<16x128xf32>
    %928 = arith.mulf %429, %927 : vector<16x128xf32>
    %929 = arith.addf %925, %928 : vector<16x128xf32>
    %c9_448 = arith.constant 9 : index
    %c3_449 = arith.constant 3 : index
    %930 = memref.load %arg5[%c9_448, %c3_449] : memref<16x4xf32, #tpu.memory_space<smem>>
    %931 = vector.broadcast %930 : f32 to vector<16x128xf32>
    %932 = arith.mulf %465, %931 : vector<16x128xf32>
    %933 = arith.addf %929, %932 : vector<16x128xf32>
    %c10_450 = arith.constant 10 : index
    %c3_451 = arith.constant 3 : index
    %934 = memref.load %arg5[%c10_450, %c3_451] : memref<16x4xf32, #tpu.memory_space<smem>>
    %935 = vector.broadcast %934 : f32 to vector<16x128xf32>
    %936 = arith.mulf %501, %935 : vector<16x128xf32>
    %937 = arith.addf %933, %936 : vector<16x128xf32>
    %c11_452 = arith.constant 11 : index
    %c3_453 = arith.constant 3 : index
    %938 = memref.load %arg5[%c11_452, %c3_453] : memref<16x4xf32, #tpu.memory_space<smem>>
    %939 = vector.broadcast %938 : f32 to vector<16x128xf32>
    %940 = arith.mulf %537, %939 : vector<16x128xf32>
    %941 = arith.addf %937, %940 : vector<16x128xf32>
    %c12_454 = arith.constant 12 : index
    %c3_455 = arith.constant 3 : index
    %942 = memref.load %arg5[%c12_454, %c3_455] : memref<16x4xf32, #tpu.memory_space<smem>>
    %943 = vector.broadcast %942 : f32 to vector<16x128xf32>
    %944 = arith.mulf %573, %943 : vector<16x128xf32>
    %945 = arith.addf %941, %944 : vector<16x128xf32>
    %c13_456 = arith.constant 13 : index
    %c3_457 = arith.constant 3 : index
    %946 = memref.load %arg5[%c13_456, %c3_457] : memref<16x4xf32, #tpu.memory_space<smem>>
    %947 = vector.broadcast %946 : f32 to vector<16x128xf32>
    %948 = arith.mulf %609, %947 : vector<16x128xf32>
    %949 = arith.addf %945, %948 : vector<16x128xf32>
    %c14_458 = arith.constant 14 : index
    %c3_459 = arith.constant 3 : index
    %950 = memref.load %arg5[%c14_458, %c3_459] : memref<16x4xf32, #tpu.memory_space<smem>>
    %951 = vector.broadcast %950 : f32 to vector<16x128xf32>
    %952 = arith.mulf %645, %951 : vector<16x128xf32>
    %953 = arith.addf %949, %952 : vector<16x128xf32>
    %c15_460 = arith.constant 15 : index
    %c3_461 = arith.constant 3 : index
    %954 = memref.load %arg5[%c15_460, %c3_461] : memref<16x4xf32, #tpu.memory_space<smem>>
    %955 = vector.broadcast %954 : f32 to vector<16x128xf32>
    %956 = arith.mulf %681, %955 : vector<16x128xf32>
    %957 = arith.addf %953, %956 : vector<16x128xf32>
    %c3_462 = arith.constant 3 : index
    %958 = arith.index_cast %3 : i32 to index
    %c0_463 = arith.constant 0 : index
    %959 = vector.load %arg8[%c3_462, %958, %c0_463] : memref<4x16x128xf32, #tpu.memory_space<vmem>>, vector<1x16x128xf32>
    %960 = vector.shape_cast %959 : vector<1x16x128xf32> to vector<16x128xf32>
    %961 = vector.shape_cast %957 : vector<16x128xf32> to vector<1x16x128xf32>
    tpu.vector_store %arg8[%c3_462, %958, %c0_463], %961 {strides = array<i32>} : memref<4x16x128xf32, #tpu.memory_space<vmem>>, vector<1x16x128xf32>,
    %c1_i32_464 = arith.constant 1 : i32
    return
  }
  func.func @transform_0(%arg0: i32) -> (i32, i32) {
    %c0_i32 = arith.constant 0 : i32
    %c0_i32_0 = arith.constant 0 : i32
    %c0_i32_1 = arith.constant 0 : i32
    return %c0_i32, %c0_i32_0 : i32, i32
  }
  func.func @transform_1(%arg0: i32) -> i32 {
    %c0_i32 = arith.constant 0 : i32
    %c0_i32_0 = arith.constant 0 : i32
    return %c0_i32 : i32
  }
  func.func @transform_2(%arg0: i32) -> (i32, i32) {
    %c0_i32 = arith.constant 0 : i32
    %c0_i32_0 = arith.constant 0 : i32
    %c0_i32_1 = arith.constant 0 : i32
    return %c0_i32, %c0_i32_0 : i32, i32
  }
  func.func @transform_3(%arg0: i32) -> i32 {
    %c0_i32 = arith.constant 0 : i32
    %c0_i32_0 = arith.constant 0 : i32
    return %c0_i32 : i32
  }
  func.func @transform_4(%arg0: i32) -> (i32, i32) {
    %c0_i32 = arith.constant 0 : i32
    %c0_i32_0 = arith.constant 0 : i32
    %c0_i32_1 = arith.constant 0 : i32
    return %c0_i32, %c0_i32_0 : i32, i32
  }
  func.func @transform_5(%arg0: i32) -> i32 {
    %c0_i32 = arith.constant 0 : i32
    %c0_i32_0 = arith.constant 0 : i32
    return %c0_i32 : i32
  }
  func.func @transform_6(%arg0: i32) -> (i32, i32, i32) {
    %c0_i32 = arith.constant 0 : i32
    %c0_i32_0 = arith.constant 0 : i32
    %c0_i32_1 = arith.constant 0 : i32
    return %c0_i32, %arg0, %c0_i32_0 : i32, i32, i32
  }
  func.func @transform_7(%arg0: i32) -> (i32, i32, i32) {
    %c0_i32 = arith.constant 0 : i32
    %c0_i32_0 = arith.constant 0 : i32
    %c0_i32_1 = arith.constant 0 : i32
    return %c0_i32, %arg0, %c0_i32_0 : i32, i32, i32
  }
}

</mosaic_0001>

<bundles_post_ra>
// kernel: tpu_custom_call.1
= control target key start
LH: loop header
LB: loop body
LE: loop exit
PB: predicated region body
PF: predicated region fallthrough
CT: control target
= control target key end

     0   :  { %12 = vsyncpa [#allocation5], 0  ;;  %s3166_s0 = inlined_call_operand.vmem [shape: f32[2,8], index: 0, kind: input, shape index: {}]   ;;  %s3167_s1 = inlined_call_operand.hbm [shape: f32[8], index: 1, kind: input, shape index: {}]   ;;  %s3168_s2 = inlined_call_operand.vmem [shape: f32[8,16], index: 2, kind: input, shape index: {}]   ;;  %s3169_s3 = inlined_call_operand.hbm [shape: f32[16], index: 3, kind: input, shape index: {}]   ;;  %s3170_s4 = inlined_call_operand.vmem [shape: f32[16,4], index: 4, kind: input, shape index: {}]   ;;  %s3171_s5 = inlined_call_operand.hbm [shape: f32[4], index: 5, kind: input, shape index: {}]   ;;  %s3172_s6 = inlined_call_operand.vmem [shape: f32[2,16,128], index: 6, kind: input, shape index: {}]   ;;  %s3173_s7 = inlined_call_operand.hbm [shape: f32[4,16,128], index: 7, kind: output, shape index: {}]  }
   0x1   :  { %13 = vsyncpa [#allocation4], 0 }
   0x2   :  { %14 = vsyncpa [#allocation8], 0 }
   0x3   :  { %15 = vsyncpa [#allocation10], 0  ;;  %s41_s26 = sshll.u32 %s3168_s2, 4  ;;  %s42_s26 = int_to_ptr.vmem [resolvable:$true] %s41_s26 }
   0x4   :  { %16 = vsyncpa [#allocation3], 0  ;;  %s1730_s27 = scalar_lea.vmem %s42_s26, 128  ;;  %p1735_p1 = scmp.lt.s32.totalorder %s42_s26, %s42_s26 }
   0x5   :  { %p1731_p0 = scmp.ne.s32.totalorder %s42_s26, %s1730_s27  ;;  %p1736_p2 = scmp.lt.s32.totalorder %s1730_s27, %s1730_s27 }
   0x7   :  { %p1737_p3 = por %p1736_p2, %p1735_p1 }
   0x9   :  { %p1738_p4 = pnand %p1737_p3, %p1731_p0 }
   0xb   :  { %1741 = shalt.err (!%p1738_p4)
}
   0xc   :  { %s1832_s28 = smov [#allocation7]   ;;  %s1742_s8 = scalar_lea.hbm %s3169_s3, 16 }
   0xd   :  { %44 = dma.vmem_to_smem %s42_s26, 128, %s1832_s28, [#allocation8]  }
   0xe   :  { %p1743_p5 = scmp.ne.s32.totalorder %s3169_s3, %s1742_s8  ;;  %p1746_p6 = scmp.lt.u32.totalorder %s1742_s8, %s3169_s3 }
  0x10   :  { %p1748_p7 = pnand %p1746_p6, %p1743_p5 }
  0x12   :  { %1751 = shalt.err (!%p1748_p7)
}
  0x13   :  { %s1833_s12 = smov [#allocation9]   ;;  %s23_s17 = sshll.u32 %s3166_s0, 4  ;;  %s24_s17 = int_to_ptr.vmem [resolvable:$true] %s23_s17 }
  0x14   :  { %52 = dma.hbm_to_smem %s3169_s3, 16, %s1833_s12, [#allocation10]  }
  0x15   :  { %s1752_s18 = scalar_lea.vmem %s24_s17, 32  ;;  %p1757_p9 = scmp.lt.s32.totalorder %s24_s17, %s24_s17 }
  0x16   :  { %p1753_p8 = scmp.ne.s32.totalorder %s24_s17, %s1752_s18  ;;  %p1758_p10 = scmp.lt.s32.totalorder %s1752_s18, %s1752_s18 }
  0x18   :  { %p1759_p11 = por %p1758_p10, %p1757_p9 }
  0x1a   :  { %p1760_p12 = pnand %p1759_p11, %p1753_p8 }
  0x1c   :  { %1763 = shalt.err (!%p1760_p12)
}
  0x1d   :  { %s1834_s19 = smov [#allocation2]   ;;  %s1764_s22 = scalar_lea.hbm %s3167_s1, 16 }
  0x1e   :  { %26 = dma.vmem_to_smem %s24_s17, 32, %s1834_s19, [#allocation5]  }
  0x1f   :  { %p1765_p13 = scmp.ne.s32.totalorder %s3167_s1, %s1764_s22  ;;  %p1768_p0 = scmp.lt.u32.totalorder %s1764_s22, %s3167_s1 }
  0x21   :  { %p1770_p1 = pnand %p1768_p0, %p1765_p13 }
  0x23   :  { %1773 = shalt.err (!%p1770_p1)
}
  0x24   :  { %s1835_s25 = smov [#allocation6]   ;;  %s58_s30 = sshll.u32 %s3170_s4, 4  ;;  %s59_s30 = int_to_ptr.vmem [resolvable:$true] %s58_s30 }
  0x25   :  { %34 = dma.hbm_to_smem %s3167_s1, 16, %s1835_s25, [#allocation4]  }
  0x26   :  { %s1774_s8 = scalar_lea.vmem %s59_s30, 256  ;;  %p1779_p3 = scmp.lt.s32.totalorder %s59_s30, %s59_s30 }
  0x27   :  { %p1775_p2 = scmp.ne.s32.totalorder %s59_s30, %s1774_s8  ;;  %p1780_p4 = scmp.lt.s32.totalorder %s1774_s8, %s1774_s8 }
  0x29   :  { %p1781_p5 = por %p1780_p4, %p1779_p3 }
  0x2b   :  { %p1782_p6 = pnand %p1781_p5, %p1775_p2 }
  0x2d   :  { %1785 = shalt.err (!%p1782_p6)
}
  0x2e   :  { %s1836_s9 = smov [#allocation11]   ;;  %s1837_s10 = smov 128  }
  0x2f   :  { %s1838_s2 = smov 8   ;;  %s1786_s12 = scalar_lea.hbm %s3171_s5, 16 }
  0x30   :  { %64 = dma.vmem_to_smem %s59_s30, 256, %s1836_s9, [#allocation8], %s1837_s10, %s1837_s10, %s1838_s2  }
  0x31   :  { %p1787_p7 = scmp.ne.s32.totalorder %s3171_s5, %s1786_s12  ;;  %p1790_p8 = scmp.lt.u32.totalorder %s1786_s12, %s3171_s5 }
  0x33   :  { %p1792_p9 = pnand %p1790_p8, %p1787_p7 }
  0x35   :  { %1795 = shalt.err (!%p1792_p9)
}
  0x36   :  { %s1839_s16 = smov [#allocation12]  }
  0x37   :  { %72 = dma.hbm_to_smem %s3171_s5, 16, %s1839_s16, [#allocation10]  }
  0x38   :  { %1818 = dma.done.wait [#allocation5], 32  }
  0x39   :  { %1819 = vsyncadd [#allocation5], 4294967264 }
  0x3a   :  { %1820 = dma.done.wait [#allocation4], 16  }
  0x3b   :  { %1821 = vsyncadd [#allocation4], 4294967280 }
  0x3c   :  { %1822 = dma.done.wait [#allocation8], 128  }
  0x3d   :  { %1823 = vsyncadd [#allocation8], 4294967168 }
  0x3e   :  { %1824 = dma.done.wait [#allocation10], 16  }
  0x3f   :  { %1825 = vsyncadd [#allocation10], 4294967280 }
  0x40   :  { %1826 = dma.done.wait [#allocation8], 256  }
  0x41   :  { %1827 = vsyncadd [#allocation8], 4294967040 }
  0x42   :  { %1828 = dma.done.wait [#allocation10], 16  }
  0x43   :  { %1829 = vsyncadd [#allocation10], 4294967280 }
  0x44   :  { %93 = sfence }
  0x45   :  { %s100_s19 = sld [smem:[#allocation2]]  ;;  %s1492_s22 = sld [smem:[#allocation2 + $0x1]]  ;;  %v1938_v0 = vld [vmem:[%s3172_s6] sm:$0xff]  ;;  %v1943_v1 = vld [vmem:[%s3172_s6 + $0x8] sm:$0xff]  ;;  %v1950_v2 = vld [vmem:[%s3172_s6 + $0x10] sm:$0xff] }
  0x46   :  { %s1491_s20 = sld [smem:[#allocation2 + $0x80]]  ;;  %s1493_s5 = sld [smem:[#allocation2 + $0x81]]  ;;  %v1955_v3 = vld [vmem:[%s3172_s6 + $0x18] sm:$0xff] }
  0x47   :  { %s1929_s21 = sld [smem:[#allocation6]]  ;;  %s1931_s23 = sld [smem:[#allocation6 + $0x1]] }
  0x48   :  { %s1933_s3 = sld [smem:[#allocation2 + $0x2]]  ;;  %s1959_s1 = sld [smem:[#allocation2 + $0x3]] }
  0x49   :  { %s1945_s27 = sld [smem:[#allocation2 + $0x82]]  ;;  %s1961_s11 = sld [smem:[#allocation2 + $0x83]] }
  0x4a   :  { %s1957_s9 = sld [smem:[#allocation6 + $0x2]]  ;;  %s1972_s6 = sld [smem:[#allocation6 + $0x3]] }
  0x4b   :  { %v101_v4 = vstv %s100_s19  ;;  %v117_v11 = vstv %s1492_s22  ;;  %s1974_s12 = sld [smem:[#allocation2 + $0x4]]  ;;  %s1985_s14 = sld [smem:[#allocation2 + $0x5]] }
  0x4c   :  { %v102_v5 = vmul.f32 %v101_v4, %v1938_v0  ;;  %v103_v6 = vmul.f32 %v101_v4, %v1943_v1  ;;  %v105_v7 = vstv %s1491_s20  ;;  %v121_v12 = vstv %s1493_s5  ;;  %s1980_s4 = sld [smem:[#allocation2 + $0x84]]  ;;  %s1990_s15 = sld [smem:[#allocation2 + $0x85]] }
  0x4d   :  { %v111_v8 = vstv %s1929_s21  ;;  %v106_v9 = vmul.f32 %v1950_v2, %v105_v7  ;;  %v107_v10 = vmul.f32 %v1955_v3, %v105_v7  ;;  %v118_v13 = vmul.f32 %v117_v11, %v1938_v0  ;;  %s1983_s13 = sld [smem:[#allocation6 + $0x4]]  ;;  %s1992_s16 = sld [smem:[#allocation2 + $0x6]] }
  0x4e   :  { %v119_v14 = vmul.f32 %v117_v11, %v1943_v1  ;;  %v122_v15 = vmul.f32 %v1950_v2, %v121_v12  ;;  %v123_v16 = vmul.f32 %v1955_v3, %v121_v12  ;;  %v127_v19 = vstv %s1931_s23  ;;  %s1998_s17 = sld [smem:[#allocation6 + $0x5]]  ;;  %s2010_s18 = sld [smem:[#allocation2 + $0x86]] }
  0x4f   :  { %v108_v17 = vadd.f32 %v106_v9, %v102_v5  ;;  %v109_v18 = vadd.f32 %v107_v10, %v103_v6  ;;  %v133_v20 = vstv %s1933_s3  ;;  %v137_v27 = vstv %s1945_s27  ;;  %s2014_s19 = sld [smem:[#allocation6 + $0x6]]  ;;  %s2016_s20 = sld [smem:[#allocation2 + $0x7]] }
  0x50   :  { %v124_v21 = vadd.f32 %v122_v15, %v118_v13  ;;  %v125_v22 = vadd.f32 %v123_v16, %v119_v14  ;;  %v134_v23 = vmul.f32 %v133_v20, %v1938_v0  ;;  %v135_v24 = vmul.f32 %v133_v20, %v1943_v1  ;;  %s2025_s21 = sld [smem:[#allocation2 + $0x87]]  ;;  %s2038_s5 = sld [smem:[#allocation7]] }
  0x51   :  { %v112_v25 = vadd.f32 %v111_v8, %v108_v17  ;;  %v113_v26 = vadd.f32 %v111_v8, %v109_v18  ;;  %v138_v29 = vmul.f32 %v1950_v2, %v137_v27  ;;  %v139_v30 = vmul.f32 %v1955_v3, %v137_v27  ;;  %s2036_s22 = sld [smem:[#allocation6 + $0x7]]  ;;  %s2048_s23 = sld [smem:[#allocation9]] }
  0x52   :  { %v128_v28 = vadd.f32 %v127_v19, %v124_v21  ;;  %v143_v31 = vstv %s1957_s9  ;;  %v129_v33 = vadd.f32 %v127_v19, %v125_v22  ;;  %v149_v34 = vstv %s1959_s1  ;;  %s2050_s3 = sld [smem:[#allocation7 + $0x80]]  ;;  %s2090_s29 = sld [smem:[#allocation7 + $0x1]] }
  0x53   :  { %v1994_v32 = vmax.f32 %v112_v25, 0.0  ;;  %v153_v35 = vstv %s1961_s11  ;;  %v2000_v36 = vmax.f32 %v113_v26, 0.0  ;;  %v140_v38 = vadd.f32 %v138_v29, %v134_v23  ;;  %s2058_s24 = sld [smem:[#allocation7 + $0x100]]  ;;  %s2092_s30 = sld [smem:[#allocation9 + $0x1]] }
  0x54   :  { %v2002_v37 = vmax.f32 %v128_v28, 0.0  ;;  %v141_v39 = vadd.f32 %v139_v30, %v135_v24  ;;  %v150_v40 = vmul.f32 %v149_v34, %v1938_v0  ;;  %v151_v41 = vmul.f32 %v149_v34, %v1943_v1  ;;  %s2060_s0 = sld [smem:[#allocation7 + $0x180]]  ;;  %s2096_s8 = sld [smem:[#allocation7 + $0x81]] }
  0x55   :  { %v154_v42 = vmul.f32 %v1950_v2, %v153_v35  ;;  %v155_v43 = vmul.f32 %v1955_v3, %v153_v35  ;;  %v144_v44 = vadd.f32 %v143_v31, %v140_v38  ;;  %v159_v46 = vstv %s1972_s6  ;;  %s2066_s25 = sld [smem:[#allocation7 + $0x200]]  ;;  %s2098_s9 = sld [smem:[#allocation7 + $0x101]] }
  0x56   :  { %v145_v45 = vadd.f32 %v143_v31, %v141_v39  ;;  %v165_v47 = vstv %s1974_s12  ;;  %v2018_v52 = vmax.f32 %v129_v33, 0.0  ;;  %v169_v55 = vstv %s1980_s4  ;;  %s2068_s26 = sld [smem:[#allocation7 + $0x280]]  ;;  %s2110_s1 = sld [smem:[#allocation7 + $0x181]] }
  0x57   :  { %v156_v48 = vadd.f32 %v154_v42, %v150_v40  ;;  %v157_v49 = vadd.f32 %v155_v43, %v151_v41  ;;  %v166_v50 = vmul.f32 %v165_v47, %v1938_v0  ;;  %v167_v51 = vmul.f32 %v165_v47, %v1943_v1  ;;  %s2076_s27 = sld [smem:[#allocation7 + $0x300]]  ;;  %s2116_s11 = sld [smem:[#allocation7 + $0x201]] }
  0x58   :  { %v2020_v53 = vmax.f32 %v144_v44, 0.0  ;;  %v2022_v54 = vmax.f32 %v145_v45, 0.0  ;;  %v170_v58 = vmul.f32 %v1950_v2, %v169_v55  ;;  %v171_v59 = vmul.f32 %v1955_v3, %v169_v55  ;;  %s2078_s28 = sld [smem:[#allocation7 + $0x380]]  ;;  %s2118_s6 = sld [smem:[#allocation7 + $0x281]] }
  0x59   :  { %v160_v56 = vadd.f32 %v159_v46, %v156_v48  ;;  %v161_v57 = vadd.f32 %v159_v46, %v157_v49  ;;  %v175_v60 = vstv %s1983_s13  ;;  %v181_v61 = vstv %s1985_s14  ;;  %s2127_s12 = sld [smem:[#allocation7 + $0x301]]  ;;  %s2139_s13 = sld [smem:[#allocation7 + $0x2]] }
  0x5a   :  { %v185_v62 = vstv %s1990_s15  ;;  %v197_v63 = vstv %s1992_s16  ;;  %v172_v5 = vadd.f32 %v170_v58, %v166_v50  ;;  %v173_v6 = vadd.f32 %v171_v59, %v167_v51  ;;  %s2137_s4 = sld [smem:[#allocation7 + $0x381]]  ;;  %s2145_s14 = sld [smem:[#allocation9 + $0x2]] }
  0x5b   :  { %v2033_v4 = vmax.f32 %v160_v56, 0.0  ;;  %v191_v7 = vstv %s1998_s17  ;;  %v182_v8 = vmul.f32 %v181_v61, %v1938_v0  ;;  %v183_v9 = vmul.f32 %v181_v61, %v1943_v1  ;;  %s2147_s15 = sld [smem:[#allocation7 + $0x82]] }
  0x5c   :  { %v186_v10 = vmul.f32 %v1950_v2, %v185_v62  ;;  %v187_v11 = vmul.f32 %v1955_v3, %v185_v62  ;;  %v2044_v12 = vmax.f32 %v161_v57, 0.0  ;;  %v176_v13 = vadd.f32 %v175_v60, %v172_v5  ;;  %s2153_s16 = sld [smem:[#allocation7 + $0x102]] }
  0x5d   :  { %v198_v14 = vmul.f32 %v197_v63, %v1938_v0  ;;  %v199_v15 = vmul.f32 %v197_v63, %v1943_v1  ;;  %v177_v16 = vadd.f32 %v175_v60, %v173_v6  ;;  %v201_v19 = vstv %s2010_s18  ;;  %s2155_s17 = sld [smem:[#allocation7 + $0x182]] }
  0x5e   :  { %v188_v17 = vadd.f32 %v186_v10, %v182_v8  ;;  %v189_v18 = vadd.f32 %v187_v11, %v183_v9  ;;  %v2053_v20 = vmax.f32 %v176_v13, 0.0  ;;  %v202_v21 = vmul.f32 %v1950_v2, %v201_v19  ;;  %s2164_s18 = sld [smem:[#allocation7 + $0x202]] }
  0x5f   :  { %v203_v22 = vmul.f32 %v1955_v3, %v201_v19  ;;  %v207_v23 = vstv %s2014_s19  ;;  %v213_v26 = vstv %s2016_s20  ;;  %v217_v27 = vstv %s2025_s21  ;;  %s2166_s19 = sld [smem:[#allocation7 + $0x282]] }
  0x60   :  { %v192_v24 = vadd.f32 %v191_v7, %v188_v17  ;;  %v193_v25 = vadd.f32 %v191_v7, %v189_v18  ;;  %v204_v28 = vadd.f32 %v202_v21, %v198_v14  ;;  %v214_v30 = vmul.f32 %v213_v26, %v1938_v0  ;;  %s2176_s20 = sld [smem:[#allocation7 + $0x302]] }
  0x61   :  { %v205_v29 = vadd.f32 %v203_v22, %v199_v15  ;;  %v215_v31 = vmul.f32 %v213_v26, %v1943_v1  ;;  %v2070_v33 = vmax.f32 %v177_v16, 0.0  ;;  %v218_v35 = vmul.f32 %v1950_v2, %v217_v27  ;;  %s2178_s21 = sld [smem:[#allocation7 + $0x382]] }
  0x62   :  { %v2072_v34 = vmax.f32 %v192_v24, 0.0  ;;  %v219_v38 = vmul.f32 %v1955_v3, %v217_v27  ;;  %v208_v0 = vadd.f32 %v207_v23, %v204_v28  ;;  %v223_v39 = vstv %s2036_s22  ;;  %s2186_s22 = sld [smem:[#allocation7 + $0x3]] }
  0x63   :  { %v209_v1 = vadd.f32 %v207_v23, %v205_v29  ;;  %v229_v40 = vstv %s2038_s5  ;;  %v220_v41 = vadd.f32 %v218_v35, %v214_v30  ;;  %v2084_v45 = vmax.f32 %v193_v25, 0.0  ;;  %s2188_s5 = sld [smem:[#allocation9 + $0x3]] }
  0x64   :  { %v221_v42 = vadd.f32 %v219_v38, %v215_v31  ;;  %v230_v43 = vmul.f32 %v229_v40, %v1994_v32  ;;  %v231_v44 = vmul.f32 %v229_v40, %v2000_v36  ;;  %v2086_v2 = vmax.f32 %v208_v0, 0.0 }
  0x65   :  { %v233_v3 = vstv %s2048_s23  ;;  %v237_v46 = vstv %s2050_s3  ;;  %v2094_v47 = vmax.f32 %v209_v1, 0.0  ;;  %v224_v48 = vadd.f32 %v223_v39, %v220_v41  ;;  %s2192_s23 = sld [smem:[#allocation7 + $0x83]] }
  0x66   :  { %v234_v49 = vadd.f32 %v233_v3, %v230_v43  ;;  %v235_v50 = vadd.f32 %v233_v3, %v231_v44  ;;  %v238_v51 = vmul.f32 %v237_v46, %v2002_v37  ;;  %v239_v55 = vmul.f32 %v237_v46, %v2018_v52  ;;  %s2194_s3 = sld [smem:[#allocation7 + $0x103]] }
  0x67   :  { %v243_v56 = vstv %s2058_s24  ;;  %v249_v57 = vstv %s2060_s0  ;;  %v225_v58 = vadd.f32 %v223_v39, %v221_v42  ;;  %v2104_v59 = vmax.f32 %v224_v48, 0.0  ;;  %s2198_s24 = sld [smem:[#allocation7 + $0x183]] }
  0x68   :  { %v244_v60 = vmul.f32 %v243_v56, %v2020_v53  ;;  %v245_v61 = vmul.f32 %v243_v56, %v2022_v54  ;;  %v240_v62 = vadd.f32 %v238_v51, %v234_v49  ;;  %v241_v63 = vadd.f32 %v239_v55, %v235_v50  ;;  %s2200_s0 = sld [smem:[#allocation7 + $0x203]] }
  0x69   :  { %v250_v5 = vmul.f32 %v249_v57, %v2033_v4  ;;  %v251_v6 = vmul.f32 %v249_v57, %v2044_v12  ;;  %v255_v7 = vstv %s2066_s25  ;;  %v261_v8 = vstv %s2068_s26  ;;  %s2216_s25 = sld [smem:[#allocation7 + $0x283]] }
  0x6a   :  { %v267_v9 = vstv %s2076_s27  ;;  %v273_v10 = vstv %s2078_s28  ;;  %v246_v11 = vadd.f32 %v244_v60, %v240_v62  ;;  %v247_v13 = vadd.f32 %v245_v61, %v241_v63  ;;  %s2218_s26 = sld [smem:[#allocation7 + $0x303]]  ;;  %s2232_s28 = sld [smem:[#allocation7 + $0x4]] }
  0x6b   :  { %v256_v14 = vmul.f32 %v255_v7, %v2053_v20  ;;  %v257_v15 = vmul.f32 %v255_v7, %v2070_v33  ;;  %v2122_v16 = vmax.f32 %v225_v58, 0.0  ;;  %v262_v17 = vmul.f32 %v261_v8, %v2072_v34  ;;  %s2230_s27 = sld [smem:[#allocation7 + $0x383]] }
  0x6c   :  { %v263_v18 = vmul.f32 %v261_v8, %v2084_v45  ;;  %v268_v19 = vmul.f32 %v267_v9, %v2086_v2  ;;  %v252_v21 = vadd.f32 %v250_v5, %v246_v11  ;;  %v253_v22 = vadd.f32 %v251_v6, %v247_v13 }
  0x6d   :  { %v269_v23 = vmul.f32 %v267_v9, %v2094_v47  ;;  %v274_v24 = vmul.f32 %v273_v10, %v2104_v59  ;;  %v281_v25 = vstv %s2090_s29  ;;  %v285_v26 = vstv %s2092_s30  ;;  %s2238_s29 = sld [smem:[#allocation9 + $0x4]] }
  0x6e   :  { %v289_v27 = vstv %s2096_s8  ;;  %v295_v28 = vstv %s2098_s9  ;;  %v258_v29 = vadd.f32 %v256_v14, %v252_v21  ;;  %v259_v30 = vadd.f32 %v257_v15, %v253_v22  ;;  %s2240_s30 = sld [smem:[#allocation7 + $0x84]] }
  0x6f   :  { %v282_v31 = vmul.f32 %v281_v25, %v1994_v32  ;;  %v283_v35 = vmul.f32 %v281_v25, %v2000_v36  ;;  %v290_v38 = vmul.f32 %v289_v27, %v2002_v37  ;;  %v291_v0 = vmul.f32 %v289_v27, %v2018_v52  ;;  %s2248_s8 = sld [smem:[#allocation7 + $0x104]] }
  0x70   :  { %v296_v1 = vmul.f32 %v295_v28, %v2020_v53  ;;  %v297_v39 = vmul.f32 %v295_v28, %v2022_v54  ;;  %v264_v40 = vadd.f32 %v262_v17, %v258_v29  ;;  %v265_v41 = vadd.f32 %v263_v18, %v259_v30  ;;  %s2250_s9 = sld [smem:[#allocation7 + $0x184]] }
  0x71   :  { %v286_v42 = vadd.f32 %v285_v26, %v282_v31  ;;  %v287_v43 = vadd.f32 %v285_v26, %v283_v35  ;;  %v275_v44 = vmul.f32 %v273_v10, %v2122_v16  ;;  %v301_v3 = vstv %s2110_s1  ;;  %s2260_s1 = sld [smem:[#allocation7 + $0x204]] }
  0x72   :  { %v307_v46 = vstv %s2116_s11  ;;  %v313_v48 = vstv %s2118_s6  ;;  %v270_v49 = vadd.f32 %v268_v19, %v264_v40  ;;  %v271_v50 = vadd.f32 %v269_v23, %v265_v41  ;;  %s2262_s11 = sld [smem:[#allocation7 + $0x284]] }
  0x73   :  { %v292_v51 = vadd.f32 %v290_v38, %v286_v42  ;;  %v293_v55 = vadd.f32 %v291_v0, %v287_v43  ;;  %v302_v56 = vmul.f32 %v301_v3, %v2033_v4  ;;  %v303_v57 = vmul.f32 %v301_v3, %v2044_v12  ;;  %s2272_s6 = sld [smem:[#allocation7 + $0x304]] }
  0x74   :  { %v319_v58 = vstv %s2127_s12  ;;  %v308_v62 = vmul.f32 %v307_v46, %v2053_v20  ;;  %v309_v63 = vmul.f32 %v307_v46, %v2070_v33  ;;  %v276_v5 = vadd.f32 %v274_v24, %v270_v49  ;;  %s2274_s12 = sld [smem:[#allocation7 + $0x384]] }
  0x75   :  { %v298_v60 = vadd.f32 %v296_v1, %v292_v51  ;;  %v299_v61 = vadd.f32 %v297_v39, %v293_v55  ;;  %v277_v6 = vadd.f32 %v275_v44, %v271_v50  ;;  %v314_v7 = vmul.f32 %v313_v48, %v2072_v34 }
  0x76   :  { %v315_v8 = vmul.f32 %v313_v48, %v2084_v45  ;;  %v320_v11 = vmul.f32 %v319_v58, %v2086_v2  ;;  %v321_v13 = vmul.f32 %v319_v58, %v2094_v47  ;;  %v325_v14 = vstv %s2137_s4  ;;  %s2280_s4 = sld [smem:[#allocation7 + $0x5]] }
  0x77   :  { %v304_v9 = vadd.f32 %v302_v56, %v298_v60  ;;  %v305_v10 = vadd.f32 %v303_v57, %v299_v61  ;;  %v333_v15 = vstv %s2139_s13  ;;  %v337_v17 = vstv %s2145_s14  ;;  %s2282_s13 = sld [smem:[#allocation9 + $0x5]] }
  0x78   :  { %v341_v18 = vstv %s2147_s15  ;;  %v326_v22 = vmul.f32 %v325_v14, %v2104_v59  ;;  %v327_v23 = vmul.f32 %v325_v14, %v2122_v16  ;;  %v334_v24 = vmul.f32 %v333_v15, %v1994_v32  ;;  %s2286_s14 = sld [smem:[#allocation7 + $0x85]] }
  0x79   :  { %v310_v19 = vadd.f32 %v308_v62, %v304_v9  ;;  %v311_v21 = vadd.f32 %v309_v63, %v305_v10  ;;  %v335_v25 = vmul.f32 %v333_v15, %v2000_v36  ;;  %v342_v26 = vmul.f32 %v341_v18, %v2002_v37  ;;  %s2288_s15 = sld [smem:[#allocation7 + $0x105]] }
  0x7a   :  { %v343_v27 = vmul.f32 %v341_v18, %v2018_v52  ;;  %v347_v30 = vstv %s2153_s16  ;;  %v353_v31 = vstv %s2155_s17  ;;  %v338_v35 = vadd.f32 %v337_v17, %v334_v24  ;;  %s2292_s16 = sld [smem:[#allocation7 + $0x185]] }
  0x7b   :  { %v316_v28 = vadd.f32 %v314_v7, %v310_v19  ;;  %v317_v29 = vadd.f32 %v315_v8, %v311_v21  ;;  %v339_v38 = vadd.f32 %v337_v17, %v335_v25  ;;  %v348_v0 = vmul.f32 %v347_v30, %v2020_v53  ;;  %s2294_s17 = sld [smem:[#allocation7 + $0x205]] }
  0x7c   :  { %v349_v1 = vmul.f32 %v347_v30, %v2022_v54  ;;  %v354_v41 = vmul.f32 %v353_v31, %v2033_v4  ;;  %v355_v42 = vmul.f32 %v353_v31, %v2044_v12  ;;  %v344_v43 = vadd.f32 %v342_v26, %v338_v35 }
  0x7d   :  { %v322_v39 = vadd.f32 %v320_v11, %v316_v28  ;;  %v323_v40 = vadd.f32 %v321_v13, %v317_v29  ;;  %v345_v44 = vadd.f32 %v343_v27, %v339_v38  ;;  %v359_v3 = vstv %s2164_s18  ;;  %s2310_s18 = sld [smem:[#allocation7 + $0x285]] }
  0x7e   :  { %v365_v46 = vstv %s2166_s19  ;;  %v2204_v48 = vmax.f32 %v276_v5, 0.0  ;;  %v2206_v49 = vmax.f32 %v277_v6, 0.0  ;;  %v350_v55 = vadd.f32 %v348_v0, %v344_v43  ;;  %s2312_s19 = sld [smem:[#allocation7 + $0x305]] }
  0x7f   :  { %v328_v50 = vadd.f32 %v326_v22, %v322_v39  ;;  %v329_v51 = vadd.f32 %v327_v23, %v323_v40  ;;  %v351_v56 = vadd.f32 %v349_v1, %v345_v44  ;;  %v360_v57 = vmul.f32 %v359_v3, %v2053_v20 }
  0x80   :  { %v361_v58 = vmul.f32 %v359_v3, %v2070_v33  ;;  %v366_v60 = vmul.f32 %v365_v46, %v2072_v34  ;;  %v367_v61 = vmul.f32 %v365_v46, %v2084_v45  ;;  %v371_v62 = vstv %s2176_s20  ;;  %s2320_s20 = sld [smem:[#allocation7 + $0x385]] }
  0x81   :  { %v377_v63 = vstv %s2178_s21  ;;  %v356_v5 = vadd.f32 %v354_v41, %v350_v55  ;;  %v357_v6 = vadd.f32 %v355_v42, %v351_v56  ;;  %v372_v7 = vmul.f32 %v371_v62, %v2086_v2  ;;  %s2322_s21 = sld [smem:[#allocation7 + $0x6]] }
  0x82   :  { %v373_v8 = vmul.f32 %v371_v62, %v2094_v47  ;;  %v378_v9 = vmul.f32 %v377_v63, %v2104_v59  ;;  %v379_v10 = vmul.f32 %v377_v63, %v2122_v16  ;;  %v385_v11 = vstv %s2186_s22  ;;  %s2328_s22 = sld [smem:[#allocation9 + $0x6]] }
  0x83   :  { %v389_v13 = vstv %s2188_s5  ;;  %v362_v14 = vadd.f32 %v360_v57, %v356_v5  ;;  %v363_v15 = vadd.f32 %v361_v58, %v357_v6  ;;  %v386_v17 = vmul.f32 %v385_v11, %v1994_v32  ;;  %s2330_s5 = sld [smem:[#allocation7 + $0x86]] }
  0x84   :  { %v387_v18 = vmul.f32 %v385_v11, %v2000_v36  ;;  %v393_v19 = vstv %s2192_s23  ;;  %v399_v21 = vstv %s2194_s3  ;;  %v405_v22 = vstv %s2198_s24  ;;  %s2340_s23 = sld [smem:[#allocation7 + $0x106]] }
  0x85   :  { %v411_v23 = vstv %s2200_s0  ;;  %v368_v24 = vadd.f32 %v366_v60, %v362_v14  ;;  %v369_v25 = vadd.f32 %v367_v61, %v363_v15  ;;  %v390_v26 = vadd.f32 %v389_v13, %v386_v17  ;;  %s2342_s3 = sld [smem:[#allocation7 + $0x186]] }
  0x86   :  { %v391_v27 = vadd.f32 %v389_v13, %v387_v18  ;;  %v394_v28 = vmul.f32 %v393_v19, %v2002_v37  ;;  %v395_v29 = vmul.f32 %v393_v19, %v2018_v52  ;;  %v400_v30 = vmul.f32 %v399_v21, %v2020_v53  ;;  %s2352_s24 = sld [smem:[#allocation7 + $0x206]] }
  0x87   :  { %v401_v31 = vmul.f32 %v399_v21, %v2022_v54  ;;  %v2242_v35 = vmax.f32 %v328_v50, 0.0  ;;  %v2244_v38 = vmax.f32 %v329_v51, 0.0  ;;  %v374_v0 = vadd.f32 %v372_v7, %v368_v24  ;;  %s2354_s0 = sld [smem:[#allocation7 + $0x286]] }
  0x88   :  { %v375_v1 = vadd.f32 %v373_v8, %v369_v25  ;;  %v396_v39 = vadd.f32 %v394_v28, %v390_v26  ;;  %v397_v40 = vadd.f32 %v395_v29, %v391_v27  ;;  %v406_v41 = vmul.f32 %v405_v22, %v2033_v4 }
  0x89   :  { %v407_v42 = vmul.f32 %v405_v22, %v2044_v12  ;;  %v412_v43 = vmul.f32 %v411_v23, %v2053_v20  ;;  %v413_v44 = vmul.f32 %v411_v23, %v2070_v33  ;;  %v417_v3 = vstv %s2216_s25  ;;  %s2366_s25 = sld [smem:[#allocation7 + $0x306]] }
  0x8a   :  { %v423_v46 = vstv %s2218_s26  ;;  %v380_v50 = vadd.f32 %v378_v9, %v374_v0  ;;  %v381_v51 = vadd.f32 %v379_v10, %v375_v1  ;;  %v402_v55 = vadd.f32 %v400_v30, %v396_v39  ;;  %s2368_s26 = sld [smem:[#allocation7 + $0x386]] }
  0x8b   :  { %v403_v56 = vadd.f32 %v401_v31, %v397_v40  ;;  %v418_v57 = vmul.f32 %v417_v3, %v2072_v34  ;;  %v419_v58 = vmul.f32 %v417_v3, %v2084_v45  ;;  %v424_v60 = vmul.f32 %v423_v46, %v2086_v2 }
  0x8c   :  { %v425_v61 = vmul.f32 %v423_v46, %v2094_v47  ;;  %v408_v62 = vadd.f32 %v406_v41, %v402_v55  ;;  %v429_v5 = vstv %s2230_s27  ;;  %v437_v6 = vstv %s2232_s28  ;;  %s2374_s27 = sld [smem:[#allocation7 + $0x7]] }
  0x8d   :  { %v409_v63 = vadd.f32 %v407_v42, %v403_v56  ;;  %v430_v7 = vmul.f32 %v429_v5, %v2104_v59  ;;  %v431_v8 = vmul.f32 %v429_v5, %v2122_v16  ;;  %v438_v9 = vmul.f32 %v437_v6, %v1994_v32  ;;  %s2376_s28 = sld [smem:[#allocation9 + $0x7]] }
  0x8e   :  { %v439_v10 = vmul.f32 %v437_v6, %v2000_v36  ;;  %v414_v11 = vadd.f32 %v412_v43, %v408_v62  ;;  %v441_v14 = vstv %s2238_s29  ;;  %v445_v15 = vstv %s2240_s30  ;;  %s2380_s29 = sld [smem:[#allocation7 + $0x87]] }
  0x8f   :  { %v415_v13 = vadd.f32 %v413_v44, %v409_v63  ;;  %v442_v17 = vadd.f32 %v441_v14, %v438_v9  ;;  %v446_v19 = vmul.f32 %v445_v15, %v2002_v37  ;;  %v447_v21 = vmul.f32 %v445_v15, %v2018_v52  ;;  %s2382_s30 = sld [smem:[#allocation7 + $0x107]] }
  0x90   :  { %v443_v18 = vadd.f32 %v441_v14, %v439_v10  ;;  %v420_v22 = vadd.f32 %v418_v57, %v414_v11  ;;  %v451_v24 = vstv %s2248_s8  ;;  %v457_v25 = vstv %s2250_s9  ;;  %s2396_s8 = sld [smem:[#allocation7 + $0x187]] }
  0x91   :  { %v421_v23 = vadd.f32 %v419_v58, %v415_v13  ;;  %v448_v26 = vadd.f32 %v446_v19, %v442_v17  ;;  %v452_v28 = vmul.f32 %v451_v24, %v2020_v53  ;;  %v453_v29 = vmul.f32 %v451_v24, %v2022_v54  ;;  %s2398_s9 = sld [smem:[#allocation7 + $0x207]] }
  0x92   :  { %v449_v27 = vadd.f32 %v447_v21, %v443_v18  ;;  %v426_v30 = vadd.f32 %v424_v60, %v420_v22  ;;  %v458_v0 = vmul.f32 %v457_v25, %v2033_v4  ;;  %v459_v1 = vmul.f32 %v457_v25, %v2044_v12 }
  0x93   :  { %v427_v31 = vadd.f32 %v425_v61, %v421_v23  ;;  %v454_v39 = vadd.f32 %v452_v28, %v448_v26  ;;  %v463_v41 = vstv %s2260_s1  ;;  %v469_v42 = vstv %s2262_s11  ;;  %s2402_s1 = sld [smem:[#allocation7 + $0x287]] }
  0x94   :  { %v455_v40 = vadd.f32 %v453_v29, %v449_v27  ;;  %v2298_v43 = vmax.f32 %v380_v50, 0.0  ;;  %v2300_v44 = vmax.f32 %v381_v51, 0.0  ;;  %v464_v3 = vmul.f32 %v463_v41, %v2053_v20  ;;  %s2404_s11 = sld [smem:[#allocation7 + $0x307]] }
  0x95   :  { %v465_v46 = vmul.f32 %v463_v41, %v2070_v33  ;;  %v460_v55 = vadd.f32 %v458_v0, %v454_v39  ;;  %v470_v57 = vmul.f32 %v469_v42, %v2072_v34  ;;  %v471_v58 = vmul.f32 %v469_v42, %v2084_v45 }
  0x96   :  { %v461_v56 = vadd.f32 %v459_v1, %v455_v40  ;;  %v432_v60 = vadd.f32 %v430_v7, %v426_v30  ;;  %v433_v61 = vadd.f32 %v431_v8, %v427_v31  ;;  %v475_v62 = vstv %s2272_s6  ;;  %s2416_s6 = sld [smem:[#allocation7 + $0x387]] }
  0x97   :  { %v481_v63 = vstv %s2274_s12  ;;  %v466_v50 = vadd.f32 %v464_v3, %v460_v55  ;;  %v476_v5 = vmul.f32 %v475_v62, %v2086_v2  ;;  %v477_v6 = vmul.f32 %v475_v62, %v2094_v47  ;;  %s2418_s12 = sld [smem:[#allocation7 + $0x8]] }
  0x98   :  { %v467_v51 = vadd.f32 %v465_v46, %v461_v56  ;;  %v482_v9 = vmul.f32 %v481_v63, %v2104_v59  ;;  %v483_v7 = vmul.f32 %v481_v63, %v2122_v16  ;;  %v489_v8 = vstv %s2280_s4  ;;  %s2424_s4 = sld [smem:[#allocation9 + $0x8]] }
  0x99   :  { %v493_v10 = vstv %s2282_s13  ;;  %v472_v11 = vadd.f32 %v470_v57, %v466_v50  ;;  %v490_v14 = vmul.f32 %v489_v8, %v1994_v32  ;;  %v491_v15 = vmul.f32 %v489_v8, %v2000_v36  ;;  %s2426_s13 = sld [smem:[#allocation7 + $0x88]] }
  0x9a   :  { %v473_v13 = vadd.f32 %v471_v58, %v467_v51  ;;  %v497_v17 = vstv %s2286_s14  ;;  %v503_v18 = vstv %s2288_s15  ;;  %v509_v19 = vstv %s2292_s16  ;;  %s2436_s14 = sld [smem:[#allocation7 + $0x108]] }
  0x9b   :  { %v515_v21 = vstv %s2294_s17  ;;  %v478_v22 = vadd.f32 %v476_v5, %v472_v11  ;;  %v494_v24 = vadd.f32 %v493_v10, %v490_v14  ;;  %v495_v25 = vadd.f32 %v493_v10, %v491_v15  ;;  %s2438_s15 = sld [smem:[#allocation7 + $0x188]] }
  0x9c   :  { %v479_v23 = vadd.f32 %v477_v6, %v473_v13  ;;  %v498_v26 = vmul.f32 %v497_v17, %v2002_v37  ;;  %v499_v27 = vmul.f32 %v497_v17, %v2018_v52  ;;  %v504_v28 = vmul.f32 %v503_v18, %v2020_v53  ;;  %s2448_s16 = sld [smem:[#allocation7 + $0x208]] }
  0x9d   :  { %v505_v29 = vmul.f32 %v503_v18, %v2022_v54  ;;  %v2336_v30 = vmax.f32 %v432_v60, 0.0  ;;  %v2338_v31 = vmax.f32 %v433_v61, 0.0  ;;  %v484_v0 = vadd.f32 %v482_v9, %v478_v22  ;;  %s2450_s17 = sld [smem:[#allocation7 + $0x288]] }
  0x9e   :  { %v485_v1 = vadd.f32 %v483_v7, %v479_v23  ;;  %v500_v39 = vadd.f32 %v498_v26, %v494_v24  ;;  %v501_v40 = vadd.f32 %v499_v27, %v495_v25  ;;  %v510_v41 = vmul.f32 %v509_v19, %v2033_v4 }
  0x9f   :  { %v511_v42 = vmul.f32 %v509_v19, %v2044_v12  ;;  %v516_v3 = vmul.f32 %v515_v21, %v2053_v20  ;;  %v517_v46 = vmul.f32 %v515_v21, %v2070_v33  ;;  %v521_v55 = vstv %s2310_s18  ;;  %s2460_s18 = sld [smem:[#allocation7 + $0x308]] }
  0xa0   :  { %v527_v56 = vstv %s2312_s19  ;;  %v506_v57 = vadd.f32 %v504_v28, %v500_v39  ;;  %v507_v58 = vadd.f32 %v505_v29, %v501_v40  ;;  %v522_v60 = vmul.f32 %v521_v55, %v2072_v34  ;;  %s2462_s19 = sld [smem:[#allocation7 + $0x388]] }
  0xa1   :  { %v523_v61 = vmul.f32 %v521_v55, %v2084_v45  ;;  %v528_v62 = vmul.f32 %v527_v56, %v2086_v2  ;;  %v529_v63 = vmul.f32 %v527_v56, %v2094_v47  ;;  %v533_v50 = vstv %s2320_s20  ;;  %s2468_s20 = sld [smem:[#allocation7 + $0x9]] }
  0xa2   :  { %v541_v51 = vstv %s2322_s21  ;;  %v512_v5 = vadd.f32 %v510_v41, %v506_v57  ;;  %v513_v6 = vadd.f32 %v511_v42, %v507_v58  ;;  %v534_v9 = vmul.f32 %v533_v50, %v2104_v59  ;;  %s2470_s21 = sld [smem:[#allocation9 + $0x9]] }
  0xa3   :  { %v535_v7 = vmul.f32 %v533_v50, %v2122_v16  ;;  %v542_v8 = vmul.f32 %v541_v51, %v1994_v32  ;;  %v543_v10 = vmul.f32 %v541_v51, %v2000_v36  ;;  %v545_v11 = vstv %s2328_s22  ;;  %s2474_s22 = sld [smem:[#allocation7 + $0x89]] }
  0xa4   :  { %v549_v13 = vstv %s2330_s5  ;;  %v518_v14 = vadd.f32 %v516_v3, %v512_v5  ;;  %v519_v15 = vadd.f32 %v517_v46, %v513_v6  ;;  %v555_v22 = vstv %s2340_s23  ;;  %s2476_s5 = sld [smem:[#allocation7 + $0x109]] }
  0xa5   :  { %v550_v17 = vmul.f32 %v549_v13, %v2002_v37  ;;  %v551_v18 = vmul.f32 %v549_v13, %v2018_v52  ;;  %v546_v19 = vadd.f32 %v545_v11, %v542_v8  ;;  %v547_v21 = vadd.f32 %v545_v11, %v543_v10  ;;  %s2480_s23 = sld [smem:[#allocation7 + $0x189]] }
  0xa6   :  { %v561_v23 = vstv %s2342_s3  ;;  %v524_v24 = vadd.f32 %v522_v60, %v518_v14  ;;  %v525_v25 = vadd.f32 %v523_v61, %v519_v15  ;;  %v556_v26 = vmul.f32 %v555_v22, %v2020_v53  ;;  %s2482_s3 = sld [smem:[#allocation7 + $0x209]] }
  0xa7   :  { %v557_v27 = vmul.f32 %v555_v22, %v2022_v54  ;;  %v552_v28 = vadd.f32 %v550_v17, %v546_v19  ;;  %v553_v29 = vadd.f32 %v551_v18, %v547_v21  ;;  %v562_v39 = vmul.f32 %v561_v23, %v2033_v4 }
  0xa8   :  { %v563_v40 = vmul.f32 %v561_v23, %v2044_v12  ;;  %v530_v41 = vadd.f32 %v528_v62, %v524_v24  ;;  %v531_v42 = vadd.f32 %v529_v63, %v525_v25  ;;  %v567_v3 = vstv %s2352_s24  ;;  %s2498_s24 = sld [smem:[#allocation7 + $0x289]] }
  0xa9   :  { %v573_v46 = vstv %s2354_s0  ;;  %v558_v55 = vadd.f32 %v556_v26, %v552_v28  ;;  %v559_v56 = vadd.f32 %v557_v27, %v553_v29  ;;  %v568_v57 = vmul.f32 %v567_v3, %v2053_v20  ;;  %s2500_s0 = sld [smem:[#allocation7 + $0x309]] }
  0xaa   :  { %v569_v58 = vmul.f32 %v567_v3, %v2070_v33  ;;  %v2390_v60 = vmax.f32 %v484_v0, 0.0  ;;  %v2392_v61 = vmax.f32 %v485_v1, 0.0  ;;  %v574_v50 = vmul.f32 %v573_v46, %v2072_v34 }
  0xab   :  { %v575_v51 = vmul.f32 %v573_v46, %v2084_v45  ;;  %v564_v62 = vadd.f32 %v562_v39, %v558_v55  ;;  %v565_v63 = vadd.f32 %v563_v40, %v559_v56  ;;  %v579_v5 = vstv %s2366_s25  ;;  %s2508_s25 = sld [smem:[#allocation7 + $0x389]] }
  0xac   :  { %v585_v6 = vstv %s2368_s26  ;;  %v536_v0 = vadd.f32 %v534_v9, %v530_v41  ;;  %v537_v1 = vadd.f32 %v535_v7, %v531_v42  ;;  %v580_v8 = vmul.f32 %v579_v5, %v2086_v2  ;;  %s2510_s26 = sld [smem:[#allocation7 + $0xa]] }
  0xad   :  { %v581_v10 = vmul.f32 %v579_v5, %v2094_v47  ;;  %v570_v11 = vadd.f32 %v568_v57, %v564_v62  ;;  %v571_v13 = vadd.f32 %v569_v58, %v565_v63  ;;  %v586_v14 = vmul.f32 %v585_v6, %v2104_v59 }
  0xae   :  { %v587_v15 = vmul.f32 %v585_v6, %v2122_v16  ;;  %v593_v17 = vstv %s2374_s27  ;;  %v597_v18 = vstv %s2376_s28  ;;  %v601_v19 = vstv %s2380_s29  ;;  %s2516_s27 = sld [smem:[#allocation9 + $0xa]] }
  0xaf   :  { %v607_v21 = vstv %s2382_s30  ;;  %v576_v22 = vadd.f32 %v574_v50, %v570_v11  ;;  %v577_v23 = vadd.f32 %v575_v51, %v571_v13  ;;  %v594_v24 = vmul.f32 %v593_v17, %v1994_v32  ;;  %s2518_s28 = sld [smem:[#allocation7 + $0x8a]] }
  0xb0   :  { %v595_v9 = vmul.f32 %v593_v17, %v2000_v36  ;;  %v602_v7 = vmul.f32 %v601_v19, %v2002_v37  ;;  %v603_v25 = vmul.f32 %v601_v19, %v2018_v52  ;;  %v608_v26 = vmul.f32 %v607_v21, %v2020_v53  ;;  %s2528_s29 = sld [smem:[#allocation7 + $0x10a]] }
  0xb1   :  { %v609_v27 = vmul.f32 %v607_v21, %v2022_v54  ;;  %v582_v28 = vadd.f32 %v580_v8, %v576_v22  ;;  %v583_v29 = vadd.f32 %v581_v10, %v577_v23  ;;  %v598_v39 = vadd.f32 %v597_v18, %v594_v24  ;;  %s2530_s30 = sld [smem:[#allocation7 + $0x18a]] }
  0xb2   :  { %v599_v40 = vadd.f32 %v597_v18, %v595_v9  ;;  %v2428_v41 = vmax.f32 %v536_v0, 0.0  ;;  %v2430_v42 = vmax.f32 %v537_v1, 0.0  ;;  %v613_v3 = vstv %s2396_s8  ;;  %s2540_s8 = sld [smem:[#allocation7 + $0x20a]] }
  0xb3   :  { %v619_v46 = vstv %s2398_s9  ;;  %v604_v55 = vadd.f32 %v602_v7, %v598_v39  ;;  %v625_v57 = vstv %s2402_s1  ;;  %v631_v58 = vstv %s2404_s11  ;;  %s2542_s9 = sld [smem:[#allocation7 + $0x28a]] }
  0xb4   :  { %v605_v56 = vadd.f32 %v603_v25, %v599_v40  ;;  %v588_v50 = vadd.f32 %v586_v14, %v582_v28  ;;  %v589_v51 = vadd.f32 %v587_v15, %v583_v29  ;;  %v614_v62 = vmul.f32 %v613_v3, %v2033_v4  ;;  %s2554_s1 = sld [smem:[#allocation7 + $0x30a]] }
  0xb5   :  { %v615_v63 = vmul.f32 %v613_v3, %v2044_v12  ;;  %v610_v5 = vadd.f32 %v608_v26, %v604_v55  ;;  %v620_v0 = vmul.f32 %v619_v46, %v2053_v20  ;;  %v621_v1 = vmul.f32 %v619_v46, %v2070_v33  ;;  %s2556_s11 = sld [smem:[#allocation7 + $0x38a]] }
  0xb6   :  { %v611_v6 = vadd.f32 %v609_v27, %v605_v56  ;;  %v626_v8 = vmul.f32 %v625_v57, %v2072_v34  ;;  %v627_v10 = vmul.f32 %v625_v57, %v2084_v45  ;;  %v632_v11 = vmul.f32 %v631_v58, %v2086_v2 }
  0xb7   :  { %v633_v13 = vmul.f32 %v631_v58, %v2094_v47  ;;  %v616_v14 = vadd.f32 %v614_v62, %v610_v5  ;;  %v637_v17 = vstv %s2416_s6  ;;  %v645_v18 = vstv %s2418_s12  ;;  %s2562_s6 = sld [smem:[#allocation7 + $0xb]] }
  0xb8   :  { %v617_v15 = vadd.f32 %v615_v63, %v611_v6  ;;  %v638_v19 = vmul.f32 %v637_v17, %v2104_v59  ;;  %v639_v21 = vmul.f32 %v637_v17, %v2122_v16  ;;  %v646_v22 = vmul.f32 %v645_v18, %v1994_v32  ;;  %s2564_s12 = sld [smem:[#allocation9 + $0xb]] }
  0xb9   :  { %v647_v23 = vmul.f32 %v645_v18, %v2000_v36  ;;  %v622_v24 = vadd.f32 %v620_v0, %v616_v14  ;;  %v649_v7 = vstv %s2424_s4  ;;  %v653_v25 = vstv %s2426_s13  ;;  %s2568_s4 = sld [smem:[#allocation7 + $0x8b]] }
  0xba   :  { %v623_v9 = vadd.f32 %v621_v1, %v617_v15  ;;  %v650_v26 = vadd.f32 %v649_v7, %v646_v22  ;;  %v654_v28 = vmul.f32 %v653_v25, %v2002_v37  ;;  %v655_v29 = vmul.f32 %v653_v25, %v2018_v52  ;;  %s2570_s13 = sld [smem:[#allocation7 + $0x10b]] }
  0xbb   :  { %v651_v27 = vadd.f32 %v649_v7, %v647_v23  ;;  %v628_v39 = vadd.f32 %v626_v8, %v622_v24  ;;  %v659_v3 = vstv %s2436_s14  ;;  %v665_v46 = vstv %s2438_s15  ;;  %s2584_s14 = sld [smem:[#allocation7 + $0x18b]] }
  0xbc   :  { %v629_v40 = vadd.f32 %v627_v10, %v623_v9  ;;  %v656_v55 = vadd.f32 %v654_v28, %v650_v26  ;;  %v660_v57 = vmul.f32 %v659_v3, %v2020_v53  ;;  %v661_v58 = vmul.f32 %v659_v3, %v2022_v54  ;;  %s2586_s15 = sld [smem:[#allocation7 + $0x20b]] }
  0xbd   :  { %v657_v56 = vadd.f32 %v655_v29, %v651_v27  ;;  %v634_v62 = vadd.f32 %v632_v11, %v628_v39  ;;  %v666_v5 = vmul.f32 %v665_v46, %v2033_v4  ;;  %v667_v6 = vmul.f32 %v665_v46, %v2044_v12 }
  0xbe   :  { %v635_v63 = vadd.f32 %v633_v13, %v629_v40  ;;  %v662_v0 = vadd.f32 %v660_v57, %v656_v55  ;;  %v671_v8 = vstv %s2448_s16  ;;  %v677_v10 = vstv %s2450_s17  ;;  %s2590_s16 = sld [smem:[#allocation7 + $0x28b]] }
  0xbf   :  { %v663_v1 = vadd.f32 %v661_v58, %v657_v56  ;;  %v2486_v14 = vmax.f32 %v588_v50, 0.0  ;;  %v2488_v15 = vmax.f32 %v589_v51, 0.0  ;;  %v672_v11 = vmul.f32 %v671_v8, %v2053_v20  ;;  %s2592_s17 = sld [smem:[#allocation7 + $0x30b]] }
  0xc0   :  { %v673_v13 = vmul.f32 %v671_v8, %v2070_v33  ;;  %v668_v17 = vadd.f32 %v666_v5, %v662_v0  ;;  %v678_v22 = vmul.f32 %v677_v10, %v2072_v34  ;;  %v679_v23 = vmul.f32 %v677_v10, %v2084_v45 }
  0xc1   :  { %v669_v18 = vadd.f32 %v667_v6, %v663_v1  ;;  %v640_v24 = vadd.f32 %v638_v19, %v634_v62  ;;  %v641_v9 = vadd.f32 %v639_v21, %v635_v63  ;;  %v683_v7 = vstv %s2460_s18  ;;  %s2604_s18 = sld [smem:[#allocation7 + $0x38b]] }
  0xc2   :  { %v689_v25 = vstv %s2462_s19  ;;  %v674_v50 = vadd.f32 %v672_v11, %v668_v17  ;;  %v684_v26 = vmul.f32 %v683_v7, %v2086_v2  ;;  %v685_v27 = vmul.f32 %v683_v7, %v2094_v47  ;;  %s2606_s19 = sld [smem:[#allocation7 + $0xc]] }
  0xc3   :  { %v675_v51 = vadd.f32 %v673_v13, %v669_v18  ;;  %v690_v28 = vmul.f32 %v689_v25, %v2104_v59  ;;  %v691_v19 = vmul.f32 %v689_v25, %v2122_v16  ;;  %v697_v21 = vstv %s2468_s20  ;;  %s2612_s20 = sld [smem:[#allocation9 + $0xc]] }
  0xc4   :  { %v701_v29 = vstv %s2470_s21  ;;  %v680_v39 = vadd.f32 %v678_v22, %v674_v50  ;;  %v698_v3 = vmul.f32 %v697_v21, %v1994_v32  ;;  %v699_v46 = vmul.f32 %v697_v21, %v2000_v36  ;;  %s2614_s21 = sld [smem:[#allocation7 + $0x8c]] }
  0xc5   :  { %v681_v40 = vadd.f32 %v679_v23, %v675_v51  ;;  %v705_v55 = vstv %s2474_s22  ;;  %v711_v56 = vstv %s2476_s5  ;;  %v717_v57 = vstv %s2480_s23  ;;  %s2624_s22 = sld [smem:[#allocation7 + $0x10c]] }
  0xc6   :  { %v723_v58 = vstv %s2482_s3  ;;  %v686_v62 = vadd.f32 %v684_v26, %v680_v39  ;;  %v702_v5 = vadd.f32 %v701_v29, %v698_v3  ;;  %v703_v6 = vadd.f32 %v701_v29, %v699_v46  ;;  %s2626_s5 = sld [smem:[#allocation7 + $0x18c]] }
  0xc7   :  { %v687_v63 = vadd.f32 %v685_v27, %v681_v40  ;;  %v706_v0 = vmul.f32 %v705_v55, %v2002_v37  ;;  %v707_v1 = vmul.f32 %v705_v55, %v2018_v52  ;;  %v712_v8 = vmul.f32 %v711_v56, %v2020_v53  ;;  %s2636_s23 = sld [smem:[#allocation7 + $0x20c]] }
  0xc8   :  { %v713_v10 = vmul.f32 %v711_v56, %v2022_v54  ;;  %v2524_v11 = vmax.f32 %v640_v24, 0.0  ;;  %v2526_v13 = vmax.f32 %v641_v9, 0.0  ;;  %v692_v17 = vadd.f32 %v690_v28, %v686_v62  ;;  %s2638_s3 = sld [smem:[#allocation7 + $0x28c]] }
  0xc9   :  { %v693_v18 = vadd.f32 %v691_v19, %v687_v63  ;;  %v708_v22 = vadd.f32 %v706_v0, %v702_v5  ;;  %v709_v23 = vadd.f32 %v707_v1, %v703_v6  ;;  %v718_v7 = vmul.f32 %v717_v57, %v2033_v4 }
  0xca   :  { %v719_v25 = vmul.f32 %v717_v57, %v2044_v12  ;;  %v724_v50 = vmul.f32 %v723_v58, %v2053_v20  ;;  %v725_v24 = vmul.f32 %v723_v58, %v2070_v33  ;;  %v729_v9 = vstv %s2498_s24  ;;  %s2648_s24 = sld [smem:[#allocation7 + $0x30c]] }
  0xcb   :  { %v735_v51 = vstv %s2500_s0  ;;  %v714_v26 = vadd.f32 %v712_v8, %v708_v22  ;;  %v715_v27 = vadd.f32 %v713_v10, %v709_v23  ;;  %v730_v28 = vmul.f32 %v729_v9, %v2072_v34  ;;  %s2650_s0 = sld [smem:[#allocation7 + $0x38c]] }
  0xcc   :  { %v731_v19 = vmul.f32 %v729_v9, %v2084_v45  ;;  %v736_v21 = vmul.f32 %v735_v51, %v2086_v2  ;;  %v737_v29 = vmul.f32 %v735_v51, %v2094_v47  ;;  %v741_v39 = vstv %s2508_s25  ;;  %s2656_s25 = sld [smem:[#allocation7 + $0xd]] }
  0xcd   :  { %v749_v40 = vstv %s2510_s26  ;;  %v720_v3 = vadd.f32 %v718_v7, %v714_v26  ;;  %v721_v46 = vadd.f32 %v719_v25, %v715_v27  ;;  %v742_v55 = vmul.f32 %v741_v39, %v2104_v59  ;;  %s2658_s26 = sld [smem:[#allocation9 + $0xd]] }
  0xce   :  { %v743_v56 = vmul.f32 %v741_v39, %v2122_v16  ;;  %v750_v57 = vmul.f32 %v749_v40, %v1994_v32  ;;  %v751_v58 = vmul.f32 %v749_v40, %v2000_v36  ;;  %v753_v62 = vstv %s2516_s27  ;;  %s2662_s27 = sld [smem:[#allocation7 + $0x8d]] }
  0xcf   :  { %v757_v63 = vstv %s2518_s28  ;;  %v726_v5 = vadd.f32 %v724_v50, %v720_v3  ;;  %v727_v6 = vadd.f32 %v725_v24, %v721_v46  ;;  %v763_v22 = vstv %s2528_s29  ;;  %s2664_s28 = sld [smem:[#allocation7 + $0x10d]] }
  0xd0   :  { %v758_v0 = vmul.f32 %v757_v63, %v2002_v37  ;;  %v759_v1 = vmul.f32 %v757_v63, %v2018_v52  ;;  %v754_v8 = vadd.f32 %v753_v62, %v750_v57  ;;  %v755_v10 = vadd.f32 %v753_v62, %v751_v58  ;;  %s2668_s29 = sld [smem:[#allocation7 + $0x18d]] }
  0xd1   :  { %v769_v23 = vstv %s2530_s30  ;;  %v732_v7 = vadd.f32 %v730_v28, %v726_v5  ;;  %v733_v25 = vadd.f32 %v731_v19, %v727_v6  ;;  %v764_v9 = vmul.f32 %v763_v22, %v2020_v53  ;;  %s2670_s30 = sld [smem:[#allocation7 + $0x20d]] }
  0xd2   :  { %v765_v50 = vmul.f32 %v763_v22, %v2022_v54  ;;  %v760_v24 = vadd.f32 %v758_v0, %v754_v8  ;;  %v761_v51 = vadd.f32 %v759_v1, %v755_v10  ;;  %v770_v26 = vmul.f32 %v769_v23, %v2033_v4 }
  0xd3   :  { %v771_v27 = vmul.f32 %v769_v23, %v2044_v12  ;;  %v738_v39 = vadd.f32 %v736_v21, %v732_v7  ;;  %v739_v40 = vadd.f32 %v737_v29, %v733_v25  ;;  %v775_v28 = vstv %s2540_s8  ;;  %s2686_s8 = sld [smem:[#allocation7 + $0x28d]] }
  0xd4   :  { %v781_v19 = vstv %s2542_s9  ;;  %v766_v3 = vadd.f32 %v764_v9, %v760_v24  ;;  %v767_v46 = vadd.f32 %v765_v50, %v761_v51  ;;  %v776_v57 = vmul.f32 %v775_v28, %v2053_v20  ;;  %s2688_s9 = sld [smem:[#allocation7 + $0x30d]] }
  0xd5   :  { %v777_v58 = vmul.f32 %v775_v28, %v2070_v33  ;;  %v2578_v62 = vmax.f32 %v692_v17, 0.0  ;;  %v2580_v63 = vmax.f32 %v693_v18, 0.0  ;;  %v782_v5 = vmul.f32 %v781_v19, %v2072_v34 }
  0xd6   :  { %v783_v6 = vmul.f32 %v781_v19, %v2084_v45  ;;  %v772_v21 = vadd.f32 %v770_v26, %v766_v3  ;;  %v773_v29 = vadd.f32 %v771_v27, %v767_v46  ;;  %v787_v0 = vstv %s2554_s1  ;;  %s2696_s1 = sld [smem:[#allocation7 + $0x38d]] }
  0xd7   :  { %v793_v1 = vstv %s2556_s11  ;;  %v744_v17 = vadd.f32 %v742_v55, %v738_v39  ;;  %v745_v18 = vadd.f32 %v743_v56, %v739_v40  ;;  %v788_v8 = vmul.f32 %v787_v0, %v2086_v2  ;;  %s2698_s11 = sld [smem:[#allocation7 + $0xe]] }
  0xd8   :  { %v789_v10 = vmul.f32 %v787_v0, %v2094_v47  ;;  %v778_v22 = vadd.f32 %v776_v57, %v772_v21  ;;  %v779_v23 = vadd.f32 %v777_v58, %v773_v29  ;;  %v794_v7 = vmul.f32 %v793_v1, %v2104_v59 }
  0xd9   :  { %v795_v25 = vmul.f32 %v793_v1, %v2122_v16  ;;  %v801_v9 = vstv %s2562_s6  ;;  %v805_v50 = vstv %s2564_s12  ;;  %v809_v24 = vstv %s2568_s4  ;;  %s2704_s6 = sld [smem:[#allocation9 + $0xe]] }
  0xda   :  { %v815_v51 = vstv %s2570_s13  ;;  %v784_v26 = vadd.f32 %v782_v5, %v778_v22  ;;  %v785_v27 = vadd.f32 %v783_v6, %v779_v23  ;;  %v802_v28 = vmul.f32 %v801_v9, %v1994_v32  ;;  %s2706_s12 = sld [smem:[#allocation7 + $0x8e]] }
  0xdb   :  { %v803_v55 = vmul.f32 %v801_v9, %v2000_v36  ;;  %v810_v56 = vmul.f32 %v809_v24, %v2002_v37  ;;  %v811_v39 = vmul.f32 %v809_v24, %v2018_v52  ;;  %v816_v40 = vmul.f32 %v815_v51, %v2020_v53  ;;  %s2716_s4 = sld [smem:[#allocation7 + $0x10e]] }
  0xdc   :  { %v817_v19 = vmul.f32 %v815_v51, %v2022_v54  ;;  %v790_v3 = vadd.f32 %v788_v8, %v784_v26  ;;  %v791_v46 = vadd.f32 %v789_v10, %v785_v27  ;;  %v806_v57 = vadd.f32 %v805_v50, %v802_v28  ;;  %s2718_s13 = sld [smem:[#allocation7 + $0x18e]] }
  0xdd   :  { %v807_v58 = vadd.f32 %v805_v50, %v803_v55  ;;  %v2616_v5 = vmax.f32 %v744_v17, 0.0  ;;  %v2618_v6 = vmax.f32 %v745_v18, 0.0  ;;  %v821_v21 = vstv %s2584_s14  ;;  %s2728_s14 = sld [smem:[#allocation7 + $0x20e]] }
  0xde   :  { %v827_v29 = vstv %s2586_s15  ;;  %v812_v0 = vadd.f32 %v810_v56, %v806_v57  ;;  %v833_v22 = vstv %s2590_s16  ;;  %v839_v23 = vstv %s2592_s17  ;;  %s2730_s15 = sld [smem:[#allocation7 + $0x28e]] }
  0xdf   :  { %v813_v1 = vadd.f32 %v811_v39, %v807_v58  ;;  %v796_v8 = vadd.f32 %v794_v7, %v790_v3  ;;  %v797_v10 = vadd.f32 %v795_v25, %v791_v46  ;;  %v822_v9 = vmul.f32 %v821_v21, %v2033_v4  ;;  %s2742_s16 = sld [smem:[#allocation7 + $0x30e]] }
  0xe0   :  { %v823_v17 = vmul.f32 %v821_v21, %v2044_v12  ;;  %v818_v18 = vadd.f32 %v816_v40, %v812_v0  ;;  %v828_v24 = vmul.f32 %v827_v29, %v2053_v20  ;;  %v829_v51 = vmul.f32 %v827_v29, %v2070_v33  ;;  %s2744_s17 = sld [smem:[#allocation7 + $0x38e]] }
  0xe1   :  { %v819_v50 = vadd.f32 %v817_v19, %v813_v1  ;;  %v834_v26 = vmul.f32 %v833_v22, %v2072_v34  ;;  %v835_v27 = vmul.f32 %v833_v22, %v2084_v45  ;;  %v840_v7 = vmul.f32 %v839_v23, %v2086_v2 }
  0xe2   :  { %v841_v25 = vmul.f32 %v839_v23, %v2094_v47  ;;  %v824_v28 = vadd.f32 %v822_v9, %v818_v18  ;;  %v845_v56 = vstv %s2604_s18  ;;  %v853_v39 = vstv %s2606_s19  ;;  %s2750_s18 = sld [smem:[#allocation7 + $0xf]] }
  0xe3   :  { %v825_v55 = vadd.f32 %v823_v17, %v819_v50  ;;  %v846_v40 = vmul.f32 %v845_v56, %v2104_v59  ;;  %v847_v19 = vmul.f32 %v845_v56, %v2122_v16  ;;  %v854_v3 = vmul.f32 %v853_v39, %v1994_v32  ;;  %s2752_s19 = sld [smem:[#allocation9 + $0xf]] }
  0xe4   :  { %v855_v46 = vmul.f32 %v853_v39, %v2000_v36  ;;  %v830_v57 = vadd.f32 %v828_v24, %v824_v28  ;;  %v857_v21 = vstv %s2612_s20  ;;  %v861_v29 = vstv %s2614_s21  ;;  %s2756_s20 = sld [smem:[#allocation7 + $0x8f]] }
  0xe5   :  { %v831_v58 = vadd.f32 %v829_v51, %v825_v55  ;;  %v858_v0 = vadd.f32 %v857_v21, %v854_v3  ;;  %v862_v22 = vmul.f32 %v861_v29, %v2002_v37  ;;  %v863_v23 = vmul.f32 %v861_v29, %v2018_v52  ;;  %s2758_s21 = sld [smem:[#allocation7 + $0x10f]] }
  0xe6   :  { %v859_v1 = vadd.f32 %v857_v21, %v855_v46  ;;  %v836_v9 = vadd.f32 %v834_v26, %v830_v57  ;;  %v867_v18 = vstv %s2624_s22  ;;  %v873_v50 = vstv %s2626_s5  ;;  %s2772_s22 = sld [smem:[#allocation7 + $0x18f]] }
  0xe7   :  { %v837_v17 = vadd.f32 %v835_v27, %v831_v58  ;;  %v864_v24 = vadd.f32 %v862_v22, %v858_v0  ;;  %v868_v28 = vmul.f32 %v867_v18, %v2020_v53  ;;  %v869_v55 = vmul.f32 %v867_v18, %v2022_v54  ;;  %s2774_s5 = sld [smem:[#allocation7 + $0x20f]] }
  0xe8   :  { %v865_v51 = vadd.f32 %v863_v23, %v859_v1  ;;  %v842_v26 = vadd.f32 %v840_v7, %v836_v9  ;;  %v874_v56 = vmul.f32 %v873_v50, %v2033_v4  ;;  %v875_v39 = vmul.f32 %v873_v50, %v2044_v12 }
  0xe9   :  { %v843_v27 = vadd.f32 %v841_v25, %v837_v17  ;;  %v870_v3 = vadd.f32 %v868_v28, %v864_v24  ;;  %v879_v57 = vstv %s2636_s23  ;;  %v885_v58 = vstv %s2638_s3  ;;  %s2778_s23 = sld [smem:[#allocation7 + $0x28f]] }
  0xea   :  { %v871_v46 = vadd.f32 %v869_v55, %v865_v51  ;;  %v2674_v21 = vmax.f32 %v796_v8, 0.0  ;;  %v2676_v29 = vmax.f32 %v797_v10, 0.0  ;;  %v880_v7 = vmul.f32 %v879_v57, %v2053_v20  ;;  %s2780_s3 = sld [smem:[#allocation7 + $0x30f]] }
  0xeb   :  { %v881_v25 = vmul.f32 %v879_v57, %v2070_v33  ;;  %v876_v0 = vadd.f32 %v874_v56, %v870_v3  ;;  %v886_v22 = vmul.f32 %v885_v58, %v2072_v34  ;;  %v887_v23 = vmul.f32 %v885_v58, %v2084_v45 }
  0xec   :  { %3179 = vst [vmem:[#allocation21_spill] sm:$0xff] %v2674_v21  ;;  %3180 = vst [vmem:[#allocation22_spill] sm:$0xff] %v2676_v29  ;;  %v877_v1 = vadd.f32 %v875_v39, %v871_v46  ;;  %v848_v9 = vadd.f32 %v846_v40, %v842_v26  ;;  %v849_v17 = vadd.f32 %v847_v19, %v843_v27  ;;  %v891_v18 = vstv %s2648_s24  ;;  %s2792_s24 = sld [smem:[#allocation7 + $0x38f]] }
  0xed   :  { %v897_v50 = vstv %s2650_s0  ;;  %v882_v8 = vadd.f32 %v880_v7, %v876_v0  ;;  %v892_v24 = vmul.f32 %v891_v18, %v2086_v2  ;;  %v893_v51 = vmul.f32 %v891_v18, %v2094_v47  ;;  %s2794_s0 = sld [smem:[#allocation11]] }
  0xee   :  { %v883_v10 = vadd.f32 %v881_v25, %v877_v1  ;;  %v898_v28 = vmul.f32 %v897_v50, %v2104_v59  ;;  %v899_v40 = vmul.f32 %v897_v50, %v2122_v16  ;;  %v905_v19 = vstv %s2656_s25  ;;  %s2800_s25 = sld [smem:[#allocation12]] }
  0xef   :  { %v909_v55 = vstv %s2658_s26  ;;  %v888_v26 = vadd.f32 %v886_v22, %v882_v8  ;;  %v906_v56 = vmul.f32 %v905_v19, %v1994_v32  ;;  %v907_v39 = vmul.f32 %v905_v19, %v2000_v36  ;;  %s2802_s26 = sld [smem:[#allocation11 + $0x80]] }
  0xf0   :  { %v889_v27 = vadd.f32 %v887_v23, %v883_v10  ;;  %v913_v3 = vstv %s2662_s27  ;;  %v919_v46 = vstv %s2664_s28  ;;  %v925_v57 = vstv %s2668_s29  ;;  %s2812_s27 = sld [smem:[#allocation11 + $0x100]] }
  0xf1   :  { %v931_v58 = vstv %s2670_s30  ;;  %v894_v7 = vadd.f32 %v892_v24, %v888_v26  ;;  %v910_v0 = vadd.f32 %v909_v55, %v906_v56  ;;  %v911_v1 = vadd.f32 %v909_v55, %v907_v39  ;;  %s2814_s28 = sld [smem:[#allocation11 + $0x180]] }
  0xf2   :  { %v895_v25 = vadd.f32 %v893_v51, %v889_v27  ;;  %v914_v22 = vmul.f32 %v913_v3, %v2002_v37  ;;  %v915_v23 = vmul.f32 %v913_v3, %v2018_v52  ;;  %v920_v18 = vmul.f32 %v919_v46, %v2020_v53  ;;  %s2824_s29 = sld [smem:[#allocation11 + $0x200]] }
  0xf3   :  { %v921_v50 = vmul.f32 %v919_v46, %v2022_v54  ;;  %v2712_v8 = vmax.f32 %v848_v9, 0.0  ;;  %v2714_v10 = vmax.f32 %v849_v17, 0.0  ;;  %v900_v24 = vadd.f32 %v898_v28, %v894_v7  ;;  %s2826_s30 = sld [smem:[#allocation11 + $0x280]] }
  0xf4   :  { %v901_v51 = vadd.f32 %v899_v40, %v895_v25  ;;  %v916_v19 = vadd.f32 %v914_v22, %v910_v0  ;;  %v917_v55 = vadd.f32 %v915_v23, %v911_v1  ;;  %v926_v26 = vmul.f32 %v925_v57, %v2033_v4 }
  0xf5   :  { %3181 = vst [vmem:[#allocation23_spill] sm:$0xff] %v2712_v8  ;;  %3182 = vst [vmem:[#allocation24_spill] sm:$0xff] %v2714_v10  ;;  %v927_v27 = vmul.f32 %v925_v57, %v2044_v12  ;;  %v932_v56 = vmul.f32 %v931_v58, %v2053_v20  ;;  %v933_v9 = vmul.f32 %v931_v58, %v2070_v33  ;;  %v937_v17 = vstv %s2686_s8  ;;  %s2836_s8 = sld [smem:[#allocation11 + $0x300]] }
  0xf6   :  { %v943_v39 = vstv %s2688_s9  ;;  %v922_v28 = vadd.f32 %v920_v18, %v916_v19  ;;  %v923_v40 = vadd.f32 %v921_v50, %v917_v55  ;;  %v938_v3 = vmul.f32 %v937_v17, %v2072_v34  ;;  %s2838_s9 = sld [smem:[#allocation11 + $0x380]] }
  0xf7   :  { %v939_v46 = vmul.f32 %v937_v17, %v2084_v45  ;;  %v944_v57 = vmul.f32 %v943_v39, %v2086_v2  ;;  %v945_v7 = vmul.f32 %v943_v39, %v2094_v47  ;;  %v949_v25 = vstv %s2696_s1  ;;  %s2844_s1 = sld [smem:[#allocation11 + $0x400]] }
  0xf8   :  { %v957_v58 = vstv %s2698_s11  ;;  %v928_v0 = vadd.f32 %v926_v26, %v922_v28  ;;  %v929_v1 = vadd.f32 %v927_v27, %v923_v40  ;;  %v950_v22 = vmul.f32 %v949_v25, %v2104_v59  ;;  %s2846_s11 = sld [smem:[#allocation11 + $0x480]] }
  0xf9   :  { %v951_v23 = vmul.f32 %v949_v25, %v2122_v16  ;;  %v958_v18 = vmul.f32 %v957_v58, %v1994_v32  ;;  %v959_v50 = vmul.f32 %v957_v58, %v2000_v36  ;;  %v961_v19 = vstv %s2704_s6  ;;  %s2852_s6 = sld [smem:[#allocation11 + $0x500]] }
  0xfa   :  { %v965_v55 = vstv %s2706_s12  ;;  %v934_v17 = vadd.f32 %v932_v56, %v928_v0  ;;  %v935_v39 = vadd.f32 %v933_v9, %v929_v1  ;;  %v971_v10 = vstv %s2716_s4  ;;  %s2854_s12 = sld [smem:[#allocation11 + $0x580]] }
  0xfb   :  { %v966_v26 = vmul.f32 %v965_v55, %v2002_v37  ;;  %v967_v27 = vmul.f32 %v965_v55, %v2018_v52  ;;  %v962_v28 = vadd.f32 %v961_v19, %v958_v18  ;;  %v963_v40 = vadd.f32 %v961_v19, %v959_v50  ;;  %s2860_s4 = sld [smem:[#allocation11 + $0x600]] }
  0xfc   :  { %v977_v25 = vstv %s2718_s13  ;;  %v940_v58 = vadd.f32 %v938_v3, %v934_v17  ;;  %v941_v8 = vadd.f32 %v939_v46, %v935_v39  ;;  %v972_v29 = vmul.f32 %v971_v10, %v2020_v53  ;;  %s2862_s13 = sld [smem:[#allocation11 + $0x680]] }
  0xfd   :  { %v973_v56 = vmul.f32 %v971_v10, %v2022_v54  ;;  %v968_v9 = vadd.f32 %v966_v26, %v962_v28  ;;  %v969_v0 = vadd.f32 %v967_v27, %v963_v40  ;;  %v978_v1 = vmul.f32 %v977_v25, %v2033_v4 }
  0xfe   :  { %v979_v18 = vmul.f32 %v977_v25, %v2044_v12  ;;  %v946_v50 = vadd.f32 %v944_v57, %v940_v58  ;;  %v947_v19 = vadd.f32 %v945_v7, %v941_v8  ;;  %v983_v3 = vstv %s2728_s14  ;;  %s2872_s14 = sld [smem:[#allocation11 + $0x700]] }
  0xff   :  { %v989_v46 = vstv %s2730_s15  ;;  %v974_v55 = vadd.f32 %v972_v29, %v968_v9  ;;  %v975_v17 = vadd.f32 %v973_v56, %v969_v0  ;;  %v984_v10 = vmul.f32 %v983_v3, %v2053_v20  ;;  %s2876_s15 = sld [smem:[#allocation11 + $0x780]] }
 0x100   :  { %v985_v39 = vmul.f32 %v983_v3, %v2070_v33  ;;  %v2766_v21 = vmax.f32 %v900_v24, 0.0  ;;  %v2768_v26 = vmax.f32 %v901_v51, 0.0  ;;  %v990_v27 = vmul.f32 %v989_v46, %v2072_v34 }
 0x101   :  { %v991_v28 = vmul.f32 %v989_v46, %v2084_v45  ;;  %v980_v29 = vadd.f32 %v978_v1, %v974_v55  ;;  %v981_v8 = vadd.f32 %v979_v18, %v975_v17  ;;  %v995_v57 = vstv %s2742_s16  ;;  %s2884_s16 = sld [smem:[#allocation11 + $0x1]] }
 0x102   :  { %3183 = vst [vmem:[#allocation25_spill] sm:$0xff] %v2768_v26  ;;  %v1001_v7 = vstv %s2744_s17  ;;  %v952_v24 = vadd.f32 %v950_v22, %v946_v50  ;;  %v953_v51 = vadd.f32 %v951_v23, %v947_v19  ;;  %v996_v40 = vmul.f32 %v995_v57, %v2086_v2  ;;  %s2886_s17 = sld [smem:[#allocation12 + $0x1]] }
 0x103   :  { %v997_v25 = vmul.f32 %v995_v57, %v2094_v47  ;;  %v986_v58 = vadd.f32 %v984_v10, %v980_v29  ;;  %v987_v56 = vadd.f32 %v985_v39, %v981_v8  ;;  %v1002_v9 = vmul.f32 %v1001_v7, %v2104_v59 }
 0x104   :  { %v1003_v0 = vmul.f32 %v1001_v7, %v2122_v16  ;;  %v1009_v1 = vstv %s2750_s18  ;;  %v1013_v18 = vstv %s2752_s19  ;;  %v1017_v3 = vstv %s2756_s20  ;;  %s2890_s18 = sld [smem:[#allocation11 + $0x81]] }
 0x105   :  { %v1023_v46 = vstv %s2758_s21  ;;  %v992_v55 = vadd.f32 %v990_v27, %v986_v58  ;;  %v993_v17 = vadd.f32 %v991_v28, %v987_v56  ;;  %v1010_v26 = vmul.f32 %v1009_v1, %v1994_v32  ;;  %s2896_s19 = sld [smem:[#allocation11 + $0x101]] }
 0x106   :  { %v1011_v22 = vmul.f32 %v1009_v1, %v2000_v36  ;;  %v1018_v23 = vmul.f32 %v1017_v3, %v2002_v37  ;;  %v1019_v50 = vmul.f32 %v1017_v3, %v2018_v52  ;;  %v1024_v19 = vmul.f32 %v1023_v46, %v2020_v53  ;;  %s2898_s20 = sld [smem:[#allocation11 + $0x181]] }
 0x107   :  { %v1025_v10 = vmul.f32 %v1023_v46, %v2022_v54  ;;  %v998_v39 = vadd.f32 %v996_v40, %v992_v55  ;;  %v999_v32 = vadd.f32 %v997_v25, %v993_v17  ;;  %v1014_v27 = vadd.f32 %v1013_v18, %v1010_v26  ;;  %s2908_s21 = sld [smem:[#allocation11 + $0x201]] }
 0x108   :  { %v1015_v28 = vadd.f32 %v1013_v18, %v1011_v22  ;;  %v2804_v36 = vmax.f32 %v952_v24, 0.0  ;;  %v2806_v29 = vmax.f32 %v953_v51, 0.0  ;;  %v1029_v37 = vstv %s2772_s22  ;;  %s2916_s22 = sld [smem:[#allocation11 + $0x281]] }
 0x109   :  { %v1035_v8 = vstv %s2774_s5  ;;  %v1020_v52 = vadd.f32 %v1018_v23, %v1014_v27  ;;  %v1041_v7 = vstv %s2778_s23  ;;  %v1047_v53 = vstv %s2780_s3  ;;  %s2918_s5 = sld [smem:[#allocation11 + $0x301]] }
 0x10a   :  { %v1021_v57 = vadd.f32 %v1019_v50, %v1015_v28  ;;  %v1004_v54 = vadd.f32 %v1002_v9, %v998_v39  ;;  %v1005_v26 = vadd.f32 %v1003_v0, %v999_v32  ;;  %v1030_v40 = vmul.f32 %v1029_v37, %v2033_v4  ;;  %s2930_s23 = sld [smem:[#allocation11 + $0x381]] }
 0x10b   :  { %v1031_v24 = vmul.f32 %v1029_v37, %v2044_v12  ;;  %v1026_v51 = vadd.f32 %v1024_v19, %v1020_v52  ;;  %v1036_v58 = vmul.f32 %v1035_v8, %v2053_v20  ;;  %v1037_v56 = vmul.f32 %v1035_v8, %v2070_v33  ;;  %s2932_s3 = sld [smem:[#allocation11 + $0x401]] }
 0x10c   :  { %v1027_v25 = vadd.f32 %v1025_v10, %v1021_v57  ;;  %v1042_v1 = vmul.f32 %v1041_v7, %v2072_v34  ;;  %v1043_v18 = vmul.f32 %v1041_v7, %v2084_v45  ;;  %v1048_v9 = vmul.f32 %v1047_v53, %v2086_v2 }
 0x10d   :  { %v1049_v0 = vmul.f32 %v1047_v53, %v2094_v47  ;;  %v1032_v4 = vadd.f32 %v1030_v40, %v1026_v51  ;;  %v1053_v3 = vstv %s2792_s24  ;;  %v1061_v20 = vstv %s2794_s0  ;;  %s2940_s24 = sld [smem:[#allocation11 + $0x481]] }
 0x10e   :  { %v1033_v12 = vadd.f32 %v1031_v24, %v1027_v25  ;;  %v1054_v33 = vmul.f32 %v1053_v3, %v2104_v59  ;;  %v1055_v34 = vmul.f32 %v1053_v3, %v2122_v16  ;;  %v1062_v45 = vmul.f32 %v1061_v20, %v2204_v48  ;;  %s2942_s0 = sld [smem:[#allocation11 + $0x501]] }
 0x10f   :  { %v1063_v2 = vmul.f32 %v1061_v20, %v2206_v49  ;;  %v1038_v46 = vadd.f32 %v1036_v58, %v1032_v4  ;;  %v1065_v55 = vstv %s2800_s25  ;;  %v1069_v17 = vstv %s2802_s26  ;;  %s2948_s25 = sld [smem:[#allocation11 + $0x581]] }
 0x110   :  { %v1039_v47 = vadd.f32 %v1037_v56, %v1033_v12  ;;  %v1066_v22 = vadd.f32 %v1065_v55, %v1062_v45  ;;  %v1070_v59 = vmul.f32 %v1069_v17, %v2242_v35  ;;  %v1071_v50 = vmul.f32 %v1069_v17, %v2244_v38  ;;  %s2950_s26 = sld [smem:[#allocation11 + $0x601]] }
 0x111   :  { %v1067_v23 = vadd.f32 %v1065_v55, %v1063_v2  ;;  %v1044_v16 = vadd.f32 %v1042_v1, %v1038_v46  ;;  %v1075_v10 = vstv %s2812_s27  ;;  %v1081_v39 = vstv %s2814_s28  ;;  %s2956_s27 = sld [smem:[#allocation11 + $0x681]] }
 0x112   :  { %v1045_v19 = vadd.f32 %v1043_v18, %v1039_v47  ;;  %v1072_v32 = vadd.f32 %v1070_v59, %v1066_v22  ;;  %v1076_v28 = vmul.f32 %v1075_v10, %v2298_v43  ;;  %v1077_v37 = vmul.f32 %v1075_v10, %v2300_v44  ;;  %s2958_s28 = sld [smem:[#allocation11 + $0x701]] }
 0x113   :  { %v1073_v27 = vadd.f32 %v1071_v50, %v1067_v23  ;;  %v1050_v8 = vadd.f32 %v1048_v9, %v1044_v16  ;;  %v1082_v57 = vmul.f32 %v1081_v39, %v2336_v30  ;;  %v1083_v7 = vmul.f32 %v1081_v39, %v2338_v31 }
 0x114   :  { %v1051_v52 = vadd.f32 %v1049_v0, %v1045_v19  ;;  %v1078_v53 = vadd.f32 %v1076_v28, %v1072_v32  ;;  %v1087_v24 = vstv %s2824_s29  ;;  %v1093_v51 = vstv %s2826_s30  ;;  %s2964_s29 = sld [smem:[#allocation11 + $0x2]]  ;;  %s2968_s30 = sld [smem:[#allocation11 + $0x781]] }
 0x115   :  { %v1079_v40 = vadd.f32 %v1077_v37, %v1073_v27  ;;  %v1056_v25 = vadd.f32 %v1054_v33, %v1050_v8  ;;  %v1088_v56 = vmul.f32 %v1087_v24, %v2390_v60  ;;  %v1089_v1 = vmul.f32 %v1087_v24, %v2392_v61  ;;  %v3184_v37 = vld [vmem:[#allocation21_spill] sm:$0xff] }
 0x116   :  { %v1057_v58 = vadd.f32 %v1055_v34, %v1051_v52  ;;  %v1084_v18 = vadd.f32 %v1082_v57, %v1078_v53  ;;  %v1094_v0 = vmul.f32 %v1093_v51, %v2428_v41  ;;  %v1095_v4 = vmul.f32 %v1093_v51, %v2430_v42  ;;  %v3185_v52 = vld [vmem:[#allocation22_spill] sm:$0xff]  ;;  %v3186_v51 = vld [vmem:[#allocation23_spill] sm:$0xff] }
 0x117   :  { %v1085_v9 = vadd.f32 %v1083_v7, %v1079_v40  ;;  %v2866_v12 = vmax.f32 %v1004_v54, 0.0  ;;  %v2868_v3 = vmax.f32 %v1005_v26, 0.0  ;;  %v1099_v20 = vstv %s2836_s8  ;;  %s2972_s8 = sld [smem:[#allocation12 + $0x2]] }
 0x118   :  { %v1105_v33 = vstv %s2838_s9  ;;  %v1090_v34 = vadd.f32 %v1088_v56, %v1084_v18  ;;  %v1100_v2 = vmul.f32 %v1099_v20, %v2486_v14  ;;  %v1101_v46 = vmul.f32 %v1099_v20, %v2488_v15  ;;  %v3188_v18 = vld [vmem:[#allocation25_spill] sm:$0xff]  ;;  %s2974_s9 = sld [smem:[#allocation11 + $0x82]] }
 0x119   :  { %v1091_v45 = vadd.f32 %v1089_v1, %v1085_v9  ;;  %v2878_v47 = vmax.f32 %v1056_v25, 0.0  ;;  %v2880_v54 = vmax.f32 %v1057_v58, 0.0  ;;  %v1111_v26 = vstv %s2844_s1  ;;  %v3187_v58 = vld [vmem:[#allocation24_spill] sm:$0xff]  ;;  %s2982_s1 = sld [smem:[#allocation11 + $0x102]] }
 0x11a   :  { %v1117_v55 = vstv %s2846_s11  ;;  %v1096_v17 = vadd.f32 %v1094_v0, %v1090_v34  ;;  %v1106_v23 = vmul.f32 %v1105_v33, %v2524_v11  ;;  %v1107_v59 = vmul.f32 %v1105_v33, %v2526_v13  ;;  %s2984_s11 = sld [smem:[#allocation11 + $0x182]] }
 0x11b   :  { %v1097_v22 = vadd.f32 %v1095_v4, %v1091_v45  ;;  %v1112_v50 = vmul.f32 %v1111_v26, %v2578_v62  ;;  %v1113_v16 = vmul.f32 %v1111_v26, %v2580_v63  ;;  %v1123_v19 = vstv %s2852_s6  ;;  %s2994_s6 = sld [smem:[#allocation11 + $0x202]] }
 0x11c   :  { %v1129_v10 = vstv %s2854_s12  ;;  %v1102_v39 = vadd.f32 %v1100_v2, %v1096_v17  ;;  %v1118_v27 = vmul.f32 %v1117_v55, %v2616_v5  ;;  %v1119_v28 = vmul.f32 %v1117_v55, %v2618_v6  ;;  %s2996_s12 = sld [smem:[#allocation11 + $0x282]] }
 0x11d   :  { %v1103_v32 = vadd.f32 %v1101_v46, %v1097_v22  ;;  %v1124_v8 = vmul.f32 %v1123_v19, %v3184_v37  ;;  %v1125_v57 = vmul.f32 %v1123_v19, %v3185_v52  ;;  %v1135_v7 = vstv %s2860_s4  ;;  %s3008_s4 = sld [smem:[#allocation11 + $0x302]] }
 0x11e   :  { %v1141_v53 = vstv %s2862_s13  ;;  %v1108_v40 = vadd.f32 %v1106_v23, %v1102_v39  ;;  %v1130_v25 = vmul.f32 %v1129_v10, %v3186_v51  ;;  %v1131_v56 = vmul.f32 %v1129_v10, %v3187_v58  ;;  %s3010_s13 = sld [smem:[#allocation11 + $0x382]] }
 0x11f   :  { %v1109_v24 = vadd.f32 %v1107_v59, %v1103_v32  ;;  %v1136_v1 = vmul.f32 %v1135_v7, %v2766_v21  ;;  %v1137_v9 = vmul.f32 %v1135_v7, %v3188_v18  ;;  %v1142_v0 = vmul.f32 %v1141_v53, %v2804_v36 }
 0x120   :  { %v1147_v4 = vstv %s2872_s14  ;;  %v1114_v20 = vadd.f32 %v1112_v50, %v1108_v40  ;;  %v1143_v34 = vmul.f32 %v1141_v53, %v2806_v29  ;;  %v1153_v45 = vstv %s2876_s15  ;;  %s3018_s14 = sld [smem:[#allocation11 + $0x402]] }
 0x121   :  { %v1115_v33 = vadd.f32 %v1113_v16, %v1109_v24  ;;  %v1148_v2 = vmul.f32 %v1147_v4, %v2866_v12  ;;  %v1149_v46 = vmul.f32 %v1147_v4, %v2868_v3  ;;  %v1161_v26 = vstv %s2884_s16  ;;  %s3022_s15 = sld [smem:[#allocation11 + $0x482]] }
 0x122   :  { %v1165_v55 = vstv %s2886_s17  ;;  %v1120_v17 = vadd.f32 %v1118_v27, %v1114_v20  ;;  %v1162_v23 = vmul.f32 %v1161_v26, %v2204_v48  ;;  %v1163_v59 = vmul.f32 %v1161_v26, %v2206_v49  ;;  %s3028_s16 = sld [smem:[#allocation11 + $0x502]] }
 0x123   :  { %v1121_v22 = vadd.f32 %v1119_v28, %v1115_v33  ;;  %v1154_v50 = vmul.f32 %v1153_v45, %v2878_v47  ;;  %v1169_v16 = vstv %s2890_s18  ;;  %v1175_v19 = vstv %s2896_s19  ;;  %s3030_s17 = sld [smem:[#allocation11 + $0x582]] }
 0x124   :  { %v1181_v10 = vstv %s2898_s20  ;;  %v1126_v39 = vadd.f32 %v1124_v8, %v1120_v17  ;;  %v1166_v7 = vadd.f32 %v1165_v55, %v1162_v23  ;;  %v1167_v53 = vadd.f32 %v1165_v55, %v1163_v59  ;;  %s3036_s18 = sld [smem:[#allocation11 + $0x602]] }
 0x125   :  { %v1127_v32 = vadd.f32 %v1125_v57, %v1121_v22  ;;  %v1170_v27 = vmul.f32 %v1169_v16, %v2242_v35  ;;  %v1171_v28 = vmul.f32 %v1169_v16, %v2244_v38  ;;  %v1176_v40 = vmul.f32 %v1175_v19, %v2298_v43  ;;  %s3038_s19 = sld [smem:[#allocation11 + $0x682]] }
 0x126   :  { %v1177_v24 = vmul.f32 %v1175_v19, %v2300_v44  ;;  %v1132_v4 = vadd.f32 %v1130_v25, %v1126_v39  ;;  %v1155_v33 = vmul.f32 %v1153_v45, %v2880_v54  ;;  %v1187_v8 = vstv %s2908_s21  ;;  %s3044_s20 = sld [smem:[#allocation11 + $0x702]] }
 0x127   :  { %v1133_v20 = vadd.f32 %v1131_v56, %v1127_v32  ;;  %v1172_v57 = vadd.f32 %v1170_v27, %v1166_v7  ;;  %v1173_v26 = vadd.f32 %v1171_v28, %v1167_v53  ;;  %v1182_v55 = vmul.f32 %v1181_v10, %v2336_v30  ;;  %s3048_s21 = sld [smem:[#allocation11 + $0x782]] }
 0x128   :  { %v1183_v17 = vmul.f32 %v1181_v10, %v2338_v31  ;;  %v1138_v22 = vadd.f32 %v1136_v1, %v1132_v4  ;;  %v1193_v59 = vstv %s2916_s22  ;;  %v1199_v16 = vstv %s2918_s5  ;;  %s3052_s22 = sld [smem:[#allocation11 + $0x3]] }
 0x129   :  { %v1139_v23 = vadd.f32 %v1137_v9, %v1133_v20  ;;  %v1178_v25 = vadd.f32 %v1176_v40, %v1172_v57  ;;  %v1179_v56 = vadd.f32 %v1177_v24, %v1173_v26  ;;  %v1188_v45 = vmul.f32 %v1187_v8, %v2390_v60  ;;  %s3054_s5 = sld [smem:[#allocation12 + $0x3]] }
 0x12a   :  { %v1189_v19 = vmul.f32 %v1187_v8, %v2392_v61  ;;  %v1144_v39 = vadd.f32 %v1142_v0, %v1138_v22  ;;  %v1194_v10 = vmul.f32 %v1193_v59, %v2428_v41  ;;  %v1195_v1 = vmul.f32 %v1193_v59, %v2430_v42 }
 0x12b   :  { %v1145_v32 = vadd.f32 %v1143_v34, %v1139_v23  ;;  %v1184_v9 = vadd.f32 %v1182_v55, %v1178_v25  ;;  %v1185_v7 = vadd.f32 %v1183_v17, %v1179_v56  ;;  %v1200_v53 = vmul.f32 %v1199_v16, %v2486_v14 }
 0x12c   :  { %v1205_v27 = vstv %s2930_s23  ;;  %v1150_v28 = vadd.f32 %v1148_v2, %v1144_v39  ;;  %v1201_v0 = vmul.f32 %v1199_v16, %v2488_v15  ;;  %v1211_v34 = vstv %s2932_s3  ;;  %s3058_s23 = sld [smem:[#allocation11 + $0x83]] }
 0x12d   :  { %v1151_v40 = vadd.f32 %v1149_v46, %v1145_v32  ;;  %v1190_v24 = vadd.f32 %v1188_v45, %v1184_v9  ;;  %v1191_v4 = vadd.f32 %v1189_v19, %v1185_v7  ;;  %v1206_v20 = vmul.f32 %v1205_v27, %v2524_v11  ;;  %s3060_s3 = sld [smem:[#allocation11 + $0x103]] }
 0x12e   :  { %v1207_v8 = vmul.f32 %v1205_v27, %v2526_v13  ;;  %v1156_v57 = vadd.f32 %v1154_v50, %v1150_v28  ;;  %v1217_v55 = vstv %s2940_s24  ;;  %v1223_v2 = vstv %s2942_s0  ;;  %s3070_s24 = sld [smem:[#allocation11 + $0x183]] }
 0x12f   :  { %v1157_v26 = vadd.f32 %v1155_v33, %v1151_v40  ;;  %v1196_v46 = vadd.f32 %v1194_v10, %v1190_v24  ;;  %v1197_v17 = vadd.f32 %v1195_v1, %v1191_v4  ;;  %v1212_v22 = vmul.f32 %v1211_v34, %v2578_v62  ;;  %s3072_s0 = sld [smem:[#allocation11 + $0x203]] }
 0x130   :  { %v1213_v23 = vmul.f32 %v1211_v34, %v2580_v63  ;;  %1158 = vst [vmem:[#allocation13] sm:$0xff] %v1156_v57  ;;  %v1218_v59 = vmul.f32 %v1217_v55, %v2616_v5  ;;  %v1219_v50 = vmul.f32 %v1217_v55, %v2618_v6  ;;  %v1229_v33 = vstv %s2948_s25  ;;  %s3084_s25 = sld [smem:[#allocation11 + $0x283]] }
 0x131   :  { %1159 = vst [vmem:[#allocation13 + $0x8] sm:$0xff] %v1157_v26  ;;  %v1235_v16 = vstv %s2950_s26  ;;  %v1202_v25 = vadd.f32 %v1200_v53, %v1196_v46  ;;  %v1203_v56 = vadd.f32 %v1201_v0, %v1197_v17  ;;  %v1224_v45 = vmul.f32 %v1223_v2, %v3184_v37  ;;  %s3088_s26 = sld [smem:[#allocation11 + $0x303]] }
 0x132   :  { %v1225_v19 = vmul.f32 %v1223_v2, %v3185_v52  ;;  %v1230_v39 = vmul.f32 %v1229_v33, %v3186_v51  ;;  %v1231_v32 = vmul.f32 %v1229_v33, %v3187_v58  ;;  %v1241_v10 = vstv %s2956_s27  ;;  %s3096_s27 = sld [smem:[#allocation11 + $0x383]] }
 0x133   :  { %v1247_v1 = vstv %s2958_s28  ;;  %v1208_v9 = vadd.f32 %v1206_v20, %v1202_v25  ;;  %v1209_v7 = vadd.f32 %v1207_v8, %v1203_v56  ;;  %v1236_v27 = vmul.f32 %v1235_v16, %v2766_v21  ;;  %s3102_s28 = sld [smem:[#allocation11 + $0x403]] }
 0x134   :  { %v1237_v53 = vmul.f32 %v1235_v16, %v3188_v18  ;;  %v1242_v28 = vmul.f32 %v1241_v10, %v2804_v36  ;;  %v1243_v40 = vmul.f32 %v1241_v10, %v2806_v29  ;;  %v1248_v0 = vmul.f32 %v1247_v1, %v2866_v12 }
 0x135   :  { %v1262_v34 = vstv %s2964_s29  ;;  %v1214_v24 = vadd.f32 %v1212_v22, %v1208_v9  ;;  %v1215_v4 = vadd.f32 %v1213_v23, %v1209_v7  ;;  %v1249_v20 = vmul.f32 %v1247_v1, %v2868_v3  ;;  %s3108_s29 = sld [smem:[#allocation11 + $0x483]] }
 0x136   :  { %v1253_v8 = vstv %s2968_s30  ;;  %v1263_v57 = vmul.f32 %v1262_v34, %v2204_v48  ;;  %v1264_v26 = vmul.f32 %v1262_v34, %v2206_v49  ;;  %v1266_v55 = vstv %s2972_s8  ;;  %s3114_s30 = sld [smem:[#allocation11 + $0x503]] }
 0x137   :  { %v1270_v2 = vstv %s2974_s9  ;;  %v1220_v46 = vadd.f32 %v1218_v59, %v1214_v24  ;;  %v1221_v17 = vadd.f32 %v1219_v50, %v1215_v4  ;;  %v1276_v25 = vstv %s2982_s1  ;;  %s3119_s8 = sld [smem:[#allocation11 + $0x583]] }
 0x138   :  { %v1271_v22 = vmul.f32 %v1270_v2, %v2242_v35  ;;  %v1272_v23 = vmul.f32 %v1270_v2, %v2244_v38  ;;  %v1267_v33 = vadd.f32 %v1266_v55, %v1263_v57  ;;  %v1268_v16 = vadd.f32 %v1266_v55, %v1264_v26  ;;  %s3124_s9 = sld [smem:[#allocation11 + $0x603]] }
 0x139   :  { %v1282_v56 = vstv %s2984_s11  ;;  %v1226_v10 = vadd.f32 %v1224_v45, %v1220_v46  ;;  %v1227_v1 = vadd.f32 %v1225_v19, %v1221_v17  ;;  %v1277_v9 = vmul.f32 %v1276_v25, %v2298_v43  ;;  %s3129_s1 = sld [smem:[#allocation11 + $0x683]] }
 0x13a   :  { %v1278_v7 = vmul.f32 %v1276_v25, %v2300_v44  ;;  %v1273_v59 = vadd.f32 %v1271_v22, %v1267_v33  ;;  %v1274_v50 = vadd.f32 %v1272_v23, %v1268_v16  ;;  %v1283_v34 = vmul.f32 %v1282_v56, %v2336_v30  ;;  %s1719_s11 = sld [smem:[#allocation11 + $0x703]] }
 0x13b   :  { %v1284_v24 = vmul.f32 %v1282_v56, %v2338_v31  ;;  %v1232_v4 = vadd.f32 %v1230_v39, %v1226_v10  ;;  %v1233_v57 = vadd.f32 %v1231_v32, %v1227_v1  ;;  %v1288_v45 = vstv %s2994_s6  ;;  %s1720_s6 = sld [smem:[#allocation11 + $0x783]] }
 0x13c   :  { %v1294_v19 = vstv %s2996_s12  ;;  %v1279_v26 = vadd.f32 %v1277_v9, %v1273_v59  ;;  %v1280_v55 = vadd.f32 %v1278_v7, %v1274_v50  ;;  %v1289_v2 = vmul.f32 %v1288_v45, %v2390_v60  ;;  %s1840_s12 = smov [#allocation13]  }
 0x13d   :  { %v1290_v46 = vmul.f32 %v1288_v45, %v2392_v61  ;;  %v1238_v17 = vadd.f32 %v1236_v27, %v1232_v4  ;;  %v1239_v22 = vadd.f32 %v1237_v53, %v1233_v57  ;;  %v1295_v23 = vmul.f32 %v1294_v19, %v2428_v41 }
 0x13e   :  { %v1296_v39 = vmul.f32 %v1294_v19, %v2430_v42  ;;  %v1285_v32 = vadd.f32 %v1283_v34, %v1279_v26  ;;  %v1286_v33 = vadd.f32 %v1284_v24, %v1280_v55  ;;  %v1300_v16 = vstv %s3008_s4  ;;  %s1470_s4 = sshll.u32 %s1840_s12, 4  ;;  %s1471_s4 = int_to_ptr.vmem [resolvable:$true] %s1470_s4 }
 0x13f   :  { %v1306_v25 = vstv %s3010_s13  ;;  %v1244_v56 = vadd.f32 %v1242_v28, %v1238_v17  ;;  %v1245_v10 = vadd.f32 %v1243_v40, %v1239_v22  ;;  %v1254_v1 = vmul.f32 %v1253_v8, %v2878_v47  ;;  %s1796_s13 = scalar_lea.vmem %s1471_s4, 1024  ;;  %p1801_p11 = scmp.lt.s32.totalorder %s1471_s4, %s1471_s4 }
 0x140   :  { %v1255_v27 = vmul.f32 %v1253_v8, %v2880_v54  ;;  %v1291_v53 = vadd.f32 %v1289_v2, %v1285_v32  ;;  %v1292_v9 = vadd.f32 %v1290_v46, %v1286_v33  ;;  %v1301_v7 = vmul.f32 %v1300_v16, %v2486_v14  ;;  %p1797_p10 = scmp.ne.s32.totalorder %s1471_s4, %s1796_s13  ;;  %p1802_p12 = scmp.lt.s32.totalorder %s1796_s13, %s1796_s13 }
 0x141   :  { %v1302_v59 = vmul.f32 %v1300_v16, %v2488_v15  ;;  %v1250_v50 = vadd.f32 %v1248_v0, %v1244_v56  ;;  %v1251_v34 = vadd.f32 %v1249_v20, %v1245_v10  ;;  %v1307_v24 = vmul.f32 %v1306_v25, %v2524_v11 }
 0x142   :  { %v1312_v4 = vstv %s3018_s14  ;;  %v1297_v28 = vadd.f32 %v1295_v23, %v1291_v53  ;;  %v1298_v40 = vadd.f32 %v1296_v39, %v1292_v9  ;;  %v1308_v8 = vmul.f32 %v1306_v25, %v2526_v13  ;;  %p1803_p13 = por %p1802_p12, %p1801_p11 }
 0x143   :  { %v1318_v57 = vstv %s3022_s15  ;;  %v1256_v45 = vadd.f32 %v1254_v1, %v1250_v50  ;;  %v1257_v19 = vadd.f32 %v1255_v27, %v1251_v34  ;;  %v1313_v0 = vmul.f32 %v1312_v4, %v2578_v62 }
 0x144   :  { %v1314_v20 = vmul.f32 %v1312_v4, %v2580_v63  ;;  %v1303_v26 = vadd.f32 %v1301_v7, %v1297_v28  ;;  %v1304_v55 = vadd.f32 %v1302_v59, %v1298_v40  ;;  %v1324_v2 = vstv %s3028_s16  ;;  %p1804_p0 = pnand %p1803_p13, %p1797_p10 }
 0x145   :  { %v1330_v46 = vstv %s3030_s17  ;;  %1259 = vst [vmem:[#allocation13 + $0x10] sm:$0xff] %v1256_v45  ;;  %1260 = vst [vmem:[#allocation13 + $0x18] sm:$0xff] %v1257_v19  ;;  %v1319_v17 = vmul.f32 %v1318_v57, %v2616_v5  ;;  %v1320_v22 = vmul.f32 %v1318_v57, %v2618_v6  ;;  %v1325_v23 = vmul.f32 %v1324_v2, %v3184_v37 }
 0x146   :  { %v1326_v39 = vmul.f32 %v1324_v2, %v3185_v52  ;;  %v1309_v32 = vadd.f32 %v1307_v24, %v1303_v26  ;;  %v1310_v33 = vadd.f32 %v1308_v8, %v1304_v55  ;;  %v1336_v16 = vstv %s3036_s18 }
 0x147   :  { %v1342_v25 = vstv %s3038_s19  ;;  %v1331_v56 = vmul.f32 %v1330_v46, %v3186_v51  ;;  %v1332_v10 = vmul.f32 %v1330_v46, %v3187_v58  ;;  %v1337_v1 = vmul.f32 %v1336_v16, %v2766_v21 }
 0x148   :  { %v1338_v27 = vmul.f32 %v1336_v16, %v3188_v18  ;;  %v1315_v53 = vadd.f32 %v1313_v0, %v1309_v32  ;;  %v1316_v9 = vadd.f32 %v1314_v20, %v1310_v33  ;;  %v1343_v7 = vmul.f32 %v1342_v25, %v2804_v36 }
 0x149   :  { %v1348_v59 = vstv %s3044_s20  ;;  %v1344_v50 = vmul.f32 %v1342_v25, %v2806_v29  ;;  %v1354_v4 = vstv %s3048_s21  ;;  %v1364_v8 = vstv %s3052_s22 }
 0x14a   :  { %v1349_v34 = vmul.f32 %v1348_v59, %v2866_v12  ;;  %v1350_v24 = vmul.f32 %v1348_v59, %v2868_v3  ;;  %v1321_v28 = vadd.f32 %v1319_v17, %v1315_v53  ;;  %v1322_v40 = vadd.f32 %v1320_v22, %v1316_v9 }
 0x14b   :  { %v1368_v57 = vstv %s3054_s5  ;;  %v1365_v45 = vmul.f32 %v1364_v8, %v2204_v48  ;;  %v1366_v19 = vmul.f32 %v1364_v8, %v2206_v49  ;;  %v1372_v0 = vstv %s3058_s23 }
 0x14c   :  { %v1378_v20 = vstv %s3060_s3  ;;  %v1327_v26 = vadd.f32 %v1325_v23, %v1321_v28  ;;  %v1328_v55 = vadd.f32 %v1326_v39, %v1322_v40  ;;  %v1373_v2 = vmul.f32 %v1372_v0, %v2242_v35 }
 0x14d   :  { %v1374_v46 = vmul.f32 %v1372_v0, %v2244_v38  ;;  %v1369_v17 = vadd.f32 %v1368_v57, %v1365_v45  ;;  %v1370_v22 = vadd.f32 %v1368_v57, %v1366_v19  ;;  %v1379_v32 = vmul.f32 %v1378_v20, %v2298_v43 }
 0x14e   :  { %v1380_v33 = vmul.f32 %v1378_v20, %v2300_v44  ;;  %v1333_v48 = vadd.f32 %v1331_v56, %v1327_v26  ;;  %v1334_v16 = vadd.f32 %v1332_v10, %v1328_v55  ;;  %v1384_v49 = vstv %s3070_s24 }
 0x14f   :  { %v1390_v25 = vstv %s3072_s0  ;;  %v1375_v23 = vadd.f32 %v1373_v2, %v1369_v17  ;;  %v1376_v35 = vadd.f32 %v1374_v46, %v1370_v22  ;;  %v1385_v38 = vmul.f32 %v1384_v49, %v2336_v30 }
 0x150   :  { %v1386_v39 = vmul.f32 %v1384_v49, %v2338_v31  ;;  %v1339_v53 = vadd.f32 %v1337_v1, %v1333_v48  ;;  %v1340_v9 = vadd.f32 %v1338_v27, %v1334_v16  ;;  %v1355_v43 = vmul.f32 %v1354_v4, %v2878_v47 }
 0x151   :  { %v1391_v44 = vmul.f32 %v1390_v25, %v2390_v60  ;;  %v1381_v56 = vadd.f32 %v1379_v32, %v1375_v23  ;;  %v1382_v10 = vadd.f32 %v1380_v33, %v1376_v35  ;;  %v1392_v59 = vmul.f32 %v1390_v25, %v2392_v61 }
 0x152   :  { %v1396_v28 = vstv %s3084_s25  ;;  %v1345_v40 = vadd.f32 %v1343_v7, %v1339_v53  ;;  %v1346_v8 = vadd.f32 %v1344_v50, %v1340_v9  ;;  %v1356_v30 = vmul.f32 %v1354_v4, %v2880_v54 }
 0x153   :  { %v1402_v57 = vstv %s3088_s26  ;;  %v1387_v31 = vadd.f32 %v1385_v38, %v1381_v56  ;;  %v1388_v1 = vadd.f32 %v1386_v39, %v1382_v10  ;;  %v1397_v60 = vmul.f32 %v1396_v28, %v2428_v41 }
 0x154   :  { %v1398_v27 = vmul.f32 %v1396_v28, %v2430_v42  ;;  %v1351_v45 = vadd.f32 %v1349_v34, %v1345_v40  ;;  %v1352_v19 = vadd.f32 %v1350_v24, %v1346_v8  ;;  %v1408_v0 = vstv %s3096_s27 }
 0x155   :  { %v1393_v61 = vadd.f32 %v1391_v44, %v1387_v31  ;;  %v1394_v7 = vadd.f32 %v1392_v59, %v1388_v1  ;;  %v1403_v50 = vmul.f32 %v1402_v57, %v2486_v14  ;;  %v1404_v4 = vmul.f32 %v1402_v57, %v2488_v15 }
 0x156   :  { %v1357_v20 = vadd.f32 %v1355_v43, %v1351_v45  ;;  %v1358_v26 = vadd.f32 %v1356_v30, %v1352_v19  ;;  %v1414_v55 = vstv %s3102_s28  ;;  %v1409_v34 = vmul.f32 %v1408_v0, %v2524_v11 }
 0x157   :  { %v1399_v41 = vadd.f32 %v1397_v60, %v1393_v61  ;;  %v1400_v42 = vadd.f32 %v1398_v27, %v1394_v7  ;;  %v1410_v24 = vmul.f32 %v1408_v0, %v2526_v13  ;;  %v1420_v2 = vstv %s3108_s29 }
 0x158   :  { %1361 = vst [vmem:[#allocation13 + $0x20] sm:$0xff] %v1357_v20  ;;  %1362 = vst [vmem:[#allocation13 + $0x28] sm:$0xff] %v1358_v26  ;;  %v1415_v46 = vmul.f32 %v1414_v55, %v2578_v62  ;;  %v1416_v17 = vmul.f32 %v1414_v55, %v2580_v63  ;;  %v1426_v22 = vstv %s3114_s30  ;;  %v1421_v33 = vmul.f32 %v1420_v2, %v2616_v5 }
 0x159   :  { %v1405_v14 = vadd.f32 %v1403_v50, %v1399_v41  ;;  %v1406_v15 = vadd.f32 %v1404_v4, %v1400_v42  ;;  %v1422_v13 = vmul.f32 %v1420_v2, %v2618_v6  ;;  %v1432_v48 = vstv %s3119_s8 }
 0x15a   :  { %v1427_v25 = vmul.f32 %v1426_v22, %v3184_v37  ;;  %v1428_v23 = vmul.f32 %v1426_v22, %v3185_v52  ;;  %v1438_v62 = vstv %s3124_s9  ;;  %v1433_v38 = vmul.f32 %v1432_v48, %v3186_v51 }
 0x15b   :  { %v1411_v32 = vadd.f32 %v1409_v34, %v1405_v14  ;;  %v1412_v11 = vadd.f32 %v1410_v24, %v1406_v15  ;;  %v1434_v39 = vmul.f32 %v1432_v48, %v3187_v58  ;;  %v1444_v53 = vstv %s3129_s1 }
 0x15c   :  { %v1439_v6 = vmul.f32 %v1438_v62, %v2766_v21  ;;  %v1440_v43 = vmul.f32 %v1438_v62, %v3188_v18  ;;  %v1450_v44 = vstv %s1719_s11  ;;  %v1445_v37 = vmul.f32 %v1444_v53, %v2804_v36 }
 0x15d   :  { %v1417_v16 = vadd.f32 %v1415_v46, %v1411_v32  ;;  %v1418_v49 = vadd.f32 %v1416_v17, %v1412_v11  ;;  %v1446_v52 = vmul.f32 %v1444_v53, %v2806_v29  ;;  %v1456_v59 = vstv %s1720_s6 }
 0x15e   :  { %v1451_v51 = vmul.f32 %v1450_v44, %v2866_v12  ;;  %v1452_v58 = vmul.f32 %v1450_v44, %v2868_v3  ;;  %v1457_v21 = vmul.f32 %v1456_v59, %v2878_v47  ;;  %v1458_v18 = vmul.f32 %v1456_v59, %v2880_v54 }
 0x15f   :  { %v1423_v35 = vadd.f32 %v1421_v33, %v1417_v16  ;;  %v1424_v63 = vadd.f32 %v1422_v13, %v1418_v49 }
 0x161   :  { %v1429_v9 = vadd.f32 %v1427_v25, %v1423_v35  ;;  %v1430_v5 = vadd.f32 %v1428_v23, %v1424_v63 }
 0x163   :  { %v1435_v56 = vadd.f32 %v1433_v38, %v1429_v9  ;;  %v1436_v10 = vadd.f32 %v1434_v39, %v1430_v5 }
 0x165   :  { %v1441_v28 = vadd.f32 %v1439_v6, %v1435_v56  ;;  %v1442_v40 = vadd.f32 %v1440_v43, %v1436_v10 }
 0x167   :  { %v1447_v8 = vadd.f32 %v1445_v37, %v1441_v28  ;;  %v1448_v30 = vadd.f32 %v1446_v52, %v1442_v40 }
 0x169   :  { %v1453_v57 = vadd.f32 %v1451_v51, %v1447_v8  ;;  %v1454_v31 = vadd.f32 %v1452_v58, %v1448_v30 }
 0x16b   :  { %v1459_v36 = vadd.f32 %v1457_v21, %v1453_v57  ;;  %v1460_v1 = vadd.f32 %v1458_v18, %v1454_v31 }
 0x16d   :  { %1463 = vst [vmem:[#allocation13 + $0x30] sm:$0xff] %v1459_v36  ;;  %1464 = vst [vmem:[#allocation13 + $0x38] sm:$0xff] %v1460_v1 }
 0x16e   :  { %1807 = shalt.err (!%p1804_p0)
}
 0x16f   :  { %s1808_s16 = scalar_lea.hbm %s3173_s7, 1024 }
 0x170   :  { %p1809_p1 = scmp.ne.s32.totalorder %s3173_s7, %s1808_s16  ;;  %p1812_p2 = scmp.lt.u32.totalorder %s1808_s16, %s3173_s7 }
 0x172   :  { %p1814_p3 = pnand %p1812_p2, %p1809_p1 }
 0x174   :  { %1817 = shalt.err (!%p1814_p3)
}
 0x175   :  { %1476 = dma.vmem_to_hbm [thread:$0]  %s1471_s4, 1024, %s3173_s7, [#allocation3], %s1837_s10, %s1837_s10, %s1838_s2  }
 0x176   :  { %1830 = dma.done.wait [#allocation3], 1024  }
 0x177   :  { %1831 = vsyncadd [#allocation3], 4294966272 }
 0x178   :  { %1480 = vsyncpa [#allocation3], 1 }
 0x179   :  { %1481 = vsyncpa [#allocation4], 1 }
 0x17a   :  { %1482 = vsyncpa [#allocation10], 1 }
 0x17b   :  { %1483 = vsyncpa [#allocation5], 1 }
 0x17c   :  { %1484 = vsyncpa [#allocation8], 1 }

</bundles_post_ra>
